<compile_context>
chip_gen: v7x
topology: tpu7x:2x2x1
jax: 0.10.0
libtpu: 0.0.40
codegen_flags: <defaults>
</compile_context>

<pallas_src>
import functools
import math

import jax
import jax.numpy as jnp
import numpy as np
from jax.experimental import pallas as pl
from jax.experimental.pallas import tpu as pltpu

LN_EPS = 1e-5


def _block_kernel(x_ref, g1_ref, b1_ref, wqkv_ref, wproj_ref, bproj_ref,
                  g2_ref, b2_ref, wfc1_ref, bfc1_ref, wfc2_ref, bfc2_ref,
                  o_ref, *, num_heads, dim, seq_len, tokens_per_block):
    TB, N, C, H = tokens_per_block, seq_len, dim, num_heads
    D = C // H
    R = TB * N

    # ---- load token slab; flatten tokens into rows (lane dim unchanged) -----
    x = x_ref[...].reshape(R, C)                                   # (R, C) f32

    # ---- LayerNorm 1 (single-pass stats, f32) --------------------------------
    mu = jnp.mean(x, axis=-1, keepdims=True)
    ex2 = jnp.mean(x * x, axis=-1, keepdims=True)
    var = ex2 - mu * mu
    xn = (x - mu) * jax.lax.rsqrt(var + LN_EPS) * g1_ref[...] + b1_ref[...]
    xn_b = xn.astype(jnp.bfloat16)

    # ---- fused QKV projection (bf16 in, f32 accumulate) ----------------------
    # Attention scale is already folded into the q columns wrapper-side.
    qkv = jnp.dot(xn_b, wqkv_ref[...], preferred_element_type=jnp.float32)  # (R, 3C)
    q = qkv[:, 0 * C:1 * C]
    k = qkv[:, 1 * C:2 * C]
    v = qkv[:, 2 * C:3 * C]

    def to_heads(t):
        # (R, C) -> (TB*H, N, D): heads folded into a single batch dim.
        t = t.reshape(TB, N, H, D)
        t = jnp.swapaxes(t, 1, 2)                                  # (TB, H, N, D)
        return t.reshape(TB * H, N, D)
    # TODO(synk): 4 head relayouts per step are pure XLU/copy traffic; a
    # D=128-aligned head packing could keep heads in the lane dim.

    qh = to_heads(q).astype(jnp.bfloat16)
    kh = to_heads(k).astype(jnp.bfloat16)
    vh = to_heads(v).astype(jnp.bfloat16)

    # ---- batched attention over (token-block x head) -------------------------
    s = jnp.einsum('gnd,gmd->gnm', qh, kh,
                   preferred_element_type=jnp.float32)             # (G, N, N) f32
    s = s - jnp.max(s, axis=-1, keepdims=True)
    p = jnp.exp(s)
    p = p * pl.reciprocal(jnp.sum(p, axis=-1, keepdims=True), approx=True)

    a = jnp.einsum('gnm,gmd->gnd', p.astype(jnp.bfloat16), vh,
                   preferred_element_type=jnp.float32)             # (G, N, D)
    a = a.reshape(TB, H, N, D)
    a = jnp.swapaxes(a, 1, 2).reshape(R, C)                        # (R, C)

    attn_out = (jnp.dot(a.astype(jnp.bfloat16), wproj_ref[...],
                        preferred_element_type=jnp.float32) + bproj_ref[...])

    x = x + attn_out                                               # residual 1

    # ---- LayerNorm 2 (single-pass stats) --------------------------------------
    mu2 = jnp.mean(x, axis=-1, keepdims=True)
    ex2_2 = jnp.mean(x * x, axis=-1, keepdims=True)
    var2 = ex2_2 - mu2 * mu2
    xn2 = (x - mu2) * jax.lax.rsqrt(var2 + LN_EPS) * g2_ref[...] + b2_ref[...]

    # ---- MLP (bf16 MXU; tanh GELU routes through the EUP slot) ----------------
    h1 = (jnp.dot(xn2.astype(jnp.bfloat16), wfc1_ref[...],
                  preferred_element_type=jnp.float32) + bfc1_ref[...])
    h1 = jax.nn.gelu(h1, approximate=True)
    mlp_out = (jnp.dot(h1.astype(jnp.bfloat16), wfc2_ref[...],
                       preferred_element_type=jnp.float32) + bfc2_ref[...])

    o_ref[...] = (x + mlp_out).reshape(TB, N, C)                   # residual 2


def _vmem_capacity_bytes():
    try:
        info = pltpu.get_tpu_info()
        v = getattr(info, "vmem_capacity_bytes", None)
        if v:
            return int(v)
    except Exception:
        pass
    return 64 * 1024 * 1024   # conservative (v7x per-TensorCore VMEM)


def _choose_token_block(bt, n, c, hid, num_heads, vmem_bytes):
    """Pick TB (tokens per grid step) under a generation-aware VMEM budget."""
    # Resident weights (bf16, single-buffered): qkv + proj + fc1 + fc2.
    weight_bytes = 2 * (3 * c * c + c * c + c * hid + hid * c)
    budget = int(vmem_bytes * 0.70) - weight_bytes
    budget = max(budget, 1 << 20)

    # Conservative per-token VMEM cost (bytes), including the score tensors.
    per_tb = (4 * n * c * 4                      # in + out f32 slabs, double-buffered
              + 8 * n * c * 4                    # live f32 row-activation copies
              + 2 * n * hid * 4                  # MLP hidden activations
              + 2 * num_heads * n * n * 4)       # attention scores s and p (f32)
    tb_cap = max(1, budget // per_tb)

    # Bigger slabs on 128 MiB-VMEM parts (v5e/v6e); modest on 64 MiB (v7x).
    target_rows = 2048 if vmem_bytes >= (96 << 20) else 512
    tb = max(1, min(bt, tb_cap, max(1, target_rows // max(n, 1))))

    if bt >= 2:
        tb = min(tb, max(1, bt // 2))            # keep >= 2 grid steps
    while bt % tb:
        tb -= 1
    # Prefer an even number of grid steps (v7x: 2 TensorCores share the grid).
    if (bt // tb) % 2 and bt % 2 == 0:
        t = tb
        while t >= 1:
            if bt % t == 0 and (bt // t) % 2 == 0:
                tb = t
                break
            t -= 1
    return tb


def block_forward(x, params, *, num_heads):
    """x: (B, T, N, C) float32. Returns (B, T, N, C)."""
    B, T, N, C = x.shape
    BT = B * T
    x_flat = x.reshape(BT, N, C)

    (g1, b1, wqkv, wproj, bproj, g2, b2, wfc1, bfc1, wfc2, bfc2) = params
    Hid = wfc1.shape[1]
    D = C // num_heads
    scale = D ** (-0.5)

    # Wrapper-side layout plumbing (free): fold attention scale into the q
    # columns of the fused qkv weight, cast matmul weights to bf16.
    wqkv_scaled = jnp.concatenate([wqkv[:, :C] * scale, wqkv[:, C:]], axis=1)
    wqkv_b = wqkv_scaled.astype(jnp.bfloat16)
    wproj_b = wproj.astype(jnp.bfloat16)
    wfc1_b = wfc1.astype(jnp.bfloat16)
    wfc2_b = wfc2.astype(jnp.bfloat16)

    vmem_bytes = _vmem_capacity_bytes()
    vmem_limit = max(32 * 1024 * 1024,
                     min(int(vmem_bytes * 0.85), 110 * 1024 * 1024))

    TB = _choose_token_block(BT, N, C, Hid, num_heads, vmem_bytes)
    grid = (BT // TB,)

    tok_spec = pl.BlockSpec((TB, N, C), lambda i: (i, 0, 0))

    kernel = functools.partial(_block_kernel, num_heads=num_heads, dim=C,
                               seq_len=N, tokens_per_block=TB)

    rows = BT * N
    flops = (2 * rows * C * (3 * C + C + 2 * Hid)
             + 4 * BT * num_heads * N * N * D)
    transcendentals = rows * Hid + BT * num_heads * N * N
    bytes_accessed = (2 * rows * C * 4
                      + (3 * C * C + C * C + 2 * C * Hid) * 2
                      + (6 * C + Hid) * 4)

    args = (x_flat, g1, b1, wqkv_b, wproj_b, bproj, g2, b2,
            wfc1_b, bfc1, wfc2_b, bfc2)

    def make_call(weight_buffers):
        def wspec(shape):
            # Grid-invariant operands: single-buffer when supported.
            if weight_buffers is None:
                return pl.BlockSpec(shape, lambda i: (0, 0))
            return pl.BlockSpec(shape, lambda i: (0, 0),
                                pipeline_mode=pl.Buffered(weight_buffers))

        in_specs = [
            tok_spec,               # x                (f32)
            wspec((1, C)),          # ln1 gamma        (f32)
            wspec((1, C)),          # ln1 beta         (f32)
            wspec((C, 3 * C)),      # fused qkv weight (bf16, q-scaled)
            wspec((C, C)),          # proj weight      (bf16)
            wspec((1, C)),          # proj bias        (f32)
            wspec((1, C)),          # ln2 gamma        (f32)
            wspec((1, C)),          # ln2 beta         (f32)
            wspec((C, Hid)),        # fc1 weight       (bf16)
            wspec((1, Hid)),        # fc1 bias         (f32)
            wspec((Hid, C)),        # fc2 weight       (bf16)
            wspec((1, C)),          # fc2 bias         (f32)
        ]
        return pl.pallas_call(
            kernel,
            out_shape=jax.ShapeDtypeStruct((BT, N, C), jnp.float32),
            grid_spec=pltpu.PrefetchScalarGridSpec(
                num_scalar_prefetch=0,
                grid=grid,
                in_specs=in_specs,
                out_specs=tok_spec,
            ),
            compiler_params=pltpu.CompilerParams(
                dimension_semantics=("parallel",),
                vmem_limit_bytes=vmem_limit,
            ),
            cost_estimate=pl.CostEstimate(
                flops=flops, transcendentals=transcendentals,
                bytes_accessed=bytes_accessed),
        )

    try:
        out = jax.block_until_ready(make_call(1)(*args))
    except Exception:
        # Fallback: default (double) buffering, previously verified to compile.
        out = jax.block_until_ready(make_call(None)(*args))

    return out.reshape(B, T, N, C)


def make_params(key, dim, mlp_ratio=4.0):
    hidden = int(dim * mlp_ratio)
    ks = jax.random.split(key, 8)
    s = lambda fan_in: 1.0 / math.sqrt(fan_in)
    g1 = jnp.ones((1, dim), jnp.float32)
    b1 = jnp.zeros((1, dim), jnp.float32)
    wqkv = jax.random.normal(ks[0], (dim, 3 * dim), jnp.float32) * s(dim)
    wproj = jax.random.normal(ks[1], (dim, dim), jnp.float32) * s(dim)
    bproj = jax.random.normal(ks[2], (1, dim), jnp.float32) * 0.02
    g2 = jnp.ones((1, dim), jnp.float32)
    b2 = jnp.zeros((1, dim), jnp.float32)
    wfc1 = jax.random.normal(ks[3], (dim, hidden), jnp.float32) * s(dim)
    bfc1 = jax.random.normal(ks[4], (1, hidden), jnp.float32) * 0.02
    wfc2 = jax.random.normal(ks[5], (hidden, dim), jnp.float32) * s(hidden)
    bfc2 = jax.random.normal(ks[6], (1, dim), jnp.float32) * 0.02
    return (g1, b1, wqkv, wproj, bproj, g2, b2, wfc1, bfc1, wfc2, bfc2)


def block_forward_ref(x, params, *, num_heads):
    """Pure-JAX f32 reference mirroring the PyTorch forward (exact-erf GELU)."""
    (g1, b1, wqkv, wproj, bproj, g2, b2, wfc1, bfc1, wfc2, bfc2) = params
    B, T, N, C = x.shape
    D = C // num_heads

    def ln(v, g, b):
        mu = jnp.mean(v, -1, keepdims=True)
        var = jnp.mean((v - mu) ** 2, -1, keepdims=True)
        return (v - mu) * jax.lax.rsqrt(var + LN_EPS) * g[0] + b[0]

    xn = ln(x, g1, b1)
    qkv = xn @ wqkv                                    # (B,T,N,3C)
    qkv = qkv.reshape(B, T, N, 3, num_heads, D).transpose(3, 0, 1, 4, 2, 5)
    q, k, v = qkv[0], qkv[1], qkv[2]                   # (B,T,H,N,D)
    attn = (q @ jnp.swapaxes(k, -2, -1)) * (D ** -0.5)
    attn = jax.nn.softmax(attn, axis=-1)
    a = (attn @ v).transpose(0, 1, 3, 2, 4).reshape(B, T, N, C)
    x = x + (a @ wproj + bproj[0])
    xn2 = ln(x, g2, b2)
    h1 = jax.nn.gelu(xn2 @ wfc1 + bfc1[0], approximate=False)
    return x + (h1 @ wfc2 + bfc2[0])


if __name__ == "__main__":
    B, T, N, C = 2, 2, 8, 32
    num_heads = 4

    key = jax.random.PRNGKey(0)
    kx, kp = jax.random.split(key)
    x = jax.random.normal(kx, (B, T, N, C), jnp.float32)
    params = make_params(kp, C, mlp_ratio=4.0)

    out = block_forward(x, params, num_heads=num_heads)
    out = jax.block_until_ready(out)

    ref = block_forward_ref(x, params, num_heads=num_heads)
    # bf16 matmul inputs + approx reciprocal + tanh GELU vs the exact f32
    # reference -> looser tolerance (intentional deviations).
    np.testing.assert_allclose(np.asarray(out), np.asarray(ref), rtol=5e-2, atol=5e-2)

    print("KERNEL_OK")
</pallas_src>

<mosaic_0001>
module attributes {stable_mosaic.version = 11 : i64} {
  func.func @_block_kernel(%arg0: i32, %arg1: memref<2x8x32xf32, #tpu.memory_space<vmem>>, %arg2: memref<1x32xf32, #tpu.memory_space<vmem>>, %arg3: memref<1x32xf32, #tpu.memory_space<vmem>>, %arg4: memref<32x96xbf16, #tpu.memory_space<vmem>>, %arg5: memref<32x32xbf16, #tpu.memory_space<vmem>>, %arg6: memref<1x32xf32, #tpu.memory_space<vmem>>, %arg7: memref<1x32xf32, #tpu.memory_space<vmem>>, %arg8: memref<1x32xf32, #tpu.memory_space<vmem>>, %arg9: memref<32x128xbf16, #tpu.memory_space<vmem>>, %arg10: memref<1x128xf32, #tpu.memory_space<vmem>>, %arg11: memref<128x32xbf16, #tpu.memory_space<vmem>>, %arg12: memref<1x32xf32, #tpu.memory_space<vmem>>, %arg13: memref<2x8x32xf32, #tpu.memory_space<vmem>>) attributes {dimension_semantics = [#tpu.dimension_semantics<parallel>], iteration_bounds = array<i64: 2>, scalar_prefetch = 0 : i64, scratch_operands = 0 : i64, tpu.core_type = #tpu.core_type<tc>, window_params = [{transform_indices = @transform_0, window_bounds = array<i64: 2, 8, 32>}, {pipeline_mode = #tpu.pipeline_mode<synchronous>, transform_indices = @transform_1, window_bounds = array<i64: 1, 32>}, {pipeline_mode = #tpu.pipeline_mode<synchronous>, transform_indices = @transform_2, window_bounds = array<i64: 1, 32>}, {pipeline_mode = #tpu.pipeline_mode<synchronous>, transform_indices = @transform_3, window_bounds = array<i64: 32, 96>}, {pipeline_mode = #tpu.pipeline_mode<synchronous>, transform_indices = @transform_4, window_bounds = array<i64: 32, 32>}, {pipeline_mode = #tpu.pipeline_mode<synchronous>, transform_indices = @transform_5, window_bounds = array<i64: 1, 32>}, {pipeline_mode = #tpu.pipeline_mode<synchronous>, transform_indices = @transform_6, window_bounds = array<i64: 1, 32>}, {pipeline_mode = #tpu.pipeline_mode<synchronous>, transform_indices = @transform_7, window_bounds = array<i64: 1, 32>}, {pipeline_mode = #tpu.pipeline_mode<synchronous>, transform_indices = @transform_8, window_bounds = array<i64: 32, 128>}, {pipeline_mode = #tpu.pipeline_mode<synchronous>, transform_indices = @transform_9, window_bounds = array<i64: 1, 128>}, {pipeline_mode = #tpu.pipeline_mode<synchronous>, transform_indices = @transform_10, window_bounds = array<i64: 128, 32>}, {pipeline_mode = #tpu.pipeline_mode<synchronous>, transform_indices = @transform_11, window_bounds = array<i64: 1, 32>}, {transform_indices = @transform_12, window_bounds = array<i64: 2, 8, 32>}]} {
    %c0 = arith.constant 0 : index
    %c0_0 = arith.constant 0 : index
    %c0_1 = arith.constant 0 : index
    %0 = vector.load %arg1[%c0, %c0_0, %c0_1] : memref<2x8x32xf32, #tpu.memory_space<vmem>>, vector<2x8x32xf32>
    %1 = vector.shape_cast %0 : vector<2x8x32xf32> to vector<16x32xf32>
    %cst = arith.constant dense<0.000000e+00> : vector<16xf32>
    %2 = vector.multi_reduction <add>, %1, %cst [1] : vector<16x32xf32> to vector<16xf32>
    %3 = vector.shape_cast %2 : vector<16xf32> to vector<16x1xf32>
    %cst_2 = arith.constant 3.200000e+01 : f32
    %4 = vector.broadcast %cst_2 : f32 to vector<16x1xf32>
    %5 = arith.divf %3, %4 : vector<16x1xf32>
    %6 = arith.mulf %1, %1 : vector<16x32xf32>
    %cst_3 = arith.constant dense<0.000000e+00> : vector<16xf32>
    %7 = vector.multi_reduction <add>, %6, %cst_3 [1] : vector<16x32xf32> to vector<16xf32>
    %8 = vector.shape_cast %7 : vector<16xf32> to vector<16x1xf32>
    %cst_4 = arith.constant 3.200000e+01 : f32
    %9 = vector.broadcast %cst_4 : f32 to vector<16x1xf32>
    %10 = arith.divf %8, %9 : vector<16x1xf32>
    %11 = arith.mulf %5, %5 : vector<16x1xf32>
    %12 = arith.subf %10, %11 : vector<16x1xf32>
    %13 = vector.broadcast %5 : vector<16x1xf32> to vector<16x32xf32>
    %14 = arith.subf %1, %13 : vector<16x32xf32>
    %cst_5 = arith.constant 9.99999974E-6 : f32
    %15 = vector.broadcast %cst_5 : f32 to vector<16x1xf32>
    %16 = arith.addf %12, %15 : vector<16x1xf32>
    %17 = math.rsqrt %16 : vector<16x1xf32>
    %18 = vector.broadcast %17 : vector<16x1xf32> to vector<16x32xf32>
    %19 = arith.mulf %14, %18 : vector<16x32xf32>
    %c0_6 = arith.constant 0 : index
    %c0_7 = arith.constant 0 : index
    %20 = vector.load %arg2[%c0_6, %c0_7] : memref<1x32xf32, #tpu.memory_space<vmem>>, vector<1x32xf32>
    %21 = vector.broadcast %20 : vector<1x32xf32> to vector<16x32xf32>
    %22 = arith.mulf %19, %21 : vector<16x32xf32>
    %c0_8 = arith.constant 0 : index
    %c0_9 = arith.constant 0 : index
    %23 = vector.load %arg3[%c0_8, %c0_9] : memref<1x32xf32, #tpu.memory_space<vmem>>, vector<1x32xf32>
    %24 = vector.broadcast %23 : vector<1x32xf32> to vector<16x32xf32>
    %25 = arith.addf %22, %24 : vector<16x32xf32>
    %26 = arith.truncf %25 : vector<16x32xf32> to vector<16x32xbf16>
    %c0_10 = arith.constant 0 : index
    %c0_11 = arith.constant 0 : index
    %27 = vector.load %arg4[%c0_10, %c0_11] : memref<32x96xbf16, #tpu.memory_space<vmem>>, vector<32x96xbf16>
    %cst_12 = arith.constant dense<0.000000e+00> : vector<16x96xf32>
    %28 = tpu.matmul %26, %27, %cst_12 {dimension_numbers = #tpu.dot_dimension_numbers<[1], [0], [0], [1], [0, 0, 1, 1], [], []>} : vector<16x32xbf16>, vector<32x96xbf16>, vector<16x96xf32> -> vector<16x96xf32>
    %29 = vector.extract_strided_slice %28 {offsets = [0, 0], sizes = [16, 32], strides = [1, 1]} : vector<16x96xf32> to vector<16x32xf32>
    %30 = vector.extract_strided_slice %28 {offsets = [0, 32], sizes = [16, 32], strides = [1, 1]} : vector<16x96xf32> to vector<16x32xf32>
    %31 = vector.extract_strided_slice %28 {offsets = [0, 64], sizes = [16, 32], strides = [1, 1]} : vector<16x96xf32> to vector<16x32xf32>
    %32 = vector.shape_cast %29 : vector<16x32xf32> to vector<2x8x4x8xf32>
    %33 = tpu.transpose %32, [0, 2, 1, 3] : vector<2x8x4x8xf32> -> vector<2x4x8x8xf32>
    %34 = vector.shape_cast %33 : vector<2x4x8x8xf32> to vector<8x8x8xf32>
    %35 = arith.truncf %34 : vector<8x8x8xf32> to vector<8x8x8xbf16>
    %36 = vector.shape_cast %30 : vector<16x32xf32> to vector<2x8x4x8xf32>
    %37 = tpu.transpose %36, [0, 2, 1, 3] : vector<2x8x4x8xf32> -> vector<2x4x8x8xf32>
    %38 = vector.shape_cast %37 : vector<2x4x8x8xf32> to vector<8x8x8xf32>
    %39 = arith.truncf %38 : vector<8x8x8xf32> to vector<8x8x8xbf16>
    %40 = vector.shape_cast %31 : vector<16x32xf32> to vector<2x8x4x8xf32>
    %41 = tpu.transpose %40, [0, 2, 1, 3] : vector<2x8x4x8xf32> -> vector<2x4x8x8xf32>
    %42 = vector.shape_cast %41 : vector<2x4x8x8xf32> to vector<8x8x8xf32>
    %43 = arith.truncf %42 : vector<8x8x8xf32> to vector<8x8x8xbf16>
    "tpu.trace_start"() <{level = 10 : i32, message = "gnd,gmd->gnm"}> : () -> ()
    %cst_13 = arith.constant dense<0.000000e+00> : vector<8x8x8xf32>
    %44 = tpu.matmul %35, %39, %cst_13 {dimension_numbers = #tpu.dot_dimension_numbers<[2], [2], [1], [1], [0, 0, 0, 1, 1, 1], [0], [0]>} : vector<8x8x8xbf16>, vector<8x8x8xbf16>, vector<8x8x8xf32> -> vector<8x8x8xf32>
    "tpu.trace_stop"() : () -> ()
    %cst_14 = arith.constant dense<0xFF800000> : vector<8x8xf32>
    %45 = vector.multi_reduction <maximumf>, %44, %cst_14 [2] : vector<8x8x8xf32> to vector<8x8xf32>
    %46 = vector.shape_cast %45 : vector<8x8xf32> to vector<8x8x1xf32>
    %47 = vector.broadcast %46 : vector<8x8x1xf32> to vector<8x8x8xf32>
    %48 = arith.subf %44, %47 : vector<8x8x8xf32>
    %49 = math.exp %48 : vector<8x8x8xf32>
    %cst_15 = arith.constant dense<0.000000e+00> : vector<8x8xf32>
    %50 = vector.multi_reduction <add>, %49, %cst_15 [2] : vector<8x8x8xf32> to vector<8x8xf32>
    %51 = vector.shape_cast %50 : vector<8x8xf32> to vector<8x8x1xf32>
    %52 = tpu.reciprocal %51 {approx = true} : vector<8x8x1xf32> -> vector<8x8x1xf32>
    %53 = vector.broadcast %52 : vector<8x8x1xf32> to vector<8x8x8xf32>
    %54 = arith.mulf %49, %53 : vector<8x8x8xf32>
    %55 = arith.truncf %54 : vector<8x8x8xf32> to vector<8x8x8xbf16>
    "tpu.trace_start"() <{level = 10 : i32, message = "gnm,gmd->gnd"}> : () -> ()
    %cst_16 = arith.constant dense<0.000000e+00> : vector<8x8x8xf32>
    %56 = tpu.matmul %55, %43, %cst_16 {dimension_numbers = #tpu.dot_dimension_numbers<[2], [1], [1], [2], [0, 0, 0, 1, 1, 2], [0], [0]>} : vector<8x8x8xbf16>, vector<8x8x8xbf16>, vector<8x8x8xf32> -> vector<8x8x8xf32>
    "tpu.trace_stop"() : () -> ()
    %57 = vector.shape_cast %56 : vector<8x8x8xf32> to vector<2x4x8x8xf32>
    %58 = tpu.transpose %57, [0, 2, 1, 3] : vector<2x4x8x8xf32> -> vector<2x8x4x8xf32>
    %59 = vector.shape_cast %58 : vector<2x8x4x8xf32> to vector<16x32xf32>
    %60 = arith.truncf %59 : vector<16x32xf32> to vector<16x32xbf16>
    %c0_17 = arith.constant 0 : index
    %c0_18 = arith.constant 0 : index
    %61 = vector.load %arg5[%c0_17, %c0_18] : memref<32x32xbf16, #tpu.memory_space<vmem>>, vector<32x32xbf16>
    %cst_19 = arith.constant dense<0.000000e+00> : vector<16x32xf32>
    %62 = tpu.matmul %60, %61, %cst_19 {dimension_numbers = #tpu.dot_dimension_numbers<[1], [0], [0], [1], [0, 0, 1, 1], [], []>} : vector<16x32xbf16>, vector<32x32xbf16>, vector<16x32xf32> -> vector<16x32xf32>
    %c0_20 = arith.constant 0 : index
    %c0_21 = arith.constant 0 : index
    %63 = vector.load %arg6[%c0_20, %c0_21] : memref<1x32xf32, #tpu.memory_space<vmem>>, vector<1x32xf32>
    %64 = vector.broadcast %63 : vector<1x32xf32> to vector<16x32xf32>
    %65 = arith.addf %62, %64 : vector<16x32xf32>
    %66 = arith.addf %1, %65 : vector<16x32xf32>
    %cst_22 = arith.constant dense<0.000000e+00> : vector<16xf32>
    %67 = vector.multi_reduction <add>, %66, %cst_22 [1] : vector<16x32xf32> to vector<16xf32>
    %68 = vector.shape_cast %67 : vector<16xf32> to vector<16x1xf32>
    %cst_23 = arith.constant 3.200000e+01 : f32
    %69 = vector.broadcast %cst_23 : f32 to vector<16x1xf32>
    %70 = arith.divf %68, %69 : vector<16x1xf32>
    %71 = arith.mulf %66, %66 : vector<16x32xf32>
    %cst_24 = arith.constant dense<0.000000e+00> : vector<16xf32>
    %72 = vector.multi_reduction <add>, %71, %cst_24 [1] : vector<16x32xf32> to vector<16xf32>
    %73 = vector.shape_cast %72 : vector<16xf32> to vector<16x1xf32>
    %cst_25 = arith.constant 3.200000e+01 : f32
    %74 = vector.broadcast %cst_25 : f32 to vector<16x1xf32>
    %75 = arith.divf %73, %74 : vector<16x1xf32>
    %76 = arith.mulf %70, %70 : vector<16x1xf32>
    %77 = arith.subf %75, %76 : vector<16x1xf32>
    %78 = vector.broadcast %70 : vector<16x1xf32> to vector<16x32xf32>
    %79 = arith.subf %66, %78 : vector<16x32xf32>
    %cst_26 = arith.constant 9.99999974E-6 : f32
    %80 = vector.broadcast %cst_26 : f32 to vector<16x1xf32>
    %81 = arith.addf %77, %80 : vector<16x1xf32>
    %82 = math.rsqrt %81 : vector<16x1xf32>
    %83 = vector.broadcast %82 : vector<16x1xf32> to vector<16x32xf32>
    %84 = arith.mulf %79, %83 : vector<16x32xf32>
    %c0_27 = arith.constant 0 : index
    %c0_28 = arith.constant 0 : index
    %85 = vector.load %arg7[%c0_27, %c0_28] : memref<1x32xf32, #tpu.memory_space<vmem>>, vector<1x32xf32>
    %86 = vector.broadcast %85 : vector<1x32xf32> to vector<16x32xf32>
    %87 = arith.mulf %84, %86 : vector<16x32xf32>
    %c0_29 = arith.constant 0 : index
    %c0_30 = arith.constant 0 : index
    %88 = vector.load %arg8[%c0_29, %c0_30] : memref<1x32xf32, #tpu.memory_space<vmem>>, vector<1x32xf32>
    %89 = vector.broadcast %88 : vector<1x32xf32> to vector<16x32xf32>
    %90 = arith.addf %87, %89 : vector<16x32xf32>
    %91 = arith.truncf %90 : vector<16x32xf32> to vector<16x32xbf16>
    %c0_31 = arith.constant 0 : index
    %c0_32 = arith.constant 0 : index
    %92 = vector.load %arg9[%c0_31, %c0_32] : memref<32x128xbf16, #tpu.memory_space<vmem>>, vector<32x128xbf16>
    %cst_33 = arith.constant dense<0.000000e+00> : vector<16x128xf32>
    %93 = tpu.matmul %91, %92, %cst_33 {dimension_numbers = #tpu.dot_dimension_numbers<[1], [0], [0], [1], [0, 0, 1, 1], [], []>} : vector<16x32xbf16>, vector<32x128xbf16>, vector<16x128xf32> -> vector<16x128xf32>
    %c0_34 = arith.constant 0 : index
    %c0_35 = arith.constant 0 : index
    %94 = vector.load %arg10[%c0_34, %c0_35] : memref<1x128xf32, #tpu.memory_space<vmem>>, vector<1x128xf32>
    %95 = vector.broadcast %94 : vector<1x128xf32> to vector<16x128xf32>
    %96 = arith.addf %93, %95 : vector<16x128xf32>
    %97 = arith.mulf %96, %96 : vector<16x128xf32>
    %98 = arith.mulf %96, %97 : vector<16x128xf32>
    %cst_36 = arith.constant 4.471500e-02 : f32
    %99 = vector.broadcast %cst_36 : f32 to vector<16x128xf32>
    %100 = arith.mulf %99, %98 : vector<16x128xf32>
    %101 = arith.addf %96, %100 : vector<16x128xf32>
    %cst_37 = arith.constant 0.797884583 : f32
    %102 = vector.broadcast %cst_37 : f32 to vector<16x128xf32>
    %103 = arith.mulf %102, %101 : vector<16x128xf32>
    %104 = math.tanh %103 : vector<16x128xf32>
    %cst_38 = arith.constant 1.000000e+00 : f32
    %105 = vector.broadcast %cst_38 : f32 to vector<16x128xf32>
    %106 = arith.addf %105, %104 : vector<16x128xf32>
    %cst_39 = arith.constant 5.000000e-01 : f32
    %107 = vector.broadcast %cst_39 : f32 to vector<16x128xf32>
    %108 = arith.mulf %107, %106 : vector<16x128xf32>
    %109 = arith.mulf %96, %108 : vector<16x128xf32>
    %110 = arith.truncf %109 : vector<16x128xf32> to vector<16x128xbf16>
    %c0_40 = arith.constant 0 : index
    %c0_41 = arith.constant 0 : index
    %111 = vector.load %arg11[%c0_40, %c0_41] : memref<128x32xbf16, #tpu.memory_space<vmem>>, vector<128x32xbf16>
    %cst_42 = arith.constant dense<0.000000e+00> : vector<16x32xf32>
    %112 = tpu.matmul %110, %111, %cst_42 {dimension_numbers = #tpu.dot_dimension_numbers<[1], [0], [0], [1], [0, 0, 1, 1], [], []>} : vector<16x128xbf16>, vector<128x32xbf16>, vector<16x32xf32> -> vector<16x32xf32>
    %c0_43 = arith.constant 0 : index
    %c0_44 = arith.constant 0 : index
    %113 = vector.load %arg12[%c0_43, %c0_44] : memref<1x32xf32, #tpu.memory_space<vmem>>, vector<1x32xf32>
    %114 = vector.broadcast %113 : vector<1x32xf32> to vector<16x32xf32>
    %115 = arith.addf %112, %114 : vector<16x32xf32>
    %116 = arith.addf %66, %115 : vector<16x32xf32>
    %117 = vector.shape_cast %116 : vector<16x32xf32> to vector<2x8x32xf32>
    %c0_45 = arith.constant 0 : index
    %c0_46 = arith.constant 0 : index
    %c0_47 = arith.constant 0 : index
    %118 = vector.load %arg13[%c0_45, %c0_46, %c0_47] : memref<2x8x32xf32, #tpu.memory_space<vmem>>, vector<2x8x32xf32>
    tpu.vector_store %arg13[%c0_45, %c0_46, %c0_47], %117 {strides = array<i32>} : memref<2x8x32xf32, #tpu.memory_space<vmem>>, vector<2x8x32xf32>,
    return
  }
  func.func @transform_0(%arg0: i32) -> (i32, i32, i32) {
    %c0_i32 = arith.constant 0 : i32
    %c0_i32_0 = arith.constant 0 : i32
    %c0_i32_1 = arith.constant 0 : i32
    return %arg0, %c0_i32, %c0_i32_0 : i32, i32, i32
  }
  func.func @transform_1(%arg0: i32) -> (i32, i32) {
    %c0_i32 = arith.constant 0 : i32
    %c0_i32_0 = arith.constant 0 : i32
    %c0_i32_1 = arith.constant 0 : i32
    return %c0_i32, %c0_i32_0 : i32, i32
  }
  func.func @transform_2(%arg0: i32) -> (i32, i32) {
    %c0_i32 = arith.constant 0 : i32
    %c0_i32_0 = arith.constant 0 : i32
    %c0_i32_1 = arith.constant 0 : i32
    return %c0_i32, %c0_i32_0 : i32, i32
  }
  func.func @transform_3(%arg0: i32) -> (i32, i32) {
    %c0_i32 = arith.constant 0 : i32
    %c0_i32_0 = arith.constant 0 : i32
    %c0_i32_1 = arith.constant 0 : i32
    return %c0_i32, %c0_i32_0 : i32, i32
  }
  func.func @transform_4(%arg0: i32) -> (i32, i32) {
    %c0_i32 = arith.constant 0 : i32
    %c0_i32_0 = arith.constant 0 : i32
    %c0_i32_1 = arith.constant 0 : i32
    return %c0_i32, %c0_i32_0 : i32, i32
  }
  func.func @transform_5(%arg0: i32) -> (i32, i32) {
    %c0_i32 = arith.constant 0 : i32
    %c0_i32_0 = arith.constant 0 : i32
    %c0_i32_1 = arith.constant 0 : i32
    return %c0_i32, %c0_i32_0 : i32, i32
  }
  func.func @transform_6(%arg0: i32) -> (i32, i32) {
    %c0_i32 = arith.constant 0 : i32
    %c0_i32_0 = arith.constant 0 : i32
    %c0_i32_1 = arith.constant 0 : i32
    return %c0_i32, %c0_i32_0 : i32, i32
  }
  func.func @transform_7(%arg0: i32) -> (i32, i32) {
    %c0_i32 = arith.constant 0 : i32
    %c0_i32_0 = arith.constant 0 : i32
    %c0_i32_1 = arith.constant 0 : i32
    return %c0_i32, %c0_i32_0 : i32, i32
  }
  func.func @transform_8(%arg0: i32) -> (i32, i32) {
    %c0_i32 = arith.constant 0 : i32
    %c0_i32_0 = arith.constant 0 : i32
    %c0_i32_1 = arith.constant 0 : i32
    return %c0_i32, %c0_i32_0 : i32, i32
  }
  func.func @transform_9(%arg0: i32) -> (i32, i32) {
    %c0_i32 = arith.constant 0 : i32
    %c0_i32_0 = arith.constant 0 : i32
    %c0_i32_1 = arith.constant 0 : i32
    return %c0_i32, %c0_i32_0 : i32, i32
  }
  func.func @transform_10(%arg0: i32) -> (i32, i32) {
    %c0_i32 = arith.constant 0 : i32
    %c0_i32_0 = arith.constant 0 : i32
    %c0_i32_1 = arith.constant 0 : i32
    return %c0_i32, %c0_i32_0 : i32, i32
  }
  func.func @transform_11(%arg0: i32) -> (i32, i32) {
    %c0_i32 = arith.constant 0 : i32
    %c0_i32_0 = arith.constant 0 : i32
    %c0_i32_1 = arith.constant 0 : i32
    return %c0_i32, %c0_i32_0 : i32, i32
  }
  func.func @transform_12(%arg0: i32) -> (i32, i32, i32) {
    %c0_i32 = arith.constant 0 : i32
    %c0_i32_0 = arith.constant 0 : i32
    %c0_i32_1 = arith.constant 0 : i32
    return %arg0, %c0_i32, %c0_i32_0 : i32, i32, i32
  }
}

module attributes {stable_mosaic.version = 11 : i64} {
  func.func @_block_kernel(%arg0: i32, %arg1: memref<2x8x32xf32, #tpu.memory_space<vmem>>, %arg2: memref<1x32xf32, #tpu.memory_space<vmem>>, %arg3: memref<1x32xf32, #tpu.memory_space<vmem>>, %arg4: memref<32x96xbf16, #tpu.memory_space<vmem>>, %arg5: memref<32x32xbf16, #tpu.memory_space<vmem>>, %arg6: memref<1x32xf32, #tpu.memory_space<vmem>>, %arg7: memref<1x32xf32, #tpu.memory_space<vmem>>, %arg8: memref<1x32xf32, #tpu.memory_space<vmem>>, %arg9: memref<32x128xbf16, #tpu.memory_space<vmem>>, %arg10: memref<1x128xf32, #tpu.memory_space<vmem>>, %arg11: memref<128x32xbf16, #tpu.memory_space<vmem>>, %arg12: memref<1x32xf32, #tpu.memory_space<vmem>>, %arg13: memref<2x8x32xf32, #tpu.memory_space<vmem>>) attributes {dimension_semantics = [#tpu.dimension_semantics<parallel>], iteration_bounds = array<i64: 2>, scalar_prefetch = 0 : i64, scratch_operands = 0 : i64, tpu.core_type = #tpu.core_type<tc>, window_params = [{transform_indices = @transform_0, window_bounds = array<i64: 2, 8, 32>}, {pipeline_mode = #tpu.pipeline_mode<synchronous>, transform_indices = @transform_1, window_bounds = array<i64: 1, 32>}, {pipeline_mode = #tpu.pipeline_mode<synchronous>, transform_indices = @transform_2, window_bounds = array<i64: 1, 32>}, {pipeline_mode = #tpu.pipeline_mode<synchronous>, transform_indices = @transform_3, window_bounds = array<i64: 32, 96>}, {pipeline_mode = #tpu.pipeline_mode<synchronous>, transform_indices = @transform_4, window_bounds = array<i64: 32, 32>}, {pipeline_mode = #tpu.pipeline_mode<synchronous>, transform_indices = @transform_5, window_bounds = array<i64: 1, 32>}, {pipeline_mode = #tpu.pipeline_mode<synchronous>, transform_indices = @transform_6, window_bounds = array<i64: 1, 32>}, {pipeline_mode = #tpu.pipeline_mode<synchronous>, transform_indices = @transform_7, window_bounds = array<i64: 1, 32>}, {pipeline_mode = #tpu.pipeline_mode<synchronous>, transform_indices = @transform_8, window_bounds = array<i64: 32, 128>}, {pipeline_mode = #tpu.pipeline_mode<synchronous>, transform_indices = @transform_9, window_bounds = array<i64: 1, 128>}, {pipeline_mode = #tpu.pipeline_mode<synchronous>, transform_indices = @transform_10, window_bounds = array<i64: 128, 32>}, {pipeline_mode = #tpu.pipeline_mode<synchronous>, transform_indices = @transform_11, window_bounds = array<i64: 1, 32>}, {transform_indices = @transform_12, window_bounds = array<i64: 2, 8, 32>}]} {
    %c0 = arith.constant 0 : index
    %c0_0 = arith.constant 0 : index
    %c0_1 = arith.constant 0 : index
    %0 = vector.load %arg1[%c0, %c0_0, %c0_1] : memref<2x8x32xf32, #tpu.memory_space<vmem>>, vector<2x8x32xf32>
    %1 = vector.shape_cast %0 : vector<2x8x32xf32> to vector<16x32xf32>
    %cst = arith.constant dense<0.000000e+00> : vector<16xf32>
    %2 = vector.multi_reduction <add>, %1, %cst [1] : vector<16x32xf32> to vector<16xf32>
    %3 = vector.shape_cast %2 : vector<16xf32> to vector<16x1xf32>
    %cst_2 = arith.constant 3.200000e+01 : f32
    %4 = vector.broadcast %cst_2 : f32 to vector<16x1xf32>
    %5 = arith.divf %3, %4 : vector<16x1xf32>
    %6 = arith.mulf %1, %1 : vector<16x32xf32>
    %cst_3 = arith.constant dense<0.000000e+00> : vector<16xf32>
    %7 = vector.multi_reduction <add>, %6, %cst_3 [1] : vector<16x32xf32> to vector<16xf32>
    %8 = vector.shape_cast %7 : vector<16xf32> to vector<16x1xf32>
    %cst_4 = arith.constant 3.200000e+01 : f32
    %9 = vector.broadcast %cst_4 : f32 to vector<16x1xf32>
    %10 = arith.divf %8, %9 : vector<16x1xf32>
    %11 = arith.mulf %5, %5 : vector<16x1xf32>
    %12 = arith.subf %10, %11 : vector<16x1xf32>
    %13 = vector.broadcast %5 : vector<16x1xf32> to vector<16x32xf32>
    %14 = arith.subf %1, %13 : vector<16x32xf32>
    %cst_5 = arith.constant 9.99999974E-6 : f32
    %15 = vector.broadcast %cst_5 : f32 to vector<16x1xf32>
    %16 = arith.addf %12, %15 : vector<16x1xf32>
    %17 = math.rsqrt %16 : vector<16x1xf32>
    %18 = vector.broadcast %17 : vector<16x1xf32> to vector<16x32xf32>
    %19 = arith.mulf %14, %18 : vector<16x32xf32>
    %c0_6 = arith.constant 0 : index
    %c0_7 = arith.constant 0 : index
    %20 = vector.load %arg2[%c0_6, %c0_7] : memref<1x32xf32, #tpu.memory_space<vmem>>, vector<1x32xf32>
    %21 = vector.broadcast %20 : vector<1x32xf32> to vector<16x32xf32>
    %22 = arith.mulf %19, %21 : vector<16x32xf32>
    %c0_8 = arith.constant 0 : index
    %c0_9 = arith.constant 0 : index
    %23 = vector.load %arg3[%c0_8, %c0_9] : memref<1x32xf32, #tpu.memory_space<vmem>>, vector<1x32xf32>
    %24 = vector.broadcast %23 : vector<1x32xf32> to vector<16x32xf32>
    %25 = arith.addf %22, %24 : vector<16x32xf32>
    %26 = arith.truncf %25 : vector<16x32xf32> to vector<16x32xbf16>
    %c0_10 = arith.constant 0 : index
    %c0_11 = arith.constant 0 : index
    %27 = vector.load %arg4[%c0_10, %c0_11] : memref<32x96xbf16, #tpu.memory_space<vmem>>, vector<32x96xbf16>
    %cst_12 = arith.constant dense<0.000000e+00> : vector<16x96xf32>
    %28 = tpu.matmul %26, %27, %cst_12 {dimension_numbers = #tpu.dot_dimension_numbers<[1], [0], [0], [1], [0, 0, 1, 1], [], []>} : vector<16x32xbf16>, vector<32x96xbf16>, vector<16x96xf32> -> vector<16x96xf32>
    %29 = vector.extract_strided_slice %28 {offsets = [0, 0], sizes = [16, 32], strides = [1, 1]} : vector<16x96xf32> to vector<16x32xf32>
    %30 = vector.extract_strided_slice %28 {offsets = [0, 32], sizes = [16, 32], strides = [1, 1]} : vector<16x96xf32> to vector<16x32xf32>
    %31 = vector.extract_strided_slice %28 {offsets = [0, 64], sizes = [16, 32], strides = [1, 1]} : vector<16x96xf32> to vector<16x32xf32>
    %32 = vector.shape_cast %29 : vector<16x32xf32> to vector<2x8x4x8xf32>
    %33 = tpu.transpose %32, [0, 2, 1, 3] : vector<2x8x4x8xf32> -> vector<2x4x8x8xf32>
    %34 = vector.shape_cast %33 : vector<2x4x8x8xf32> to vector<8x8x8xf32>
    %35 = arith.truncf %34 : vector<8x8x8xf32> to vector<8x8x8xbf16>
    %36 = vector.shape_cast %30 : vector<16x32xf32> to vector<2x8x4x8xf32>
    %37 = tpu.transpose %36, [0, 2, 1, 3] : vector<2x8x4x8xf32> -> vector<2x4x8x8xf32>
    %38 = vector.shape_cast %37 : vector<2x4x8x8xf32> to vector<8x8x8xf32>
    %39 = arith.truncf %38 : vector<8x8x8xf32> to vector<8x8x8xbf16>
    %40 = vector.shape_cast %31 : vector<16x32xf32> to vector<2x8x4x8xf32>
    %41 = tpu.transpose %40, [0, 2, 1, 3] : vector<2x8x4x8xf32> -> vector<2x4x8x8xf32>
    %42 = vector.shape_cast %41 : vector<2x4x8x8xf32> to vector<8x8x8xf32>
    %43 = arith.truncf %42 : vector<8x8x8xf32> to vector<8x8x8xbf16>
    "tpu.trace_start"() <{level = 10 : i32, message = "gnd,gmd->gnm"}> : () -> ()
    %cst_13 = arith.constant dense<0.000000e+00> : vector<8x8x8xf32>
    %44 = tpu.matmul %35, %39, %cst_13 {dimension_numbers = #tpu.dot_dimension_numbers<[2], [2], [1], [1], [0, 0, 0, 1, 1, 1], [0], [0]>} : vector<8x8x8xbf16>, vector<8x8x8xbf16>, vector<8x8x8xf32> -> vector<8x8x8xf32>
    "tpu.trace_stop"() : () -> ()
    %cst_14 = arith.constant dense<0xFF800000> : vector<8x8xf32>
    %45 = vector.multi_reduction <maximumf>, %44, %cst_14 [2] : vector<8x8x8xf32> to vector<8x8xf32>
    %46 = vector.shape_cast %45 : vector<8x8xf32> to vector<8x8x1xf32>
    %47 = vector.broadcast %46 : vector<8x8x1xf32> to vector<8x8x8xf32>
    %48 = arith.subf %44, %47 : vector<8x8x8xf32>
    %49 = math.exp %48 : vector<8x8x8xf32>
    %cst_15 = arith.constant dense<0.000000e+00> : vector<8x8xf32>
    %50 = vector.multi_reduction <add>, %49, %cst_15 [2] : vector<8x8x8xf32> to vector<8x8xf32>
    %51 = vector.shape_cast %50 : vector<8x8xf32> to vector<8x8x1xf32>
    %52 = tpu.reciprocal %51 {approx = true} : vector<8x8x1xf32> -> vector<8x8x1xf32>
    %53 = vector.broadcast %52 : vector<8x8x1xf32> to vector<8x8x8xf32>
    %54 = arith.mulf %49, %53 : vector<8x8x8xf32>
    %55 = arith.truncf %54 : vector<8x8x8xf32> to vector<8x8x8xbf16>
    "tpu.trace_start"() <{level = 10 : i32, message = "gnm,gmd->gnd"}> : () -> ()
    %cst_16 = arith.constant dense<0.000000e+00> : vector<8x8x8xf32>
    %56 = tpu.matmul %55, %43, %cst_16 {dimension_numbers = #tpu.dot_dimension_numbers<[2], [1], [1], [2], [0, 0, 0, 1, 1, 2], [0], [0]>} : vector<8x8x8xbf16>, vector<8x8x8xbf16>, vector<8x8x8xf32> -> vector<8x8x8xf32>
    "tpu.trace_stop"() : () -> ()
    %57 = vector.shape_cast %56 : vector<8x8x8xf32> to vector<2x4x8x8xf32>
    %58 = tpu.transpose %57, [0, 2, 1, 3] : vector<2x4x8x8xf32> -> vector<2x8x4x8xf32>
    %59 = vector.shape_cast %58 : vector<2x8x4x8xf32> to vector<16x32xf32>
    %60 = arith.truncf %59 : vector<16x32xf32> to vector<16x32xbf16>
    %c0_17 = arith.constant 0 : index
    %c0_18 = arith.constant 0 : index
    %61 = vector.load %arg5[%c0_17, %c0_18] : memref<32x32xbf16, #tpu.memory_space<vmem>>, vector<32x32xbf16>
    %cst_19 = arith.constant dense<0.000000e+00> : vector<16x32xf32>
    %62 = tpu.matmul %60, %61, %cst_19 {dimension_numbers = #tpu.dot_dimension_numbers<[1], [0], [0], [1], [0, 0, 1, 1], [], []>} : vector<16x32xbf16>, vector<32x32xbf16>, vector<16x32xf32> -> vector<16x32xf32>
    %c0_20 = arith.constant 0 : index
    %c0_21 = arith.constant 0 : index
    %63 = vector.load %arg6[%c0_20, %c0_21] : memref<1x32xf32, #tpu.memory_space<vmem>>, vector<1x32xf32>
    %64 = vector.broadcast %63 : vector<1x32xf32> to vector<16x32xf32>
    %65 = arith.addf %62, %64 : vector<16x32xf32>
    %66 = arith.addf %1, %65 : vector<16x32xf32>
    %cst_22 = arith.constant dense<0.000000e+00> : vector<16xf32>
    %67 = vector.multi_reduction <add>, %66, %cst_22 [1] : vector<16x32xf32> to vector<16xf32>
    %68 = vector.shape_cast %67 : vector<16xf32> to vector<16x1xf32>
    %cst_23 = arith.constant 3.200000e+01 : f32
    %69 = vector.broadcast %cst_23 : f32 to vector<16x1xf32>
    %70 = arith.divf %68, %69 : vector<16x1xf32>
    %71 = arith.mulf %66, %66 : vector<16x32xf32>
    %cst_24 = arith.constant dense<0.000000e+00> : vector<16xf32>
    %72 = vector.multi_reduction <add>, %71, %cst_24 [1] : vector<16x32xf32> to vector<16xf32>
    %73 = vector.shape_cast %72 : vector<16xf32> to vector<16x1xf32>
    %cst_25 = arith.constant 3.200000e+01 : f32
    %74 = vector.broadcast %cst_25 : f32 to vector<16x1xf32>
    %75 = arith.divf %73, %74 : vector<16x1xf32>
    %76 = arith.mulf %70, %70 : vector<16x1xf32>
    %77 = arith.subf %75, %76 : vector<16x1xf32>
    %78 = vector.broadcast %70 : vector<16x1xf32> to vector<16x32xf32>
    %79 = arith.subf %66, %78 : vector<16x32xf32>
    %cst_26 = arith.constant 9.99999974E-6 : f32
    %80 = vector.broadcast %cst_26 : f32 to vector<16x1xf32>
    %81 = arith.addf %77, %80 : vector<16x1xf32>
    %82 = math.rsqrt %81 : vector<16x1xf32>
    %83 = vector.broadcast %82 : vector<16x1xf32> to vector<16x32xf32>
    %84 = arith.mulf %79, %83 : vector<16x32xf32>
    %c0_27 = arith.constant 0 : index
    %c0_28 = arith.constant 0 : index
    %85 = vector.load %arg7[%c0_27, %c0_28] : memref<1x32xf32, #tpu.memory_space<vmem>>, vector<1x32xf32>
    %86 = vector.broadcast %85 : vector<1x32xf32> to vector<16x32xf32>
    %87 = arith.mulf %84, %86 : vector<16x32xf32>
    %c0_29 = arith.constant 0 : index
    %c0_30 = arith.constant 0 : index
    %88 = vector.load %arg8[%c0_29, %c0_30] : memref<1x32xf32, #tpu.memory_space<vmem>>, vector<1x32xf32>
    %89 = vector.broadcast %88 : vector<1x32xf32> to vector<16x32xf32>
    %90 = arith.addf %87, %89 : vector<16x32xf32>
    %91 = arith.truncf %90 : vector<16x32xf32> to vector<16x32xbf16>
    %c0_31 = arith.constant 0 : index
    %c0_32 = arith.constant 0 : index
    %92 = vector.load %arg9[%c0_31, %c0_32] : memref<32x128xbf16, #tpu.memory_space<vmem>>, vector<32x128xbf16>
    %cst_33 = arith.constant dense<0.000000e+00> : vector<16x128xf32>
    %93 = tpu.matmul %91, %92, %cst_33 {dimension_numbers = #tpu.dot_dimension_numbers<[1], [0], [0], [1], [0, 0, 1, 1], [], []>} : vector<16x32xbf16>, vector<32x128xbf16>, vector<16x128xf32> -> vector<16x128xf32>
    %c0_34 = arith.constant 0 : index
    %c0_35 = arith.constant 0 : index
    %94 = vector.load %arg10[%c0_34, %c0_35] : memref<1x128xf32, #tpu.memory_space<vmem>>, vector<1x128xf32>
    %95 = vector.broadcast %94 : vector<1x128xf32> to vector<16x128xf32>
    %96 = arith.addf %93, %95 : vector<16x128xf32>
    %97 = arith.mulf %96, %96 : vector<16x128xf32>
    %98 = arith.mulf %96, %97 : vector<16x128xf32>
    %cst_36 = arith.constant 4.471500e-02 : f32
    %99 = vector.broadcast %cst_36 : f32 to vector<16x128xf32>
    %100 = arith.mulf %99, %98 : vector<16x128xf32>
    %101 = arith.addf %96, %100 : vector<16x128xf32>
    %cst_37 = arith.constant 0.797884583 : f32
    %102 = vector.broadcast %cst_37 : f32 to vector<16x128xf32>
    %103 = arith.mulf %102, %101 : vector<16x128xf32>
    %104 = math.tanh %103 : vector<16x128xf32>
    %cst_38 = arith.constant 1.000000e+00 : f32
    %105 = vector.broadcast %cst_38 : f32 to vector<16x128xf32>
    %106 = arith.addf %105, %104 : vector<16x128xf32>
    %cst_39 = arith.constant 5.000000e-01 : f32
    %107 = vector.broadcast %cst_39 : f32 to vector<16x128xf32>
    %108 = arith.mulf %107, %106 : vector<16x128xf32>
    %109 = arith.mulf %96, %108 : vector<16x128xf32>
    %110 = arith.truncf %109 : vector<16x128xf32> to vector<16x128xbf16>
    %c0_40 = arith.constant 0 : index
    %c0_41 = arith.constant 0 : index
    %111 = vector.load %arg11[%c0_40, %c0_41] : memref<128x32xbf16, #tpu.memory_space<vmem>>, vector<128x32xbf16>
    %cst_42 = arith.constant dense<0.000000e+00> : vector<16x32xf32>
    %112 = tpu.matmul %110, %111, %cst_42 {dimension_numbers = #tpu.dot_dimension_numbers<[1], [0], [0], [1], [0, 0, 1, 1], [], []>} : vector<16x128xbf16>, vector<128x32xbf16>, vector<16x32xf32> -> vector<16x32xf32>
    %c0_43 = arith.constant 0 : index
    %c0_44 = arith.constant 0 : index
    %113 = vector.load %arg12[%c0_43, %c0_44] : memref<1x32xf32, #tpu.memory_space<vmem>>, vector<1x32xf32>
    %114 = vector.broadcast %113 : vector<1x32xf32> to vector<16x32xf32>
    %115 = arith.addf %112, %114 : vector<16x32xf32>
    %116 = arith.addf %66, %115 : vector<16x32xf32>
    %117 = vector.shape_cast %116 : vector<16x32xf32> to vector<2x8x32xf32>
    %c0_45 = arith.constant 0 : index
    %c0_46 = arith.constant 0 : index
    %c0_47 = arith.constant 0 : index
    %118 = vector.load %arg13[%c0_45, %c0_46, %c0_47] : memref<2x8x32xf32, #tpu.memory_space<vmem>>, vector<2x8x32xf32>
    tpu.vector_store %arg13[%c0_45, %c0_46, %c0_47], %117 {strides = array<i32>} : memref<2x8x32xf32, #tpu.memory_space<vmem>>, vector<2x8x32xf32>,
    return
  }
  func.func @transform_0(%arg0: i32) -> (i32, i32, i32) {
    %c0_i32 = arith.constant 0 : i32
    %c0_i32_0 = arith.constant 0 : i32
    %c0_i32_1 = arith.constant 0 : i32
    return %arg0, %c0_i32, %c0_i32_0 : i32, i32, i32
  }
  func.func @transform_1(%arg0: i32) -> (i32, i32) {
    %c0_i32 = arith.constant 0 : i32
    %c0_i32_0 = arith.constant 0 : i32
    %c0_i32_1 = arith.constant 0 : i32
    return %c0_i32, %c0_i32_0 : i32, i32
  }
  func.func @transform_2(%arg0: i32) -> (i32, i32) {
    %c0_i32 = arith.constant 0 : i32
    %c0_i32_0 = arith.constant 0 : i32
    %c0_i32_1 = arith.constant 0 : i32
    return %c0_i32, %c0_i32_0 : i32, i32
  }
  func.func @transform_3(%arg0: i32) -> (i32, i32) {
    %c0_i32 = arith.constant 0 : i32
    %c0_i32_0 = arith.constant 0 : i32
    %c0_i32_1 = arith.constant 0 : i32
    return %c0_i32, %c0_i32_0 : i32, i32
  }
  func.func @transform_4(%arg0: i32) -> (i32, i32) {
    %c0_i32 = arith.constant 0 : i32
    %c0_i32_0 = arith.constant 0 : i32
    %c0_i32_1 = arith.constant 0 : i32
    return %c0_i32, %c0_i32_0 : i32, i32
  }
  func.func @transform_5(%arg0: i32) -> (i32, i32) {
    %c0_i32 = arith.constant 0 : i32
    %c0_i32_0 = arith.constant 0 : i32
    %c0_i32_1 = arith.constant 0 : i32
    return %c0_i32, %c0_i32_0 : i32, i32
  }
  func.func @transform_6(%arg0: i32) -> (i32, i32) {
    %c0_i32 = arith.constant 0 : i32
    %c0_i32_0 = arith.constant 0 : i32
    %c0_i32_1 = arith.constant 0 : i32
    return %c0_i32, %c0_i32_0 : i32, i32
  }
  func.func @transform_7(%arg0: i32) -> (i32, i32) {
    %c0_i32 = arith.constant 0 : i32
    %c0_i32_0 = arith.constant 0 : i32
    %c0_i32_1 = arith.constant 0 : i32
    return %c0_i32, %c0_i32_0 : i32, i32
  }
  func.func @transform_8(%arg0: i32) -> (i32, i32) {
    %c0_i32 = arith.constant 0 : i32
    %c0_i32_0 = arith.constant 0 : i32
    %c0_i32_1 = arith.constant 0 : i32
    return %c0_i32, %c0_i32_0 : i32, i32
  }
  func.func @transform_9(%arg0: i32) -> (i32, i32) {
    %c0_i32 = arith.constant 0 : i32
    %c0_i32_0 = arith.constant 0 : i32
    %c0_i32_1 = arith.constant 0 : i32
    return %c0_i32, %c0_i32_0 : i32, i32
  }
  func.func @transform_10(%arg0: i32) -> (i32, i32) {
    %c0_i32 = arith.constant 0 : i32
    %c0_i32_0 = arith.constant 0 : i32
    %c0_i32_1 = arith.constant 0 : i32
    return %c0_i32, %c0_i32_0 : i32, i32
  }
  func.func @transform_11(%arg0: i32) -> (i32, i32) {
    %c0_i32 = arith.constant 0 : i32
    %c0_i32_0 = arith.constant 0 : i32
    %c0_i32_1 = arith.constant 0 : i32
    return %c0_i32, %c0_i32_0 : i32, i32
  }
  func.func @transform_12(%arg0: i32) -> (i32, i32, i32) {
    %c0_i32 = arith.constant 0 : i32
    %c0_i32_0 = arith.constant 0 : i32
    %c0_i32_1 = arith.constant 0 : i32
    return %arg0, %c0_i32, %c0_i32_0 : i32, i32, i32
  }
}

</mosaic_0001>

<bundles_post_ra>
// kernel: tpu_custom_call.1
= control target key start
LH: loop header
LB: loop body
LE: loop exit
PB: predicated region body
PF: predicated region fallthrough
CT: control target
= control target key end

     0   :  { %s4097_s0 = inlined_call_operand.vmem [shape: f32[4,8,32], index: 0, kind: input, shape index: {}]   ;;  %s4098_s1 = inlined_call_operand.vmem [shape: f32[1,32], index: 1, kind: input, shape index: {}]   ;;  %s4099_s2 = inlined_call_operand.vmem [shape: f32[1,32], index: 2, kind: input, shape index: {}]   ;;  %s4100_s3 = inlined_call_operand.vmem [shape: bf16[32,96], index: 3, kind: input, shape index: {}]   ;;  %s4101_s4 = inlined_call_operand.vmem [shape: bf16[32,32], index: 4, kind: input, shape index: {}]   ;;  %s4102_s5 = inlined_call_operand.vmem [shape: f32[1,32], index: 5, kind: input, shape index: {}]   ;;  %s4103_s6 = inlined_call_operand.vmem [shape: f32[1,32], index: 6, kind: input, shape index: {}]   ;;  %s4104_s7 = inlined_call_operand.vmem [shape: f32[1,32], index: 7, kind: input, shape index: {}]   ;;  %s4105_s8 = inlined_call_operand.vmem [shape: bf16[32,128], index: 8, kind: input, shape index: {}]   ;;  %s4106_s9 = inlined_call_operand.vmem [shape: f32[1,128], index: 9, kind: input, shape index: {}]   ;;  %s4107_s10 = inlined_call_operand.vmem [shape: bf16[128,32], index: 10, kind: input, shape index: {}]   ;;  %s4108_s11 = inlined_call_operand.vmem [shape: f32[1,32], index: 11, kind: input, shape index: {}]   ;;  %s4109_s12 = inlined_call_operand.hbm [shape: f32[4,8,32], index: 12, kind: output, shape index: {}]  }
   0x1   :  { %4111 = sst [smem:[#allocation5_spill]] %s4097_s0 }
   0x2   :  { %4112 = sst [smem:[#allocation6_spill]] %s4098_s1 }
   0x3   :  { %17 = vsyncpa [#allocation3], 0 }
   0x4   :  { %19 = vsyncpa [#allocation3 + $0x1], 0  ;;  %s3501_s21 = smov 0   ;;  %s3503_s22 = smov 0  }
   0x5   :  { %s3505_s23 = smov 0   ;;  %s3507_s24 = smov 0  }
   0x6 LB: > { %s3522_s25 = sadd.s32 4294967295, %s3420_s24   ;;  %s2972_s26 = sadd.s32 4294967294, %s3420_s24   ;;  %s3420_s24 = sphi %s3507_s24, %s4121_s24   ;;  %s3416_s23 = sphi %s3505_s23, %s4120_s23   ;;  %s3412_s22 = sphi %s3503_s22, %s4119_s22   ;;  %s3408_s21 = sphi %s3501_s21, %s4118_s21  }
   0x7   : > { %s3526_s27 = sadd.s32 1, %s3420_s24   ;;  %s289_s28 = sadd.s32 1, %s3416_s23 }
   0x8   : > { %s286_s29 = ssub.s32 %s3420_s24, %s3526_s27  ;;  %p299_p0 = scmp.ne.s32.totalorder %s3416_s23, %s3412_s22 }
   0x9   : > { %p287_p1 = scmp.eq.s32.totalorder %s286_s29, 0  ;;  %p300_p2 = scmp.eq.s32.totalorder %s3522_s25, 1 }
   0xa   : > { %p305_p3 = scmp.ne.s32.totalorder %s3412_s22, %s3408_s21  ;;  %p306_p4 = scmp.eq.s32.totalorder %s2972_s26, 1 }
   0xb   : > { %s3537_s30 = scalar_select %p287_p1, %s3416_s23, %s289_s28  }
   0xc   : > { %p3539_p5 = por %p300_p2, %p299_p0  ;;  %p3543_p6 = por %p306_p4, %p305_p3 }
   0xd   : > { %p2975_p7 = scmp.ge.s32.totalorder %s3420_s24, 1  ;;  %p366_p8 = scmp.lt.s32.totalorder %s3420_s24, 3 }
   0xf   : > { %p367_p9 = pnand %p2975_p7, %p366_p8 }
  0x10   : > { %s2977_s15 = sshll.u32 (!%p367_p9), %s3522_s25, 1  ;;  %vm418_vm0 = vcmask (!%p367_p9), 261120   ;;  %s4115_s0 = sld [smem:[#allocation5_spill]] (!%p367_p9)  ;;  %v3298_v8 = vld [vmem:[%s4100_s3] sm:$0xff] (!%p367_p9)   ;;  %v3422_v9 = vmov (!%p367_p9), 0.0   ;;  %vm3423_vm1 = vmmov (!%p367_p9), 0   ;;  %v554_v50 = vlaneseq (!%p367_p9) }
  0x11   : > { %370 = sbr.rel (%p367_p9) target bundleno = 2550 (0x9f6), region = 68  ;;  %p409_p10 = scmp.lt.s32.totalorder (!%p367_p9), %s2977_s15, 3  ;;  %3091 = vmatprep.subr.bf16.mxu0 (!%p367_p9), %v3422_v9  ;;  %3095 = vmatprep.mubr.msk.bf16.mxu0 (!%p367_p9), %vm3423_vm1, %v3422_v9  ;;  %v3299_v10 = vld [vmem:[%s4100_s3 + $0x8] sm:$0xff] (!%p367_p9)   ;;  %v2980_v33 = vld [vmem:[%s4099_s2] ss:$0 sm:$0xff] (!%p367_p9)  ;;  %vm1437_vm2 = vcmask (!%p367_p9), 64512  }
  0x12   : > { %3092 = vmatpush3.bf16.msra.mxu0 (!%p367_p9), %v3298_v8  ;;  %3111 = vmatprep.subr.bf16.mxu1 (!%p367_p9), %v3422_v9  ;;  %s4116_s1 = sld [smem:[#allocation6_spill]] (!%p367_p9)  ;;  %s3424_s20 = smov (!%p367_p9), 112   ;;  %v3428_v48 = vmov (!%p367_p9), 1983009808   ;;  %v555_v52 = vshrl.u32 (!%p367_p9), %v554_v50, 7  ;;  %vm1905_vm3 = vcmask (!%p367_p9), 1043456  }
  0x13   : > { %3093 = vmatprep.subr.bf16.mxu0 (!%p367_p9), %v3422_v9  ;;  %3113 = vmatprep.mubr.msk.bf16.mxu1 (!%p367_p9), %vm3423_vm1, %v3422_v9  ;;  %s3425_s26 = smov (!%p367_p9), 120   ;;  %s3426_s28 = smov (!%p367_p9), 104   ;;  %v552_v49 = vunpack.c.l.s4 (!%p367_p9), %v3428_v48  ;;  %v3429_v53 = vmov (!%p367_p9), 1934713408   ;;  %vm2569_vm4 = vcmask (!%p367_p9), 130048   ;;  %vm2572_vm5 = vcmask (!%p367_p9), 195584  }
  0x14   : > { %s3427_s29 = smov (!%p367_p9), 96   ;;  %v584_v54 = vunpack.c.l.s4 (!%p367_p9), %v3429_v53  ;;  %s405_s18 = sand.u32 (!%p367_p9), 1, %s3412_s22  }
  0x15   : > { %v553_v51 = vunpack.c.0.s8 (!%p367_p9), %v552_v49 }
  0x16   : > { %3094 = vmatpush3.bf16.msra.mxu0 (!%p367_p9), %v3299_v10  ;;  %v585_v60 = vunpack.c.0.s8 (!%p367_p9), %v584_v54 }
  0x17   : > { %3099 = vmatprep.subr.bf16.mxu0 (!%p367_p9), %v3422_v9  ;;  %v3618_v57 = vsub.s32 (!%p367_p9), %v553_v51, %v555_v52 }
  0x18   : > { %s4123_s15 = smov (!%p409_p10, %s2977_s15), 3  ;;  %v2979_v28 = vld [vmem:[%s4116_s1] ss:$0 sm:$0xff] }
  0x19   : > { %s2978_s16 = sshll.u32 %s4123_s15, 3  ;;  %s3430_s15 = smov 64  }
  0x1a   : > { %s3553_s19 = scalar_lea.vmem %s4115_s0, %s2978_s16 }
  0x1b   : > { %v416_v0 = vld [vmem:[%s3553_s19] sm:$0xff]  ;;  %v417_v1 = vld [vmem:[%s3553_s19 + $0x8] sm:$0xff] }
  0x1c   : > { %v419_v2 = vsel %vm418_vm0, %v416_v0, 0.0  ;;  %v428_v3 = vmul.f32 %v416_v0, %v416_v0  ;;  %v429_v4 = vmul.f32 %v417_v1, %v417_v1  ;;  %v422_v6 = vsel %vm418_vm0, %v417_v1, 0.0 }
  0x1d   : > { %420 = vadd.xlane.f32.xlu0 %v419_v2 }
  0x1e   : > { %v430_v5 = vsel %vm418_vm0, %v428_v3, 0.0  ;;  %v433_v7 = vsel %vm418_vm0, %v429_v4, 0.0 }
  0x1f   : > { %431 = vadd.xlane.f32.xlu1 %v430_v5 }
  0x21   : > { %423 = vadd.xlane.f32.xlu0 %v422_v6 }
  0x23   : > { %434 = vadd.xlane.f32.xlu1 %v433_v7 }
  0xaa   : > { %v421_v11 = vpop.xlane.xlu0 %420 }
  0xab   : > { %v426_v12 = vmul.f32 0.03125, %v421_v11 }
  0xac   : > { %v432_v13 = vpop.xlane.xlu1 %431 }
  0xad   : > { %v438_v14 = vmul.f32 %v426_v12, %v426_v12  ;;  %v436_v15 = vmul.f32 0.03125, %v432_v13  ;;  %v442_v25 = vsub.f32 %v416_v0, %v426_v12 }
  0xae   : > { %v424_v16 = vpop.xlane.xlu0 %423 }
  0xaf   : > { %v440_v17 = vsub.f32 %v436_v15, %v438_v14  ;;  %v427_v18 = vmul.f32 0.03125, %v424_v16 }
  0xb0   : > { %v435_v19 = vpop.xlane.xlu1 %434 }
  0xb1   : > { %v444_v20 = vadd.f32 1e-05, %v440_v17  ;;  %v439_v21 = vmul.f32 %v427_v18, %v427_v18  ;;  %v437_v22 = vmul.f32 0.03125, %v435_v19  ;;  %v443_v29 = vsub.f32 %v417_v1, %v427_v18 }
  0xb2   : > { %v3628_v1 = vsub.s32 %v585_v60, %v555_v52 }
  0xb3   : > { %3312 = vrsqrt.f32 %v444_v20  ;;  %v441_v23 = vsub.f32 %v437_v22, %v439_v21 }
  0xb5   : > { %v445_v24 = vadd.f32 1e-05, %v441_v23 }
  0xb7   : > { %3314 = vrsqrt.f32 %v445_v24 }
  0xbd   : > { %v3313_v26 = vpop.eup %3312 }
  0xbe   : > { %v448_v27 = vmul.f32 %v3313_v26, %v442_v25 }
  0xc0   : > { %v457_v32 = vmul.f32 %v2979_v28, %v448_v27 }
  0xc1   : > { %v3315_v30 = vpop.eup %3314 }
  0xc2   : > { %v449_v31 = vmul.f32 %v3315_v30, %v443_v29  ;;  %v466_v35 = vadd.f32 %v2980_v33, %v457_v32 }
  0xc4   : > { %v458_v34 = vmul.f32 %v2979_v28, %v449_v31 }
  0xc6   : > { %v467_v36 = vadd.f32 %v2980_v33, %v458_v34 }
  0xc8   : > { %v468_v37 = vpack.c.bf16 %v467_v36, %v466_v35 }
  0xca   : > { %3096 = vmatmul.mubr.msk.bf16.vlgmr.msra.gmra.mrb[0].mxu0 %vm418_vm0, %v468_v37 }
  0xcb   : > { %3101 = vmatprep.mubr.msk.bf16.mxu0 %vm3423_vm1, %v3422_v9 }
 0x19d   : > { %v3584_v38 = vpop.f32.mrb[0].mxu0 }
 0x19e   : > { %537 = vrot.lane.b32.xlu1 %v3584_v38, %s3424_s20  ;;  %531 = vrot.lane.b32.xlu0 %v3584_v38, %s3425_s26  ;;  %v3097_v39 = vpop.f32.mrb[1].mxu0 }
 0x19f   : > { %v3588_v40 = vpop.f32.mrb[2].mxu0 }
 0x1a0   : > { %v3098_v41 = vpop.f32.mrb[3].mxu0 }
 0x1a2   : > { %543 = vrot.lane.b32.xlu1 %v3584_v38, %s3426_s28  ;;  %539 = vrot.lane.b32.xlu0 %v3588_v40, %s3424_s20  ;;  %s2976_s20 = sshll.u32 %s405_s18, 4 }
 0x1a6   : > { %829 = vrot.lane.b32.xlu0 %v3584_v38, %s3427_s29  ;;  %533 = vrot.lane.b32.xlu1 %v3588_v40, %s3425_s26  ;;  %s3431_s26 = smov 16  }
 0x1aa   : > { %545 = vrot.lane.b32.xlu1 %v3588_v40, %s3426_s28  ;;  %s4110_s28 = smov 8  }
 0x210   : > { %v3595_v42 = vpop.permute.xlu1 %537  ;;  %v3597_v43 = vpop.permute.xlu0 %531 }
 0x211   : > { %837 = vrot.lane.b32.xlu0 %v3595_v42, %s3427_s29  ;;  %833 = vrot.lane.b32.xlu1 %v3597_v43, %s3427_s29  ;;  %v549_v58 = vcombine.low %v3584_v38, %v3595_v42  ;;  %v550_v59 = vcombine.high %v3584_v38, %v3595_v42 }
 0x213   : > { %v557_v63 = vrot.slane %v549_v58, %v3618_v57  ;;  %v564_v0 = vrot.slane %v550_v59, %v3618_v57 }
 0x214   : > { %v3601_v44 = vpop.permute.xlu1 %543  ;;  %v3605_v45 = vpop.permute.xlu0 %539 }
 0x215   : > { %831 = vrot.lane.b32.xlu0 %v3588_v40, %s3427_s29  ;;  %841 = vrot.lane.b32.xlu1 %v3601_v44, %s3427_s29  ;;  %v565_v55 = vcombine.low %v3597_v43, %v3601_v44  ;;  %v566_v56 = vcombine.high %v3597_v43, %v3601_v44  ;;  %v617_v17 = vcombine.low %v3588_v40, %v3605_v45 }
 0x216   : > { %v618_v20 = vcombine.high %v3588_v40, %v3605_v45 }
 0x217   : > { %v573_v61 = vrot.slane %v565_v55, %v3618_v57  ;;  %v580_v62 = vrot.slane %v566_v56, %v3618_v57  ;;  %v625_v27 = vrot.slane %v617_v17, %v3618_v57 }
 0x218   : > { %v3607_v46 = vpop.permute.xlu1 %533  ;;  %v830_v12 = vpop.permute.xlu0 %829  ;;  %v632_v29 = vrot.slane %v618_v20, %v3618_v57 }
 0x219   : > { %839 = vrot.lane.b32.xlu0 %v3605_v45, %s3427_s29  ;;  %835 = vrot.lane.b32.xlu1 %v3607_v46, %s3427_s29  ;;  %v581_v2 = vcombine.low %v557_v63, %v573_v61  ;;  %v582_v3 = vcombine.high %v557_v63, %v573_v61  ;;  %v597_v4 = vcombine.low %v564_v0, %v580_v62 }
 0x21a   : > { %v598_v5 = vcombine.high %v564_v0, %v580_v62 }
 0x21b   : > { %v589_v6 = vrot.slane %v581_v2, %v3628_v1  ;;  %v596_v7 = vrot.slane %v582_v3, %v3628_v1  ;;  %v605_v8 = vrot.slane %v597_v4, %v3628_v1 }
 0x21c   : > { %v3611_v47 = vpop.permute.xlu1 %545  ;;  %v612_v10 = vrot.slane %v598_v5, %v3628_v1 }
 0x21d   : > { %843 = vrot.lane.b32.xlu1 %v3611_v47, %s3427_s29  ;;  %v685_v11 = vcombine.low %v589_v6, %v596_v7  ;;  %v2984_v13 = vcombine.high %v589_v6, %v596_v7  ;;  %v633_v16 = vcombine.low %v3607_v46, %v3611_v47  ;;  %v634_v18 = vcombine.high %v3607_v46, %v3611_v47  ;;  %s3433_s29 = smov 24  }
 0x21e   : > { %v701_v14 = vcombine.low %v605_v8, %v612_v10  ;;  %v2985_v15 = vcombine.high %v605_v8, %v612_v10 }
 0x21f   : > { %v692_v19 = vrot.slane %v685_v11, %v3618_v57  ;;  %v700_v23 = vrot.slane %v2984_v13, %v3618_v57  ;;  %v641_v26 = vrot.slane %v633_v16, %v3618_v57  ;;  %v648_v28 = vrot.slane %v634_v18, %v3618_v57 }
 0x220   : > { %v708_v24 = vrot.slane %v701_v14, %v3618_v57  ;;  %v716_v25 = vrot.slane %v2985_v15, %v3618_v57 }
 0x221   : > { %v649_v33 = vcombine.low %v625_v27, %v641_v26  ;;  %v650_v34 = vcombine.high %v625_v27, %v641_v26  ;;  %v717_v36 = vcombine.low %v692_v19, %v700_v23  ;;  %v665_v48 = vcombine.low %v632_v29, %v648_v28 }
 0x222   : > { %v733_v37 = vcombine.low %v708_v24, %v716_v25  ;;  %v666_v49 = vcombine.high %v632_v29, %v648_v28  ;;  %v718_v50 = vcombine.high %v692_v19, %v700_v23  ;;  %v734_v51 = vcombine.high %v708_v24, %v716_v25 }
 0x223   : > { %v657_v56 = vrot.slane %v649_v33, %v3628_v1  ;;  %v664_v58 = vrot.slane %v650_v34, %v3628_v1  ;;  %v3657_v60 = vrot.slane %v717_v36, %v3628_v1  ;;  %v673_v4 = vrot.slane %v665_v48, %v3628_v1 }
 0x224   : > { %v3660_v61 = vrot.slane %v733_v37, %v3628_v1  ;;  %v680_v5 = vrot.slane %v666_v49, %v3628_v1  ;;  %v3665_v6 = vrot.slane %v718_v50, %v3628_v1  ;;  %v3668_v7 = vrot.slane %v734_v51, %v3628_v1 }
 0x225   : > { %v753_v13 = vcombine.low %v657_v56, %v664_v58  ;;  %v2986_v14 = vcombine.high %v657_v56, %v664_v58 }
 0x226   : > { %v2987_v23 = vcombine.high %v673_v4, %v680_v5 }
 0x283   : > { %v838_v21 = vpop.permute.xlu0 %837  ;;  %v834_v22 = vpop.permute.xlu1 %833 }
 0x284   : > { %v853_v30 = vcombine.low %v830_v12, %v838_v21  ;;  %v854_v31 = vcombine.high %v830_v12, %v838_v21 }
 0x286   : > { %v861_v52 = vrot.slane %v853_v30, %v3618_v57  ;;  %v868_v53 = vrot.slane %v854_v31, %v3618_v57 }
 0x287   : > { %v832_v32 = vpop.permute.xlu0 %831  ;;  %v842_v35 = vpop.permute.xlu1 %841 }
 0x288   : > { %v869_v39 = vcombine.low %v834_v22, %v842_v35  ;;  %v870_v41 = vcombine.high %v834_v22, %v842_v35  ;;  %v769_v22 = vcombine.low %v673_v4, %v680_v5 }
 0x28a   : > { %v877_v54 = vrot.slane %v869_v39, %v3618_v57  ;;  %v884_v55 = vrot.slane %v870_v41, %v3618_v57 }
 0x28b   : > { %v836_v59 = vpop.permute.xlu1 %835  ;;  %v840_v3 = vpop.permute.xlu0 %839 }
 0x28c   : > { %v885_v62 = vcombine.low %v861_v52, %v877_v54  ;;  %v886_v63 = vcombine.high %v861_v52, %v877_v54  ;;  %v901_v0 = vcombine.low %v868_v53, %v884_v55  ;;  %v902_v2 = vcombine.high %v868_v53, %v884_v55 }
 0x28d   : > { %v921_v15 = vcombine.low %v832_v32, %v840_v3  ;;  %v922_v16 = vcombine.high %v832_v32, %v840_v3 }
 0x28e   : > { %v893_v8 = vrot.slane %v885_v62, %v3628_v1  ;;  %v900_v10 = vrot.slane %v886_v63, %v3628_v1  ;;  %v909_v11 = vrot.slane %v901_v0, %v3628_v1  ;;  %v916_v12 = vrot.slane %v902_v2, %v3628_v1 }
 0x28f   : > { %v844_v17 = vpop.permute.xlu1 %843  ;;  %v929_v30 = vrot.slane %v921_v15, %v3618_v57  ;;  %v936_v31 = vrot.slane %v922_v16, %v3618_v57  ;;  %v768_v62 = vrot.slane %v2986_v14, %v3618_v57 }
 0x290   : > { %v989_v18 = vcombine.low %v893_v8, %v900_v10  ;;  %v2988_v19 = vcombine.high %v893_v8, %v900_v10  ;;  %v1005_v20 = vcombine.low %v909_v11, %v916_v12  ;;  %v2989_v21 = vcombine.high %v909_v11, %v916_v12 }
 0x291   : > { %v937_v24 = vcombine.low %v836_v59, %v844_v17  ;;  %v938_v25 = vcombine.high %v836_v59, %v844_v17  ;;  %v3691_v59 = vrot.slane %v753_v13, %v3618_v57  ;;  %v776_v8 = vrot.slane %v769_v22, %v3618_v57 }
 0x292   : > { %v996_v26 = vrot.slane %v989_v18, %v3618_v57  ;;  %v1004_v27 = vrot.slane %v2988_v19, %v3618_v57  ;;  %v1012_v28 = vrot.slane %v1005_v20, %v3618_v57  ;;  %v1020_v29 = vrot.slane %v2989_v21, %v3618_v57 }
 0x293   : > { %v945_v32 = vrot.slane %v937_v24, %v3618_v57  ;;  %v952_v33 = vrot.slane %v938_v25, %v3618_v57  ;;  %v784_v10 = vrot.slane %v2987_v23, %v3618_v57  ;;  %v749_v23 = vcombine.low %v3657_v60, %v3660_v61 }
 0x294   : > { %v1021_v34 = vcombine.low %v996_v26, %v1004_v27  ;;  %v1037_v35 = vcombine.low %v1012_v28, %v1020_v29  ;;  %v1022_v36 = vcombine.high %v996_v26, %v1004_v27  ;;  %v1038_v37 = vcombine.high %v1012_v28, %v1020_v29 }
 0x295   : > { %v953_v39 = vcombine.low %v929_v30, %v945_v32  ;;  %v954_v41 = vcombine.high %v929_v30, %v945_v32  ;;  %v969_v48 = vcombine.low %v936_v31, %v952_v33  ;;  %v970_v49 = vcombine.high %v936_v31, %v952_v33 }
 0x296   : > { %v1029_v50 = vrot.slane %v1021_v34, %v3628_v1  ;;  %v1045_v51 = vrot.slane %v1037_v35, %v3628_v1  ;;  %v1036_v52 = vrot.slane %v1022_v36, %v3628_v1  ;;  %v1052_v53 = vrot.slane %v1038_v37, %v3628_v1 }
 0x297   : > { %v961_v54 = vrot.slane %v953_v39, %v3628_v1  ;;  %v968_v55 = vrot.slane %v954_v41, %v3628_v1  ;;  %v977_v56 = vrot.slane %v969_v48, %v3628_v1  ;;  %v984_v58 = vrot.slane %v970_v49, %v3628_v1 }
 0x298   : > { %v1053_v63 = vcombine.low %v1029_v50, %v1045_v51  ;;  %v1055_v0 = vcombine.low %v1036_v52, %v1052_v53  ;;  %v1054_v19 = vcombine.high %v1029_v50, %v1045_v51  ;;  %v751_v24 = vcombine.low %v3665_v6, %v3668_v7 }
 0x299   : > { %v1057_v2 = vcombine.low %v961_v54, %v968_v55  ;;  %v2990_v3 = vcombine.high %v961_v54, %v968_v55  ;;  %v1073_v4 = vcombine.low %v977_v56, %v984_v58  ;;  %v2991_v5 = vcombine.high %v977_v56, %v984_v58 }
 0x29a   : > { %v1125_v11 = vpack.c.bf16 %v1053_v63, %v1053_v63  ;;  %v1127_v12 = vpack.c.bf16 %v1055_v0, %v1055_v0  ;;  %v785_v28 = vcombine.low %v3691_v59, %v768_v62  ;;  %v801_v29 = vcombine.low %v776_v8, %v784_v10 }
 0x29b   : > { %v1064_v15 = vrot.slane %v1057_v2, %v3618_v57  ;;  %v1072_v16 = vrot.slane %v2990_v3, %v3618_v57  ;;  %v1080_v13 = vrot.slane %v1073_v4, %v3618_v57  ;;  %v1088_v14 = vrot.slane %v2991_v5, %v3618_v57 }
 0x29c   : > { %v1442_v17 = vsel %vm1437_vm2, %v1125_v11, 0  ;;  %v1534_v18 = vsel %vm1437_vm2, %v1127_v12, 0  ;;  %v1126_v30 = vpack.c.bf16 %v1054_v19, %v1054_v19  ;;  %v821_v34 = vpack.c.bf16 %v749_v23, %v749_v23 }
 0x29d   : > { %3100 = vmatpush3.bf16.xpose.msra.mxu0 %v1442_v17  ;;  %3112 = vmatpush3.bf16.xpose.msra.mxu1 %v1534_v18  ;;  %v1089_v20 = vcombine.low %v1064_v15, %v1072_v16  ;;  %v1105_v21 = vcombine.low %v1080_v13, %v1088_v14  ;;  %v1090_v22 = vcombine.high %v1064_v15, %v1072_v16 }
 0x29e   : > { %3105 = vmatprep.subr.bf16.mxu0 %v3422_v9  ;;  %3123 = vmatprep.subr.bf16.mxu1 %v3422_v9  ;;  %v1106_v25 = vcombine.high %v1080_v13, %v1088_v14  ;;  %v823_v35 = vpack.c.bf16 %v751_v24, %v751_v24  ;;  %v793_v37 = vrot.slane %v785_v28, %v3628_v1  ;;  %v1488_v41 = vsel %vm1437_vm2, %v1126_v30, 0 }
 0x29f   : > { %v1097_v26 = vrot.slane %v1089_v20, %v3628_v1  ;;  %v1113_v27 = vrot.slane %v1105_v21, %v3628_v1  ;;  %v1104_v32 = vrot.slane %v1090_v22, %v3628_v1  ;;  %v809_v39 = vrot.slane %v801_v29, %v3628_v1 }
 0x2a0   : > { %v1120_v33 = vrot.slane %v1106_v25, %v3628_v1  ;;  %v1056_v48 = vcombine.high %v1036_v52, %v1052_v53  ;;  %v750_v51 = vcombine.high %v3657_v60, %v3660_v61  ;;  %v786_v52 = vcombine.high %v3691_v59, %v768_v62 }
 0x2a1   : > { %v1121_v31 = vcombine.low %v1097_v26, %v1113_v27  ;;  %v817_v54 = vcombine.low %v793_v37, %v809_v39  ;;  %v802_v53 = vcombine.high %v776_v8, %v784_v10  ;;  %v1122_v61 = vcombine.high %v1097_v26, %v1113_v27 }
 0x2a2   : > { %v1123_v50 = vcombine.low %v1104_v32, %v1120_v33  ;;  %v1128_v55 = vpack.c.bf16 %v1056_v48, %v1056_v48  ;;  %v822_v58 = vpack.c.bf16 %v750_v51, %v750_v51  ;;  %v800_v0 = vrot.slane %v786_v52, %v3628_v1 }
 0x2a3   : > { %v1129_v36 = vpack.c.bf16 %v1121_v31, %v1121_v31  ;;  %v825_v63 = vpack.c.bf16 %v817_v54, %v817_v54  ;;  %v816_v2 = vrot.slane %v802_v53, %v3628_v1  ;;  %v752_v59 = vcombine.high %v3665_v6, %v3668_v7 }
 0x2a4   : > { %3102 = vmatmul.mubr.msk.bf16.vlgmr.msra.gmra.mrb[4].mxu0 %vm1437_vm2, %v821_v34  ;;  %3114 = vmatmul.mubr.msk.bf16.vlgmr.msra.gmra.mrb[0].mxu1 %vm1437_vm2, %v823_v35  ;;  %v1131_v56 = vpack.c.bf16 %v1123_v50, %v1123_v50  ;;  %v1580_v60 = vsel %vm1437_vm2, %v1128_v55, 0  ;;  %v1130_v4 = vpack.c.bf16 %v1122_v61, %v1122_v61  ;;  %v1124_v6 = vcombine.high %v1104_v32, %v1120_v33 }
 0x2a5   : > { %3106 = vmatpush3.bf16.xpose.msra.mxu0 %v1488_v41  ;;  %v1626_v49 = vsel %vm1437_vm2, %v1129_v36, 0  ;;  %3107 = vmatprep.mubr.msk.bf16.mxu0 %vm3423_vm1, %v3422_v9  ;;  %v819_v62 = vcombine.low %v800_v0, %v816_v2  ;;  %v824_v5 = vpack.c.bf16 %v752_v59, %v752_v59  ;;  %v818_v7 = vcombine.high %v793_v37, %v809_v39 }
 0x2a6   : > { %3124 = vmatpush3.bf16.xpose.msra.mxu1 %v1626_v49  ;;  %3125 = vmatprep.mubr.msk.bf16.mxu1 %vm3423_vm1, %v3422_v9  ;;  %v1718_v3 = vsel %vm1437_vm2, %v1131_v56, 0  ;;  %v1672_v10 = vsel %vm1437_vm2, %v1130_v4, 0  ;;  %v1132_v11 = vpack.c.bf16 %v1124_v6, %v1124_v6  ;;  %v820_v16 = vcombine.high %v800_v0, %v816_v2 }
 0x2a7   : > { %3117 = vmatprep.subr.bf16.mxu0 %v3422_v9  ;;  %3135 = vmatprep.subr.bf16.mxu1 %v3422_v9  ;;  %v827_v8 = vpack.c.bf16 %v819_v62, %v819_v62  ;;  %v826_v12 = vpack.c.bf16 %v818_v7, %v818_v7 }
 0x2a8   : > { %v1764_v15 = vsel %vm1437_vm2, %v1132_v11, 0  ;;  %v828_v13 = vpack.c.bf16 %v820_v16, %v820_v16 }
 0x2ac   : > { %3108 = vmatmul.mubr.msk.bf16.vlgmr.msra.gmra.mrb[8].mxu0 %vm1437_vm2, %v822_v58 }
 0x2ad   : > { %3126 = vmatmul.mubr.msk.bf16.vlgmr.msra.gmra.mrb[4].mxu1 %vm1437_vm2, %v825_v63  ;;  %3118 = vmatpush3.bf16.xpose.msra.mxu0 %v1580_v60 }
 0x2ae   : > { %3136 = vmatpush3.bf16.xpose.msra.mxu1 %v1718_v3  ;;  %3119 = vmatprep.mubr.msk.bf16.mxu0 %vm3423_vm1, %v3422_v9 }
 0x2af   : > { %3137 = vmatprep.mubr.msk.bf16.mxu1 %vm3423_vm1, %v3422_v9  ;;  %3129 = vmatprep.subr.bf16.mxu0 %v3422_v9 }
 0x2b0   : > { %3147 = vmatprep.subr.bf16.mxu1 %v3422_v9 }
 0x2b4   : > { %3120 = vmatmul.mubr.msk.bf16.vlgmr.msra.gmra.mrb[12].mxu0 %vm1437_vm2, %v824_v5 }
 0x2b5   : > { %3138 = vmatmul.mubr.msk.bf16.vlgmr.msra.gmra.mrb[8].mxu1 %vm1437_vm2, %v827_v8  ;;  %3130 = vmatpush3.bf16.xpose.msra.mxu0 %v1672_v10 }
 0x2b6   : > { %3131 = vmatprep.mubr.msk.bf16.mxu0 %vm3423_vm1, %v3422_v9  ;;  %3141 = vmatprep.subr.bf16.mxu0 %v3422_v9 }
 0x2b7   : > { %3149 = vmatprep.mubr.msk.bf16.mxu1 %vm3423_vm1, %v3422_v9 }
 0x2bc   : > { %3132 = vmatmul.mubr.msk.bf16.vlgmr.msra.gmra.mrb[16].mxu0 %vm1437_vm2, %v826_v12 }
 0x2bd   : > { %3142 = vmatpush3.bf16.xpose.msra.mxu0 %v1764_v15  ;;  %3143 = vmatprep.mubr.msk.bf16.mxu0 %vm3423_vm1, %v3422_v9 }
 0x2be   : > { %3153 = vmatprep.subr.bf16.mxu0 %v3422_v9 }
 0x2c4   : > { %3144 = vmatmul.mubr.msk.bf16.vlgmr.msra.gmra.mrb[20].mxu0 %vm1437_vm2, %v828_v13 }
 0x2c5   : > { %3155 = vmatprep.mubr.msk.bf16.mxu0 %vm3423_vm1, %v3422_v9 }
 0x377   : > { %v1478_v14 = vpop.f32.mrb[4].mxu0  ;;  %v1570_v17 = vpop.f32.mrb[0].mxu1 }
 0x378   : > { %v3103_v18 = vpop.f32.mrb[5].mxu0  ;;  %v3115_v19 = vpop.f32.mrb[1].mxu1  ;;  %v1806_v20 = vsel %vm1437_vm2, %v1478_v14, -inf  ;;  %v1812_v25 = vsel %vm1437_vm2, %v1570_v17, -inf }
 0x379   : > { %v1573_v21 = vpop.f32.mrb[2].mxu1  ;;  %1807 = vmax.xlane.f32.xlu0 %v1806_v20  ;;  %v1481_v22 = vpop.f32.mrb[6].mxu0 }
 0x37a   : > { %v3104_v23 = vpop.f32.mrb[7].mxu0  ;;  %v3116_v24 = vpop.f32.mrb[3].mxu1 }
 0x37d   : > { %1813 = vmax.xlane.f32.xlu0 %v1812_v25 }
 0x37f   : > { %v1524_v26 = vpop.f32.mrb[8].mxu0 }
 0x380   : > { %v1662_v27 = vpop.f32.mrb[4].mxu1  ;;  %v3109_v28 = vpop.f32.mrb[9].mxu0  ;;  %v1809_v29 = vsel %vm1437_vm2, %v1524_v26, -inf }
 0x381   : > { %v3127_v30 = vpop.f32.mrb[5].mxu1  ;;  %v1818_v31 = vsel %vm1437_vm2, %v1662_v27, -inf  ;;  %1810 = vmax.xlane.f32.xlu1 %v1809_v29  ;;  %v1527_v32 = vpop.f32.mrb[10].mxu0 }
 0x382   : > { %v1665_v33 = vpop.f32.mrb[6].mxu1  ;;  %1819 = vmax.xlane.f32.xlu0 %v1818_v31  ;;  %v3110_v34 = vpop.f32.mrb[11].mxu0 }
 0x383   : > { %v3128_v35 = vpop.f32.mrb[7].mxu1 }
 0x387   : > { %v1616_v36 = vpop.f32.mrb[12].mxu0 }
 0x388   : > { %v3762_v37 = vpop.f32.mrb[8].mxu1  ;;  %v3121_v39 = vpop.f32.mrb[13].mxu0  ;;  %v1815_v41 = vsel %vm1437_vm2, %v1616_v36, -inf }
 0x389   : > { %v3139_v48 = vpop.f32.mrb[9].mxu1  ;;  %1816 = vmax.xlane.f32.xlu0 %v1815_v41  ;;  %v1619_v49 = vpop.f32.mrb[14].mxu0  ;;  %v1824_v52 = vsel %vm1437_vm2, %v3762_v37, -inf }
 0x38a   : > { %v1757_v50 = vpop.f32.mrb[10].mxu1  ;;  %v3122_v51 = vpop.f32.mrb[15].mxu0 }
 0x38b   : > { %v3140_v54 = vpop.f32.mrb[11].mxu1 }
 0x38d   : > { %1825 = vmax.xlane.f32.xlu0 %v1824_v52 }
 0x38f   : > { %v1708_v53 = vpop.f32.mrb[16].mxu0 }
 0x390   : > { %v3133_v55 = vpop.f32.mrb[17].mxu0  ;;  %v1821_v61 = vsel %vm1437_vm2, %v1708_v53, -inf }
 0x391   : > { %v1711_v56 = vpop.f32.mrb[18].mxu0 }
 0x392   : > { %1137 = vrot.lane.b32.xlu1 %v3597_v43, %s3430_s15  ;;  %v3134_v58 = vpop.f32.mrb[19].mxu0 }
 0x396   : > { %1141 = vrot.lane.b32.xlu1 %v3595_v42, %s3430_s15 }
 0x397   : > { %v3771_v63 = vpop.f32.mrb[20].mxu0 }
 0x398   : > { %v3145_v0 = vpop.f32.mrb[21].mxu0  ;;  %v1827_v3 = vsel %vm1437_vm2, %v3771_v63, -inf }
 0x399   : > { %v1803_v2 = vpop.f32.mrb[22].mxu0 }
 0x39a   : > { %v3146_v60 = vpop.f32.mrb[23].mxu0 }
 0x3a3   : > { %1133 = vrot.lane.b32.xlu0 %v3584_v38, %s3430_s15 }
 0x3ba   : > { %1822 = vmax.xlane.f32.xlu1 %v1821_v61 }
 0x3be   : > { %1828 = vmax.xlane.f32.xlu1 %v1827_v3 }
 0x3cf   : > { %1145 = vrot.lane.b32.xlu1 %v3601_v44, %s3430_s15 }
 0x406   : > { %v1808_v43 = vpop.xlane.xlu0 %1807 }
 0x407   : > { %v1830_v42 = vsub.f32 %v1478_v14, %v1808_v43 }
 0x409   : > { %v1838_v59 = vmul.f32 1.442695, %v1830_v42 }
 0x40a   : > { %v1814_v62 = vpop.xlane.xlu0 %1813 }
 0x40b   : > { %3316 = vpow2.f32 %v1838_v59  ;;  %v1832_v4 = vsub.f32 %v1570_v17, %v1814_v62 }
 0x40d   : > { %v1842_v5 = vmul.f32 1.442695, %v1832_v4 }
 0x40e   : > { %v1811_v8 = vpop.xlane.xlu1 %1810 }
 0x40f   : > { %3318 = vpow2.f32 %v1842_v5  ;;  %v1820_v38 = vpop.xlane.xlu0 %1819  ;;  %v1831_v10 = vsub.f32 %v1524_v26, %v1811_v8 }
 0x410   : > { %v1834_v6 = vsub.f32 %v1662_v27, %v1820_v38 }
 0x411   : > { %v1840_v7 = vmul.f32 1.442695, %v1831_v10 }
 0x412   : > { %v1846_v11 = vmul.f32 1.442695, %v1834_v6  ;;  %v1138_v24 = vpop.permute.xlu1 %1137 }
 0x413   : > { %3320 = vpow2.f32 %v1840_v7 }
 0x414   : > { %3322 = vpow2.f32 %v1846_v11 }
 0x415   : > { %v3780_v12 = vpop.eup %3316 }
 0x416   : > { %v1817_v15 = vpop.xlane.xlu0 %1816  ;;  %v1854_v44 = vsel %vm1437_vm2, %v3780_v12, 0.0  ;;  %v1142_v25 = vpop.permute.xlu1 %1141 }
 0x417   : > { %v1833_v16 = vsub.f32 %v1616_v36, %v1817_v15  ;;  %1855 = vadd.xlane.f32.xlu0 %v1854_v44 }
 0x419   : > { %v3784_v13 = vpop.eup %3318  ;;  %v1844_v14 = vmul.f32 1.442695, %v1833_v16 }
 0x41a   : > { %v1860_v17 = vsel %vm1437_vm2, %v3784_v13, 0.0  ;;  %v3806_v26 = vpop.xlane.xlu0 %1825 }
 0x41b   : > { %3324 = vpow2.f32 %v1844_v14  ;;  %1861 = vadd.xlane.f32.xlu0 %v1860_v17 }
 0x41d   : > { %v3788_v18 = vpop.eup %3320 }
 0x41e   : > { %v3790_v19 = vpop.eup %3322  ;;  %v1857_v20 = vsel %vm1437_vm2, %v3788_v18, 0.0  ;;  %v1134_v30 = vpop.permute.xlu0 %1133 }
 0x41f   : > { %v1866_v21 = vsel %vm1437_vm2, %v3790_v19, 0.0  ;;  %1858 = vadd.xlane.f32.xlu1 %v1857_v20  ;;  %v1157_v33 = vcombine.low %v1134_v30, %v1142_v25 }
 0x420   : > { %1867 = vadd.xlane.f32.xlu0 %v1866_v21 }
 0x421   : > { %v1165_v39 = vrot.slane %v1157_v33, %v3618_v57 }
 0x425   : > { %v3796_v22 = vpop.eup %3324 }
 0x426   : > { %v1863_v23 = vsel %vm1437_vm2, %v3796_v22, 0.0 }
 0x427   : > { %1864 = vadd.xlane.f32.xlu1 %v1863_v23 }
 0x438   : > { %1139 = vrot.lane.b32.xlu1 %v3607_v46, %s3430_s15  ;;  %v1158_v46 = vcombine.high %v1134_v30, %v1142_v25  ;;  %v1836_v25 = vsub.f32 %v3762_v37, %v3806_v26 }
 0x43c   : > { %1143 = vrot.lane.b32.xlu1 %v3605_v45, %s3430_s15 }
 0x440   : > { %1147 = vrot.lane.b32.xlu1 %v3611_v47, %s3430_s15  ;;  %v1172_v47 = vrot.slane %v1158_v46, %v3618_v57 }
 0x447   : > { %v1823_v27 = vpop.xlane.xlu1 %1822 }
 0x448   : > { %v1835_v28 = vsub.f32 %v1708_v53, %v1823_v27  ;;  %v1850_v27 = vmul.f32 1.442695, %v1836_v25 }
 0x44a   : > { %v1848_v29 = vmul.f32 1.442695, %v1835_v28 }
 0x44b   : > { %v1829_v31 = vpop.xlane.xlu1 %1828 }
 0x44c   : > { %3326 = vpow2.f32 %v1848_v29  ;;  %v1837_v32 = vsub.f32 %v3771_v63, %v1829_v31 }
 0x44e   : > { %v1852_v36 = vmul.f32 1.442695, %v1837_v32 }
 0x44f   : > { %v1146_v34 = vpop.permute.xlu1 %1145 }
 0x450   : > { %v1173_v35 = vcombine.low %v1138_v24, %v1146_v34  ;;  %v1174_v45 = vcombine.high %v1138_v24, %v1146_v34  ;;  %3328 = vpow2.f32 %v1852_v36 }
 0x451   : > { %3330 = vpow2.f32 %v1850_v27 }
 0x452   : > { %v1181_v41 = vrot.slane %v1173_v35, %v3618_v57  ;;  %v1188_v48 = vrot.slane %v1174_v45, %v3618_v57 }
 0x454   : > { %v1189_v49 = vcombine.low %v1165_v39, %v1181_v41  ;;  %v1190_v50 = vcombine.high %v1165_v39, %v1181_v41  ;;  %v1205_v51 = vcombine.low %v1172_v47, %v1188_v48  ;;  %v1206_v54 = vcombine.high %v1172_v47, %v1188_v48 }
 0x456   : > { %v3813_v52 = vpop.eup %3326  ;;  %v1197_v53 = vrot.slane %v1189_v49, %v3628_v1  ;;  %v1204_v55 = vrot.slane %v1190_v50, %v3628_v1  ;;  %v1213_v56 = vrot.slane %v1205_v51, %v3628_v1  ;;  %v1220_v58 = vrot.slane %v1206_v54, %v3628_v1 }
 0x457   : > { %v1869_v63 = vsel %vm1437_vm2, %v3813_v52, 0.0 }
 0x458   : > { %v1293_v0 = vcombine.low %v1197_v53, %v1204_v55  ;;  %v2992_v2 = vcombine.high %v1197_v53, %v1204_v55  ;;  %v1309_v60 = vcombine.low %v1213_v56, %v1220_v58  ;;  %v2993_v61 = vcombine.high %v1213_v56, %v1220_v58  ;;  %1870 = vadd.xlane.f32.xlu0 %v1869_v63 }
 0x45a   : > { %v1300_v3 = vrot.slane %v1293_v0, %v3618_v57  ;;  %v1308_v43 = vrot.slane %v2992_v2, %v3618_v57  ;;  %v1316_v42 = vrot.slane %v1309_v60, %v3618_v57  ;;  %v1324_v59 = vrot.slane %v2993_v61, %v3618_v57  ;;  %v3829_v11 = vpop.eup %3328 }
 0x45b   : > { %v1875_v21 = vsel %vm1437_vm2, %v3829_v11, 0.0  ;;  %v3841_v28 = vpop.eup %3330 }
 0x45c   : > { %v1325_v62 = vcombine.low %v1300_v3, %v1308_v43  ;;  %v1341_v4 = vcombine.low %v1316_v42, %v1324_v59  ;;  %v1326_v5 = vcombine.high %v1300_v3, %v1308_v43  ;;  %v1342_v8 = vcombine.high %v1316_v42, %v1324_v59 }
 0x45d   : > { %v1872_v29 = vsel %vm1437_vm2, %v3841_v28, 0.0 }
 0x45e   : > { %v1333_v38 = vrot.slane %v1325_v62, %v3628_v1  ;;  %v1349_v10 = vrot.slane %v1341_v4, %v3628_v1  ;;  %v1340_v6 = vrot.slane %v1326_v5, %v3628_v1  ;;  %v1356_v7 = vrot.slane %v1342_v8, %v3628_v1 }
 0x460   : > { %v1357_v15 = vcombine.low %v1333_v38, %v1349_v10  ;;  %v1358_v44 = vcombine.high %v1333_v38, %v1349_v10  ;;  %v1359_v16 = vcombine.low %v1340_v6, %v1356_v7  ;;  %v1360_v14 = vcombine.high %v1340_v6, %v1356_v7 }
 0x462   : > { %v1429_v17 = vpack.c.bf16 %v1357_v15, %v1357_v15  ;;  %v1430_v20 = vpack.c.bf16 %v1358_v44, %v1358_v44  ;;  %v1431_v46 = vpack.c.bf16 %v1359_v16, %v1359_v16  ;;  %v1432_v39 = vpack.c.bf16 %v1360_v14, %v1360_v14 }
 0x464   : > { %1876 = vadd.xlane.f32.xlu1 %v1875_v21  ;;  %v1907_v23 = vsel %vm1905_vm3, %v1429_v17, 0  ;;  %v1953_v24 = vsel %vm1905_vm3, %v1430_v20, 0  ;;  %v1999_v26 = vsel %vm1905_vm3, %v1431_v46, 0  ;;  %v2045_v48 = vsel %vm1905_vm3, %v1432_v39, 0 }
 0x465   : > { %3148 = vmatpush3.bf16.msra.mxu1 %v1907_v23  ;;  %3154 = vmatpush3.bf16.msra.mxu0 %v1953_v24 }
 0x466   : > { %3159 = vmatprep.subr.bf16.mxu1 %v3422_v9  ;;  %3165 = vmatprep.subr.bf16.mxu0 %v3422_v9 }
 0x46e   : > { %1135 = vrot.lane.b32.xlu0 %v3588_v40, %s3430_s15  ;;  %s407_s15 = scalar_lea.vmem [#allocation2], %s2976_s20 }
 0x46f   : > { %s2910_s16 = sshll.u32 %s407_s15, 4  ;;  %s4045_s16 = int_to_ptr.vmem [resolvable:$true] %s2910_s16 }
 0x48d   : > { %1873 = vadd.xlane.f32.xlu0 %v1872_v29 }
 0x4a4   : > { %v1856_v30 = vpop.xlane.xlu0 %1855 }
 0x4a5   : > { %3332 = vrcp.f32 %v1856_v30 }
 0x4a8   : > { %v1862_v31 = vpop.xlane.xlu0 %1861 }
 0x4a9   : > { %3334 = vrcp.f32 %v1862_v31 }
 0x4ac   : > { %v1859_v32 = vpop.xlane.xlu1 %1858 }
 0x4ad   : > { %3336 = vrcp.f32 %v1859_v32  ;;  %v1868_v54 = vpop.xlane.xlu0 %1867 }
 0x4af   : > { %v3333_v33 = vpop.eup %3332 }
 0x4b0   : > { %v1886_v40 = vmul.f32 %v3333_v33, %v3780_v12 }
 0x4b2   : > { %v1894_v34 = vpack.c.bf16 %v1886_v40, %v1886_v40 }
 0x4b3   : > { %v3335_v37 = vpop.eup %3334 }
 0x4b4   : > { %3150 = vmatmul.mubr.msk.bf16.vlgmr.msra.gmra.mrb[12].mxu1 %vm1437_vm2, %v1894_v34  ;;  %v1865_v35 = vpop.xlane.xlu1 %1864  ;;  %v1888_v45 = vmul.f32 %v3335_v37, %v3784_v13 }
 0x4b5   : > { %3160 = vmatpush3.bf16.msra.mxu1 %v1999_v26  ;;  %3338 = vrcp.f32 %v1865_v35  ;;  %3161 = vmatprep.mubr.msk.bf16.mxu1 %vm3423_vm1, %v3422_v9 }
 0x4b6   : > { %3171 = vmatprep.subr.bf16.mxu1 %v3422_v9  ;;  %v1896_v41 = vpack.c.bf16 %v1888_v45, %v1888_v45  ;;  %3340 = vrcp.f32 %v1868_v54 }
 0x4b7   : > { %v3337_v36 = vpop.eup %3336 }
 0x4b8   : > { %v1887_v12 = vmul.f32 %v3337_v36, %v3788_v18  ;;  %v1140_v50 = vpop.permute.xlu1 %1139 }
 0x4ba   : > { %v1895_v47 = vpack.c.bf16 %v1887_v12, %v1887_v12 }
 0x4bc   : > { %3156 = vmatmul.mubr.msk.bf16.vlgmr.msra.gmra.mrb[24].mxu0 %vm1437_vm2, %v1895_v47  ;;  %3162 = vmatmul.mubr.msk.bf16.vlgmr.msra.gmra.mrb[16].mxu1 %vm1437_vm2, %v1896_v41  ;;  %v1144_v51 = vpop.permute.xlu1 %1143 }
 0x4bd   : > { %3166 = vmatpush3.bf16.msra.mxu0 %v2045_v48  ;;  %3167 = vmatprep.mubr.msk.bf16.mxu0 %vm3423_vm1, %v3422_v9 }
 0x4be   : > { %3177 = vmatprep.subr.bf16.mxu0 %v3422_v9  ;;  %3173 = vmatprep.mubr.msk.bf16.mxu1 %vm3423_vm1, %v3422_v9 }
 0x4bf   : > { %v3339_v13 = vpop.eup %3338 }
 0x4c0   : > { %v1889_v18 = vmul.f32 %v3339_v13, %v3796_v22  ;;  %v1148_v53 = vpop.permute.xlu1 %1147  ;;  %v3341_v27 = vpop.eup %3340 }
 0x4c1   : > { %v1241_v56 = vcombine.low %v1140_v50, %v1148_v53  ;;  %v1242_v58 = vcombine.high %v1140_v50, %v1148_v53  ;;  %v1890_v26 = vmul.f32 %v3341_v27, %v3790_v19 }
 0x4c2   : > { %v1897_v49 = vpack.c.bf16 %v1889_v18, %v1889_v18 }
 0x4c3   : > { %v1249_v60 = vrot.slane %v1241_v56, %v3618_v57  ;;  %v1256_v22 = vrot.slane %v1242_v58, %v3618_v57  ;;  %v1898_v48 = vpack.c.bf16 %v1890_v26, %v1890_v26 }
 0x4c4   : > { %3168 = vmatmul.mubr.msk.bf16.vlgmr.msra.gmra.mrb[28].mxu0 %vm1437_vm2, %v1897_v49 }
 0x4c5   : > { %3179 = vmatprep.mubr.msk.bf16.mxu0 %vm3423_vm1, %v3422_v9 }
 0x4e5   : > { %v1871_v55 = vpop.xlane.xlu0 %1870 }
 0x4e6   : > { %3342 = vrcp.f32 %v1871_v55 }
 0x4e9   : > { %v1136_v63 = vpop.permute.xlu0 %1135 }
 0x4ea   : > { %v1225_v0 = vcombine.low %v1136_v63, %v1144_v51  ;;  %v1226_v2 = vcombine.high %v1136_v63, %v1144_v51 }
 0x4ec   : > { %v1233_v61 = vrot.slane %v1225_v0, %v3618_v57  ;;  %v1240_v3 = vrot.slane %v1226_v2, %v3618_v57 }
 0x4ee   : > { %v1257_v43 = vcombine.low %v1233_v61, %v1249_v60  ;;  %v1258_v42 = vcombine.high %v1233_v61, %v1249_v60  ;;  %v1273_v59 = vcombine.low %v1240_v3, %v1256_v22  ;;  %v1274_v62 = vcombine.high %v1240_v3, %v1256_v22 }
 0x4f0   : > { %v1265_v4 = vrot.slane %v1257_v43, %v3628_v1  ;;  %v1272_v5 = vrot.slane %v1258_v42, %v3628_v1  ;;  %v1281_v8 = vrot.slane %v1273_v59, %v3628_v1  ;;  %v1288_v38 = vrot.slane %v1274_v62, %v3628_v1  ;;  %v3343_v33 = vpop.eup %3342 }
 0x4f1   : > { %v1877_v20 = vpop.xlane.xlu1 %1876  ;;  %v1891_v35 = vmul.f32 %v3343_v33, %v3813_v52 }
 0x4f2   : > { %v1361_v10 = vcombine.low %v1265_v4, %v1272_v5  ;;  %v2994_v6 = vcombine.high %v1265_v4, %v1272_v5  ;;  %v1377_v7 = vcombine.low %v1281_v8, %v1288_v38  ;;  %v2995_v15 = vcombine.high %v1281_v8, %v1288_v38 }
 0x4f3   : > { %3344 = vrcp.f32 %v1877_v20  ;;  %v1899_v13 = vpack.c.bf16 %v1891_v35, %v1891_v35 }
 0x4f4   : > { %v1368_v44 = vrot.slane %v1361_v10, %v3618_v57  ;;  %v1376_v16 = vrot.slane %v2994_v6, %v3618_v57  ;;  %v1384_v14 = vrot.slane %v1377_v7, %v3618_v57  ;;  %v1392_v17 = vrot.slane %v2995_v15, %v3618_v57 }
 0x4f6   : > { %v1393_v21 = vcombine.low %v1368_v44, %v1376_v16  ;;  %v1409_v23 = vcombine.low %v1384_v14, %v1392_v17  ;;  %v1394_v24 = vcombine.high %v1368_v44, %v1376_v16  ;;  %v1410_v25 = vcombine.high %v1384_v14, %v1392_v17 }
 0x4f8   : > { %v1401_v29 = vrot.slane %v1393_v21, %v3628_v1  ;;  %v1417_v30 = vrot.slane %v1409_v23, %v3628_v1  ;;  %v1408_v31 = vrot.slane %v1394_v24, %v3628_v1  ;;  %v1424_v32 = vrot.slane %v1410_v25, %v3628_v1 }
 0x4fa   : > { %v1425_v40 = vcombine.low %v1401_v29, %v1417_v30  ;;  %v1426_v46 = vcombine.high %v1401_v29, %v1417_v30  ;;  %v1427_v34 = vcombine.low %v1408_v31, %v1424_v32  ;;  %v1428_v37 = vcombine.high %v1408_v31, %v1424_v32 }
 0x4fc   : > { %v1433_v45 = vpack.c.bf16 %v1425_v40, %v1425_v40  ;;  %v1434_v36 = vpack.c.bf16 %v1426_v46, %v1426_v46  ;;  %v1435_v47 = vpack.c.bf16 %v1427_v34, %v1427_v34  ;;  %v1436_v41 = vpack.c.bf16 %v1428_v37, %v1428_v37 }
 0x4fd   : > { %v3345_v18 = vpop.eup %3344 }
 0x4fe   : > { %v2091_v12 = vsel %vm1905_vm3, %v1433_v45, 0  ;;  %v2137_v39 = vsel %vm1905_vm3, %v1434_v36, 0  ;;  %v2183_v19 = vsel %vm1905_vm3, %v1435_v47, 0  ;;  %v2229_v52 = vsel %vm1905_vm3, %v1436_v41, 0 }
 0x4ff   : > { %3172 = vmatpush3.bf16.msra.mxu1 %v2091_v12  ;;  %3178 = vmatpush3.bf16.msra.mxu0 %v2137_v39  ;;  %v1893_v49 = vmul.f32 %v3345_v18, %v3829_v11 }
 0x500   : > { %3183 = vmatprep.subr.bf16.mxu1 %v3422_v9  ;;  %3189 = vmatprep.subr.bf16.mxu0 %v3422_v9 }
 0x501   : > { %v1901_v50 = vpack.c.bf16 %v1893_v49, %v1893_v49 }
 0x502   : > { %3174 = vmatmul.mubr.msk.bf16.vlgmr.msra.gmra.mrb[20].mxu1 %vm1437_vm2, %v1898_v48  ;;  %3180 = vmatmul.mubr.msk.bf16.vlgmr.msra.gmra.mrb[32].mxu0 %vm1437_vm2, %v1899_v13 }
 0x503   : > { %3184 = vmatpush3.bf16.msra.mxu1 %v2183_v19  ;;  %3190 = vmatpush3.bf16.msra.mxu0 %v2229_v52 }
 0x504   : > { %3191 = vmatprep.mubr.msk.bf16.mxu0 %vm3423_vm1, %v3422_v9  ;;  %3185 = vmatprep.mubr.msk.bf16.mxu1 %vm3423_vm1, %v3422_v9 }
 0x505   : > { %3195 = vmatprep.subr.bf16.mxu1 %v3422_v9  ;;  %3203 = vmatprep.subr.bf16.mxu0 %v3422_v9 }
 0x50a   : > { %3192 = vmatmul.mubr.msk.bf16.vlgmr.msra.gmra.mrb[36].mxu0 %vm1437_vm2, %v1901_v50 }
 0x50b   : > { %3207 = vmatprep.mubr.msk.bf16.mxu0 %vm3423_vm1, %v3422_v9 }
 0x51a   : > { %v1874_v51 = vpop.xlane.xlu0 %1873 }
 0x51b   : > { %3346 = vrcp.f32 %v1874_v51 }
 0x525   : > { %v3347_v54 = vpop.eup %3346 }
 0x526   : > { %v1892_v11 = vmul.f32 %v3347_v54, %v3841_v28 }
 0x528   : > { %v1900_v53 = vpack.c.bf16 %v1892_v11, %v1892_v11 }
 0x52a   : > { %3186 = vmatmul.mubr.msk.bf16.vlgmr.msra.gmra.mrb[24].mxu1 %vm1437_vm2, %v1900_v53 }
 0x52b   : > { %3199 = vmatprep.mubr.msk.bf16.mxu1 %vm3423_vm1, %v3422_v9 }
 0x587   : > { %v1943_v55 = vpop.f32.mrb[12].mxu1 }
 0x588   : > { %v3151_v56 = vpop.f32.mrb[13].mxu1 }
 0x589   : > { %v1946_v58 = vpop.f32.mrb[14].mxu1 }
 0x58a   : > { %v3152_v63 = vpop.f32.mrb[15].mxu1 }
 0x58f   : > { %v1989_v0 = vpop.f32.mrb[24].mxu0  ;;  %v2035_v2 = vpop.f32.mrb[16].mxu1 }
 0x590   : > { %v2271_v60 = vcombine.low %v1943_v55, %v2035_v2  ;;  %v2272_v22 = vcombine.high %v1943_v55, %v2035_v2  ;;  %v3157_v61 = vpop.f32.mrb[25].mxu0  ;;  %v3163_v3 = vpop.f32.mrb[17].mxu1 }
 0x591   : > { %v1992_v43 = vpop.f32.mrb[26].mxu0  ;;  %v2038_v42 = vpop.f32.mrb[18].mxu1 }
 0x592   : > { %v3158_v59 = vpop.f32.mrb[27].mxu0  ;;  %v3164_v28 = vpop.f32.mrb[19].mxu1  ;;  %v2279_v10 = vrot.slane %v2271_v60, %v3618_v57  ;;  %v2286_v6 = vrot.slane %v2272_v22, %v3618_v57 }
 0x597   : > { %v2081_v62 = vpop.f32.mrb[28].mxu0 }
 0x598   : > { %v2287_v4 = vcombine.low %v1989_v0, %v2081_v62  ;;  %v2288_v5 = vcombine.high %v1989_v0, %v2081_v62  ;;  %v3169_v8 = vpop.f32.mrb[29].mxu0 }
 0x599   : > { %v2084_v38 = vpop.f32.mrb[30].mxu0 }
 0x59a   : > { %v2295_v7 = vrot.slane %v2287_v4, %v3618_v57  ;;  %v2302_v15 = vrot.slane %v2288_v5, %v3618_v57  ;;  %v3170_v44 = vpop.f32.mrb[31].mxu0 }
 0x59c   : > { %v2303_v16 = vcombine.low %v2279_v10, %v2295_v7  ;;  %v2304_v14 = vcombine.high %v2279_v10, %v2295_v7  ;;  %v2319_v17 = vcombine.low %v2286_v6, %v2302_v15  ;;  %v2320_v20 = vcombine.high %v2286_v6, %v2302_v15 }
 0x59e   : > { %v2311_v21 = vrot.slane %v2303_v16, %v3628_v1  ;;  %v2318_v23 = vrot.slane %v2304_v14, %v3628_v1  ;;  %v2327_v24 = vrot.slane %v2319_v17, %v3628_v1  ;;  %v2334_v25 = vrot.slane %v2320_v20, %v3628_v1  ;;  %v3300_v20 = vld [vmem:[%s4101_s4] sm:$0xff]  }
 0x59f   : > { %3196 = vmatpush3.bf16.msra.mxu1 %v3300_v20 }
 0x5a0   : > { %v2407_v27 = vcombine.low %v2311_v21, %v2318_v23  ;;  %v3012_v29 = vcombine.high %v2311_v21, %v2318_v23  ;;  %v2423_v30 = vcombine.low %v2327_v24, %v2334_v25  ;;  %v3013_v31 = vcombine.high %v2327_v24, %v2334_v25  ;;  %3197 = vmatprep.subr.bf16.mxu1 %v3422_v9 }
 0x5a2   : > { %v2414_v32 = vrot.slane %v2407_v27, %v3618_v57  ;;  %v2422_v33 = vrot.slane %v3012_v29, %v3618_v57  ;;  %v2430_v40 = vrot.slane %v2423_v30, %v3618_v57  ;;  %v2438_v46 = vrot.slane %v3013_v31, %v3618_v57 }
 0x5a4   : > { %v2440_v34 = vcombine.high %v2414_v32, %v2422_v33  ;;  %v2456_v37 = vcombine.high %v2430_v40, %v2438_v46  ;;  %v2439_v26 = vcombine.low %v2414_v32, %v2422_v33  ;;  %v2455_v35 = vcombine.low %v2430_v40, %v2438_v46  ;;  %v3301_v32 = vld [vmem:[%s4101_s4 + $0x8] sm:$0xff]  }
 0x5a5   : > { %3198 = vmatpush3.bf16.msra.mxu1 %v3301_v32 }
 0x5a6   : > { %v3918_v45 = vrot.slane %v2440_v34, %v3628_v1  ;;  %v3921_v36 = vrot.slane %v2456_v37, %v3628_v1  ;;  %v3924_v12 = vrot.slane %v2439_v26, %v3628_v1  ;;  %v3927_v39 = vrot.slane %v2455_v35, %v3628_v1  ;;  %3211 = vmatprep.subr.bf16.mxu1 %v3422_v9 }
 0x5a8   : > { %v2473_v47 = vcombine.low %v3918_v45, %v3921_v36  ;;  %v2471_v41 = vcombine.low %v3924_v12, %v3927_v39  ;;  %v2472_v48 = vcombine.high %v3924_v12, %v3927_v39  ;;  %v2474_v13 = vcombine.high %v3918_v45, %v3921_v36  ;;  %v3016_v12 = vld [vmem:[%s4102_s5] ss:$0 sm:$0xff] }
 0x5d5   : > { %v2127_v18 = vpop.f32.mrb[20].mxu1  ;;  %v2173_v19 = vpop.f32.mrb[32].mxu0 }
 0x5d6   : > { %v3175_v52 = vpop.f32.mrb[21].mxu1  ;;  %v3181_v49 = vpop.f32.mrb[33].mxu0 }
 0x5d7   : > { %v2130_v50 = vpop.f32.mrb[22].mxu1  ;;  %v2176_v51 = vpop.f32.mrb[34].mxu0 }
 0x5d8   : > { %v3176_v54 = vpop.f32.mrb[23].mxu1  ;;  %v3182_v11 = vpop.f32.mrb[35].mxu0 }
 0x5dd   : > { %v2265_v53 = vpop.f32.mrb[36].mxu0 }
 0x5de   : > { %v2355_v55 = vcombine.low %v2173_v19, %v2265_v53  ;;  %v2356_v56 = vcombine.high %v2173_v19, %v2265_v53  ;;  %v3193_v58 = vpop.f32.mrb[37].mxu0 }
 0x5df   : > { %v2268_v63 = vpop.f32.mrb[38].mxu0 }
 0x5e0   : > { %v3194_v0 = vpop.f32.mrb[39].mxu0  ;;  %v2363_v43 = vrot.slane %v2355_v55, %v3618_v57  ;;  %v2370_v42 = vrot.slane %v2356_v56, %v3618_v57 }
 0x5fd   : > { %v2219_v2 = vpop.f32.mrb[24].mxu1 }
 0x5fe   : > { %v2339_v60 = vcombine.low %v2127_v18, %v2219_v2  ;;  %v2340_v22 = vcombine.high %v2127_v18, %v2219_v2  ;;  %v3187_v61 = vpop.f32.mrb[25].mxu1 }
 0x5ff   : > { %v2222_v3 = vpop.f32.mrb[26].mxu1 }
 0x600   : > { %v2347_v59 = vrot.slane %v2339_v60, %v3618_v57  ;;  %v2354_v28 = vrot.slane %v2340_v22, %v3618_v57  ;;  %v3188_v62 = vpop.f32.mrb[27].mxu1  ;;  %v3356_v60 = vld [vmem:[%s3553_s19] sm:$0xff] }
 0x602   : > { %v2371_v4 = vcombine.low %v2347_v59, %v2363_v43  ;;  %v2372_v5 = vcombine.high %v2347_v59, %v2363_v43  ;;  %v2387_v8 = vcombine.low %v2354_v28, %v2370_v42  ;;  %v2388_v38 = vcombine.high %v2354_v28, %v2370_v42  ;;  %v3357_v43 = vld [vmem:[%s3553_s19 + $0x8] sm:$0xff]  ;;  %s3040_s19 = sshll.u32 %s3522_s25, 8  ;;  %s4055_s25 = scalar_lea.sflag [#allocation3], %s405_s18 }
 0x604   : > { %v2379_v10 = vrot.slane %v2371_v4, %v3628_v1  ;;  %v2386_v6 = vrot.slane %v2372_v5, %v3628_v1  ;;  %v2395_v7 = vrot.slane %v2387_v8, %v3628_v1  ;;  %v2402_v15 = vrot.slane %v2388_v38, %v3628_v1  ;;  %v3302_v38 = vld [vmem:[%s4105_s8] sm:$0xff]  }
 0x605   : > { %3204 = vmatpush3.bf16.msra.mxu0 %v3302_v38 }
 0x606   : > { %v2475_v44 = vcombine.low %v2379_v10, %v2386_v6  ;;  %v3014_v16 = vcombine.high %v2379_v10, %v2386_v6  ;;  %v2491_v14 = vcombine.low %v2395_v7, %v2402_v15  ;;  %v3015_v17 = vcombine.high %v2395_v7, %v2402_v15  ;;  %v3303_v10 = vld [vmem:[%s4105_s8 + $0x8] sm:$0xff]   ;;  %3205 = vmatprep.subr.bf16.mxu0 %v3422_v9 }
 0x608   : > { %v2482_v21 = vrot.slane %v2475_v44, %v3618_v57  ;;  %v2490_v23 = vrot.slane %v3014_v16, %v3618_v57  ;;  %v2498_v24 = vrot.slane %v2491_v14, %v3618_v57  ;;  %v2506_v25 = vrot.slane %v3015_v17, %v3618_v57 }
 0x609   : > { %3206 = vmatpush3.bf16.msra.mxu0 %v3303_v10  ;;  %v3026_v10 = vld [vmem:[%s4108_s11] ss:$0 sm:$0xff] }
 0x60a   : > { %v2508_v27 = vcombine.high %v2482_v21, %v2490_v23  ;;  %v2524_v29 = vcombine.high %v2498_v24, %v2506_v25  ;;  %v2507_v30 = vcombine.low %v2482_v21, %v2490_v23  ;;  %v2523_v31 = vcombine.low %v2498_v24, %v2506_v25 }
 0x60c   : > { %v2522_v33 = vrot.slane %v2508_v27, %v3628_v1  ;;  %v2538_v40 = vrot.slane %v2524_v29, %v3628_v1  ;;  %v2515_v46 = vrot.slane %v2507_v30, %v3628_v1  ;;  %v2531_v34 = vrot.slane %v2523_v31, %v3628_v1 }
 0x60e   : > { %v2541_v57 = vcombine.low %v2522_v33, %v2538_v40  ;;  %v2540_v37 = vcombine.high %v2515_v46, %v2531_v34  ;;  %v2539_v26 = vcombine.low %v2515_v46, %v2531_v34  ;;  %v2542_v35 = vcombine.high %v2522_v33, %v2538_v40  ;;  %v3020_v33 = vld [vmem:[%s4103_s6] ss:$0 sm:$0xff] }
 0x610   : > { %v3288_v45 = vpack.i.bf16 %v2541_v57, %v2473_v47  ;;  %v3283_v36 = vpack.i.bf16 %v2540_v37, %v2472_v48  ;;  %v3293_v18 = vpack.i.bf16 %v2542_v35, %v2474_v13  ;;  %v3021_v37 = vld [vmem:[%s4104_s7] ss:$0 sm:$0xff] }
 0x612   : > { %3289 = vrot.lane.b32.xlu1 %v3288_v45, %s3431_s26  ;;  %3284 = vrot.lane.b32.xlu0 %v3283_v36, %s4110_s28  ;;  %s4052_s26 = scalar_lea.hbm %s4109_s12, %s3040_s19  ;;  %s3434_s28 = smov [#allocation2]  }
 0x613   : > { %s3362_s0 = sshll.u32 %s3434_s28, 4  ;;  %s3363_s0 = int_to_ptr.vmem [resolvable:$false] %s3362_s0 }
 0x614   : > { %s3364_s1 = scalar_lea.vmem %s3363_s0, 512  ;;  %p3365_p0 = scmp.lt.s32.totalorder %s4045_s16, %s3363_s0 }
 0x616   : > { %3294 = vrot.lane.b32.xlu0 %v3293_v18, %s3433_s29  ;;  %v3304_v18 = vld [vmem:[%s4107_s10] sm:$0xff]   ;;  %s3358_s29 = scalar_lea.vmem %s4045_s16, 256 }
 0x617   : > { %p3359_p11 = scmp.ne.s32.totalorder %s4045_s16, %s3358_s29  ;;  %p3366_p1 = scmp.lt.s32.totalorder %s3364_s1, %s3358_s29 }
 0x619   : > { %p3360_p12 = pnand %p3359_p11, %p3539_p5  ;;  %p3367_p2 = por %p3366_p1, %p3365_p0 }
 0x61b   : > { %p3361_p13 = pneg %p3360_p12 }
 0x61d   : > { %p3368_p3 = pnand %p3367_p2, %p3361_p13 }
 0x684   : > { %v3290_v19 = vpop.permute.xlu1 %3289  ;;  %v3285_v52 = vpop.permute.xlu0 %3284 }
 0x685   : > { %v3287_v1 = vunpack.i.h.bf16 %v3285_v52  ;;  %v3286_v49 = vunpack.i.l.bf16 %v3285_v52  ;;  %v3292_v50 = vunpack.i.h.bf16 %v3290_v19  ;;  %v3291_v51 = vunpack.i.l.bf16 %v3290_v19  ;;  %v3305_v19 = vld [vmem:[%s4107_s10 + $0x8] sm:$0xff]   ;;  %v3306_v52 = vld [vmem:[%s4107_s10 + $0x10] sm:$0xff]  }
 0x687   : > { %v2567_v47 = vsel %vm1437_vm2, %v2471_v41, %v3286_v49  ;;  %v2568_v48 = vsel %vm1437_vm2, %v2539_v26, %v3287_v1  ;;  %v3307_v1 = vld [vmem:[%s4107_s10 + $0x18] sm:$0xff]   ;;  %v3308_v49 = vld [vmem:[%s4107_s10 + $0x20] sm:$0xff]  }
 0x688   : > { %v3295_v13 = vpop.permute.xlu0 %3294  ;;  %v2570_v53 = vsel %vm2569_vm4, %v2567_v47, %v3291_v51  ;;  %v2571_v55 = vsel %vm2569_vm4, %v2568_v48, %v3292_v50  ;;  %v3309_v50 = vld [vmem:[%s4107_s10 + $0x28] sm:$0xff]   ;;  %v3310_v51 = vld [vmem:[%s4107_s10 + $0x30] sm:$0xff]   ;;  %v3311_v47 = vld [vmem:[%s4107_s10 + $0x38] sm:$0xff]  }
 0x689   : > { %v3297_v54 = vunpack.i.h.bf16 %v3295_v13  ;;  %v3296_v11 = vunpack.i.l.bf16 %v3295_v13  ;;  %v3022_v48 = vld [vmem:[%s4106_s9] ss:$0 sm:$0xff] }
 0x68b   : > { %v2573_v56 = vsel %vm2572_vm5, %v2570_v53, %v3296_v11  ;;  %v2574_v58 = vsel %vm2572_vm5, %v2571_v55, %v3297_v54 }
 0x68c   : > { %v2575_v63 = vpack.c.bf16 %v2574_v58, %v2573_v56 }
 0x68e   : > { %3200 = vmatmul.mubr.msk.bf16.vlgmr.msra.gmra.mrb[28].mxu1 %vm418_vm0, %v2575_v63 }
 0x68f   : > { %3227 = vmatprep.mubr.msk.bf16.mxu1 %vm3423_vm1, %v3422_v9  ;;  %3212 = vmatpush3.bf16.msra.mxu1 %v3304_v18 }
 0x690   : > { %3213 = vmatprep.subr.bf16.mxu1 %v3422_v9 }
 0x693   : > { %3214 = vmatpush3.bf16.msra.mxu1 %v3305_v19 }
 0x694   : > { %3215 = vmatprep.subr.bf16.mxu1 %v3422_v9 }
 0x697   : > { %3216 = vmatpush3.bf16.msra.mxu1 %v3306_v52 }
 0x698   : > { %3217 = vmatprep.subr.bf16.mxu1 %v3422_v9 }
 0x69b   : > { %3218 = vmatpush3.bf16.msra.mxu1 %v3307_v1 }
 0x69c   : > { %3219 = vmatprep.subr.bf16.mxu1 %v3422_v9 }
 0x69f   : > { %3220 = vmatpush3.bf16.msra.mxu1 %v3308_v49 }
 0x6a0   : > { %3221 = vmatprep.subr.bf16.mxu1 %v3422_v9 }
 0x6a3   : > { %3222 = vmatpush3.bf16.msra.mxu1 %v3309_v50 }
 0x6a4   : > { %3223 = vmatprep.subr.bf16.mxu1 %v3422_v9 }
 0x6a7   : > { %3224 = vmatpush3.bf16.msra.mxu1 %v3310_v51 }
 0x6a8   : > { %3225 = vmatprep.subr.bf16.mxu1 %v3422_v9 }
 0x6ab   : > { %3226 = vmatpush3.bf16.msra.mxu1 %v3311_v47 }
 0x761   : > { %v2636_v39 = vpop.f32.mrb[28].mxu1 }
 0x762   : > { %v2637_v41 = vadd.f32 %v3016_v12, %v2636_v39  ;;  %v3201_v0 = vpop.f32.mrb[29].mxu1 }
 0x763   : > { %v2639_v2 = vpop.f32.mrb[30].mxu1 }
 0x764   : > { %v3974_v22 = vadd.f32 %v3356_v60, %v2637_v41  ;;  %v2640_v61 = vadd.f32 %v3016_v12, %v2639_v2  ;;  %v3202_v3 = vpop.f32.mrb[31].mxu1 }
 0x766   : > { %v3977_v42 = vadd.f32 %v3357_v43, %v2640_v61  ;;  %v2645_v59 = vsel %vm418_vm0, %v3974_v22, 0.0  ;;  %v2653_v62 = vmul.f32 %v3974_v22, %v3974_v22 }
 0x767   : > { %2646 = vadd.xlane.f32.xlu1 %v2645_v59 }
 0x768   : > { %v2648_v28 = vsel %vm418_vm0, %v3977_v42, 0.0  ;;  %v2655_v4 = vsel %vm418_vm0, %v2653_v62, 0.0  ;;  %v2654_v5 = vmul.f32 %v3977_v42, %v3977_v42 }
 0x769   : > { %2649 = vadd.xlane.f32.xlu0 %v2648_v28 }
 0x76a   : > { %v2658_v8 = vsel %vm418_vm0, %v2654_v5, 0.0 }
 0x76d   : > { %2656 = vadd.xlane.f32.xlu0 %v2655_v4 }
 0x771   : > { %2659 = vadd.xlane.f32.xlu0 %v2658_v8 }
 0x7f4   : > { %v2647_v6 = vpop.xlane.xlu1 %2646 }
 0x7f5   : > { %v2651_v15 = vmul.f32 0.03125, %v2647_v6 }
 0x7f6   : > { %v2650_v7 = vpop.xlane.xlu0 %2649 }
 0x7f7   : > { %v2663_v16 = vmul.f32 %v2651_v15, %v2651_v15  ;;  %v2652_v14 = vmul.f32 0.03125, %v2650_v7  ;;  %v2667_v30 = vsub.f32 %v3974_v22, %v2651_v15 }
 0x7f9   : > { %v2664_v23 = vmul.f32 %v2652_v14, %v2652_v14  ;;  %v2668_v40 = vsub.f32 %v3977_v42, %v2652_v14 }
 0x7fa   : > { %v2657_v44 = vpop.xlane.xlu0 %2656 }
 0x7fb   : > { %v2661_v17 = vmul.f32 0.03125, %v2657_v44 }
 0x7fd   : > { %v2665_v20 = vsub.f32 %v2661_v17, %v2663_v16 }
 0x7fe   : > { %v2660_v21 = vpop.xlane.xlu0 %2659 }
 0x7ff   : > { %v2669_v24 = vadd.f32 1e-05, %v2665_v20  ;;  %v2662_v25 = vmul.f32 0.03125, %v2660_v21 }
 0x801   : > { %3348 = vrsqrt.f32 %v2669_v24  ;;  %v2666_v27 = vsub.f32 %v2662_v25, %v2664_v23 }
 0x803   : > { %v2670_v29 = vadd.f32 1e-05, %v2666_v27 }
 0x805   : > { %3350 = vrsqrt.f32 %v2670_v29 }
 0x80b   : > { %v3349_v31 = vpop.eup %3348 }
 0x80c   : > { %v2673_v32 = vmul.f32 %v3349_v31, %v2667_v30 }
 0x80e   : > { %v2682_v57 = vmul.f32 %v3020_v33, %v2673_v32 }
 0x80f   : > { %v3351_v46 = vpop.eup %3350 }
 0x810   : > { %v2674_v34 = vmul.f32 %v3351_v46, %v2668_v40  ;;  %v2691_v35 = vadd.f32 %v3021_v37, %v2682_v57 }
 0x812   : > { %v2683_v26 = vmul.f32 %v3020_v33, %v2674_v34 }
 0x814   : > { %v2692_v45 = vadd.f32 %v3021_v37, %v2683_v26 }
 0x816   : > { %v2693_v36 = vpack.c.bf16 %v2692_v45, %v2691_v35 }
 0x818   : > { %3208 = vmatmul.mubr.msk.bf16.vlgmr.msra.gmra.mrb[40].mxu0 %vm418_vm0, %v2693_v36 }
 0x8eb   : > { %v2754_v13 = vpop.f32.mrb[40].mxu0 }
 0x8ec   : > { %v2755_v54 = vadd.f32 %v3022_v48, %v2754_v13  ;;  %v3209_v11 = vpop.f32.mrb[41].mxu0 }
 0x8ed   : > { %v2757_v53 = vpop.f32.mrb[42].mxu0 }
 0x8ee   : > { %v2761_v55 = vmul.f32 %v2755_v54, %v2755_v54  ;;  %v2758_v56 = vadd.f32 %v3022_v48, %v2757_v53  ;;  %v3210_v58 = vpop.f32.mrb[43].mxu0 }
 0x8f0   : > { %v2763_v63 = vmul.f32 %v2761_v55, %v2755_v54  ;;  %v2762_v12 = vmul.f32 %v2758_v56, %v2758_v56 }
 0x8f2   : > { %v2765_v39 = vmul.f32 0.044715, %v2763_v63  ;;  %v2764_v9 = vmul.f32 %v2762_v12, %v2758_v56 }
 0x8f4   : > { %v2767_v41 = vadd.f32 %v2765_v39, %v2755_v54  ;;  %v2766_v0 = vmul.f32 0.044715, %v2764_v9 }
 0x8f6   : > { %v2769_v2 = vmul.f32 0.7978846, %v2767_v41  ;;  %v2768_v60 = vadd.f32 %v2766_v0, %v2758_v56 }
 0x8f8   : > { %3352 = vtanh.f32 %v2769_v2  ;;  %v2770_v61 = vmul.f32 0.7978846, %v2768_v60 }
 0x8fa   : > { %3354 = vtanh.f32 %v2770_v61 }
 0x902   : > { %v3353_v3 = vpop.eup %3352 }
 0x903   : > { %v2773_v43 = vadd.f32 1.0, %v3353_v3 }
 0x904   : > { %v3355_v59 = vpop.eup %3354 }
 0x905   : > { %v2775_v28 = vmul.f32 0.5, %v2773_v43  ;;  %v2774_v62 = vadd.f32 1.0, %v3355_v59 }
 0x907   : > { %v2776_v4 = vmul.f32 0.5, %v2774_v62  ;;  %v2777_v5 = vmul.f32 %v2775_v28, %v2755_v54 }
 0x909   : > { %v2778_v8 = vmul.f32 %v2776_v4, %v2758_v56 }
 0x90b   : > { %v2779_v38 = vpack.c.bf16 %v2778_v8, %v2777_v5 }
 0x90d   : > { %3228 = vmatmul.mubr.bf16.vlgmr.msra.gmra.mrb[32].mxu1 %v2779_v38 }
 0x9e0   : > { %v2885_v6 = vpop.f32.mrb[32].mxu1 }
 0x9e1   : > { %v2886_v7 = vadd.f32 %v3026_v10, %v2885_v6  ;;  %v3229_v15 = vpop.f32.mrb[33].mxu1 }
 0x9e2   : > { %v2888_v44 = vpop.f32.mrb[34].mxu1 }
 0x9e3   : > { %v2892_v16 = vadd.f32 %v2886_v7, %v3974_v22  ;;  %v2889_v14 = vadd.f32 %v3026_v10, %v2888_v44  ;;  %v3230_v17 = vpop.f32.mrb[35].mxu1 }
 0x9e5   : > { %2894 = vst.msk [vmem:[%s407_s15] sm:$0xff] %vm418_vm0, %v2892_v16  ;;  %v2893_v20 = vadd.f32 %v2889_v14, %v3977_v42 }
 0x9e7   : > { %2895 = vst.msk [vmem:[%s407_s15 + $0x8] sm:$0xff] %vm418_vm0, %v2893_v20 }
 0x9e8   : > { %3371 = shalt.err (!%p3368_p3)
}
 0x9e9   : > { %s3372_s18 = scalar_lea.hbm %s4052_s26, 256  ;;  %s3376_s28 = scalar_lea.hbm %s4109_s12, 512 }
 0x9ea   : > { %p3373_p4 = scmp.ne.s32.totalorder %s4052_s26, %s3372_s18  ;;  %p3377_p9 = scmp.lt.u32.totalorder %s4052_s26, %s4109_s12 }
 0x9eb   : > { %p3378_p10 = scmp.lt.u32.totalorder %s3376_s28, %s3372_s18  ;;  %p3380_p12 = scmp.lt.u32.totalorder %s3372_s18, %s4052_s26 }
 0x9ec   : > { %p3374_p7 = pnand %p3373_p4, %p3539_p5 }
 0x9ed   : > { %p3379_p11 = por %p3378_p10, %p3377_p9 }
 0x9ee   : > { %p3375_p8 = pneg %p3374_p7 }
 0x9ef   : > { %p3381_p13 = por %p3380_p12, %p3379_p11 }
 0x9f1   : > { %p3382_p0 = pnand %p3381_p13, %p3375_p8 }
 0x9f3   : > { %3385 = shalt.err (!%p3382_p0)
}
 0x9f4   : > { %s3435_s1 = smov 128   ;;  %s4117_s20 = smov 8  }
 0x9f5   : > { %3231 = dma.vmem_to_hbm [thread:$0]  (%p3539_p5), %s4045_s16, 256, %s4052_s26, %s4055_s25, %s3435_s1, %s3435_s1, %s4117_s20  }
 0x9f6 PF: > { %p3237_p1 = scmp.ge.s32.totalorder %s3420_s24, 2  ;;  %s2925_s29 = sand.u32 1, %s3408_s21  }
 0x9f7   : > { %s2926_s18 = scalar_lea.sflag [#allocation3], %s2925_s29 }
 0x9f8   : > { %p3234_p2 = pnand %p3237_p1, %p3543_p6 }
 0x9fa   : > { %3403 = dma.done.wait (!%p3234_p2), %s2926_s18, 256  }
 0x9fb   : > { %3405 = vsyncadd (!%p3234_p2), %s2926_s18, 4294967040  ;;  %p22_p3 = scmp.ge.s32.totalorder %s3526_s27, 4   ;;  %s4118_s21 = smov %s3412_s22 }
 0x9fc   : > { %s4119_s22 = smov %s3416_s23  ;;  %s4120_s23 = smov %s3537_s30 }
 0x9fd   : > { %s4121_s24 = smov %s3526_s27  ;;  %24 = sbr.rel (!%p22_p3) target bundleno = 6 (0x6), region = 103 }
 0xa04   :  { %2931 = vsyncpa [#allocation3], 1 }
 0xa05   :  { %2933 = vsyncpa [#allocation3 + $0x1], 1 }

// kernel: tpu_custom_call.1
= control target key start
LH: loop header
LB: loop body
LE: loop exit
PB: predicated region body
PF: predicated region fallthrough
CT: control target
= control target key end

     0   :  { %s4097_s0 = inlined_call_operand.vmem [shape: f32[4,8,32], index: 0, kind: input, shape index: {}]   ;;  %s4098_s1 = inlined_call_operand.vmem [shape: f32[1,32], index: 1, kind: input, shape index: {}]   ;;  %s4099_s2 = inlined_call_operand.vmem [shape: f32[1,32], index: 2, kind: input, shape index: {}]   ;;  %s4100_s3 = inlined_call_operand.vmem [shape: bf16[32,96], index: 3, kind: input, shape index: {}]   ;;  %s4101_s4 = inlined_call_operand.vmem [shape: bf16[32,32], index: 4, kind: input, shape index: {}]   ;;  %s4102_s5 = inlined_call_operand.vmem [shape: f32[1,32], index: 5, kind: input, shape index: {}]   ;;  %s4103_s6 = inlined_call_operand.vmem [shape: f32[1,32], index: 6, kind: input, shape index: {}]   ;;  %s4104_s7 = inlined_call_operand.vmem [shape: f32[1,32], index: 7, kind: input, shape index: {}]   ;;  %s4105_s8 = inlined_call_operand.vmem [shape: bf16[32,128], index: 8, kind: input, shape index: {}]   ;;  %s4106_s9 = inlined_call_operand.vmem [shape: f32[1,128], index: 9, kind: input, shape index: {}]   ;;  %s4107_s10 = inlined_call_operand.vmem [shape: bf16[128,32], index: 10, kind: input, shape index: {}]   ;;  %s4108_s11 = inlined_call_operand.vmem [shape: f32[1,32], index: 11, kind: input, shape index: {}]   ;;  %s4109_s12 = inlined_call_operand.hbm [shape: f32[4,8,32], index: 12, kind: output, shape index: {}]  }
   0x1   :  { %4111 = sst [smem:[#allocation5_spill]] %s4097_s0 }
   0x2   :  { %4112 = sst [smem:[#allocation6_spill]] %s4098_s1 }
   0x3   :  { %17 = vsyncpa [#allocation3], 0 }
   0x4   :  { %19 = vsyncpa [#allocation3 + $0x1], 0  ;;  %s3501_s21 = smov 0   ;;  %s3503_s22 = smov 0  }
   0x5   :  { %s3505_s23 = smov 0   ;;  %s3507_s24 = smov 0  }
   0x6 LB: > { %s3522_s25 = sadd.s32 4294967295, %s3420_s24   ;;  %s2972_s26 = sadd.s32 4294967294, %s3420_s24   ;;  %s3420_s24 = sphi %s3507_s24, %s4121_s24   ;;  %s3416_s23 = sphi %s3505_s23, %s4120_s23   ;;  %s3412_s22 = sphi %s3503_s22, %s4119_s22   ;;  %s3408_s21 = sphi %s3501_s21, %s4118_s21  }
   0x7   : > { %s3526_s27 = sadd.s32 1, %s3420_s24   ;;  %s289_s28 = sadd.s32 1, %s3416_s23 }
   0x8   : > { %s286_s29 = ssub.s32 %s3420_s24, %s3526_s27  ;;  %p299_p0 = scmp.ne.s32.totalorder %s3416_s23, %s3412_s22 }
   0x9   : > { %p287_p1 = scmp.eq.s32.totalorder %s286_s29, 0  ;;  %p300_p2 = scmp.eq.s32.totalorder %s3522_s25, 1 }
   0xa   : > { %p305_p3 = scmp.ne.s32.totalorder %s3412_s22, %s3408_s21  ;;  %p306_p4 = scmp.eq.s32.totalorder %s2972_s26, 1 }
   0xb   : > { %s3537_s30 = scalar_select %p287_p1, %s3416_s23, %s289_s28  }
   0xc   : > { %p3539_p5 = por %p300_p2, %p299_p0  ;;  %p3543_p6 = por %p306_p4, %p305_p3 }
   0xd   : > { %p2975_p7 = scmp.ge.s32.totalorder %s3420_s24, 1  ;;  %p366_p8 = scmp.lt.s32.totalorder %s3420_s24, 3 }
   0xf   : > { %p367_p9 = pnand %p2975_p7, %p366_p8 }
  0x10   : > { %s2977_s15 = sshll.u32 (!%p367_p9), %s3522_s25, 1  ;;  %vm418_vm0 = vcmask (!%p367_p9), 261120   ;;  %s4115_s0 = sld [smem:[#allocation5_spill]] (!%p367_p9)  ;;  %v3298_v8 = vld [vmem:[%s4100_s3] sm:$0xff] (!%p367_p9)   ;;  %v3422_v9 = vmov (!%p367_p9), 0.0   ;;  %vm3423_vm1 = vmmov (!%p367_p9), 0   ;;  %v554_v50 = vlaneseq (!%p367_p9) }
  0x11   : > { %370 = sbr.rel (%p367_p9) target bundleno = 2550 (0x9f6), region = 68  ;;  %p409_p10 = scmp.lt.s32.totalorder (!%p367_p9), %s2977_s15, 3  ;;  %3091 = vmatprep.subr.bf16.mxu0 (!%p367_p9), %v3422_v9  ;;  %3095 = vmatprep.mubr.msk.bf16.mxu0 (!%p367_p9), %vm3423_vm1, %v3422_v9  ;;  %v3299_v10 = vld [vmem:[%s4100_s3 + $0x8] sm:$0xff] (!%p367_p9)   ;;  %v2980_v33 = vld [vmem:[%s4099_s2] ss:$0 sm:$0xff] (!%p367_p9)  ;;  %vm1437_vm2 = vcmask (!%p367_p9), 64512  }
  0x12   : > { %3092 = vmatpush3.bf16.msra.mxu0 (!%p367_p9), %v3298_v8  ;;  %3111 = vmatprep.subr.bf16.mxu1 (!%p367_p9), %v3422_v9  ;;  %s4116_s1 = sld [smem:[#allocation6_spill]] (!%p367_p9)  ;;  %s3424_s20 = smov (!%p367_p9), 112   ;;  %v3428_v48 = vmov (!%p367_p9), 1983009808   ;;  %v555_v52 = vshrl.u32 (!%p367_p9), %v554_v50, 7  ;;  %vm1905_vm3 = vcmask (!%p367_p9), 1043456  }
  0x13   : > { %3093 = vmatprep.subr.bf16.mxu0 (!%p367_p9), %v3422_v9  ;;  %3113 = vmatprep.mubr.msk.bf16.mxu1 (!%p367_p9), %vm3423_vm1, %v3422_v9  ;;  %s3425_s26 = smov (!%p367_p9), 120   ;;  %s3426_s28 = smov (!%p367_p9), 104   ;;  %v552_v49 = vunpack.c.l.s4 (!%p367_p9), %v3428_v48  ;;  %v3429_v53 = vmov (!%p367_p9), 1934713408   ;;  %vm2569_vm4 = vcmask (!%p367_p9), 130048   ;;  %vm2572_vm5 = vcmask (!%p367_p9), 195584  }
  0x14   : > { %s3427_s29 = smov (!%p367_p9), 96   ;;  %v584_v54 = vunpack.c.l.s4 (!%p367_p9), %v3429_v53  ;;  %s405_s18 = sand.u32 (!%p367_p9), 1, %s3412_s22  }
  0x15   : > { %v553_v51 = vunpack.c.0.s8 (!%p367_p9), %v552_v49 }
  0x16   : > { %3094 = vmatpush3.bf16.msra.mxu0 (!%p367_p9), %v3299_v10  ;;  %v585_v60 = vunpack.c.0.s8 (!%p367_p9), %v584_v54 }
  0x17   : > { %3099 = vmatprep.subr.bf16.mxu0 (!%p367_p9), %v3422_v9  ;;  %v3618_v57 = vsub.s32 (!%p367_p9), %v553_v51, %v555_v52 }
  0x18   : > { %s4123_s15 = smov (!%p409_p10, %s2977_s15), 3  ;;  %v2979_v28 = vld [vmem:[%s4116_s1] ss:$0 sm:$0xff] }
  0x19   : > { %s2978_s16 = sshll.u32 %s4123_s15, 3  ;;  %s3430_s15 = smov 64  }
  0x1a   : > { %s3553_s19 = scalar_lea.vmem %s4115_s0, %s2978_s16 }
  0x1b   : > { %v416_v0 = vld [vmem:[%s3553_s19] sm:$0xff]  ;;  %v417_v1 = vld [vmem:[%s3553_s19 + $0x8] sm:$0xff] }
  0x1c   : > { %v419_v2 = vsel %vm418_vm0, %v416_v0, 0.0  ;;  %v428_v3 = vmul.f32 %v416_v0, %v416_v0  ;;  %v429_v4 = vmul.f32 %v417_v1, %v417_v1  ;;  %v422_v6 = vsel %vm418_vm0, %v417_v1, 0.0 }
  0x1d   : > { %420 = vadd.xlane.f32.xlu0 %v419_v2 }
  0x1e   : > { %v430_v5 = vsel %vm418_vm0, %v428_v3, 0.0  ;;  %v433_v7 = vsel %vm418_vm0, %v429_v4, 0.0 }
  0x1f   : > { %431 = vadd.xlane.f32.xlu1 %v430_v5 }
  0x21   : > { %423 = vadd.xlane.f32.xlu0 %v422_v6 }
  0x23   : > { %434 = vadd.xlane.f32.xlu1 %v433_v7 }
  0xaa   : > { %v421_v11 = vpop.xlane.xlu0 %420 }
  0xab   : > { %v426_v12 = vmul.f32 0.03125, %v421_v11 }
  0xac   : > { %v432_v13 = vpop.xlane.xlu1 %431 }
  0xad   : > { %v438_v14 = vmul.f32 %v426_v12, %v426_v12  ;;  %v436_v15 = vmul.f32 0.03125, %v432_v13  ;;  %v442_v25 = vsub.f32 %v416_v0, %v426_v12 }
  0xae   : > { %v424_v16 = vpop.xlane.xlu0 %423 }
  0xaf   : > { %v440_v17 = vsub.f32 %v436_v15, %v438_v14  ;;  %v427_v18 = vmul.f32 0.03125, %v424_v16 }
  0xb0   : > { %v435_v19 = vpop.xlane.xlu1 %434 }
  0xb1   : > { %v444_v20 = vadd.f32 1e-05, %v440_v17  ;;  %v439_v21 = vmul.f32 %v427_v18, %v427_v18  ;;  %v437_v22 = vmul.f32 0.03125, %v435_v19  ;;  %v443_v29 = vsub.f32 %v417_v1, %v427_v18 }
  0xb2   : > { %v3628_v1 = vsub.s32 %v585_v60, %v555_v52 }
  0xb3   : > { %3312 = vrsqrt.f32 %v444_v20  ;;  %v441_v23 = vsub.f32 %v437_v22, %v439_v21 }
  0xb5   : > { %v445_v24 = vadd.f32 1e-05, %v441_v23 }
  0xb7   : > { %3314 = vrsqrt.f32 %v445_v24 }
  0xbd   : > { %v3313_v26 = vpop.eup %3312 }
  0xbe   : > { %v448_v27 = vmul.f32 %v3313_v26, %v442_v25 }
  0xc0   : > { %v457_v32 = vmul.f32 %v2979_v28, %v448_v27 }
  0xc1   : > { %v3315_v30 = vpop.eup %3314 }
  0xc2   : > { %v449_v31 = vmul.f32 %v3315_v30, %v443_v29  ;;  %v466_v35 = vadd.f32 %v2980_v33, %v457_v32 }
  0xc4   : > { %v458_v34 = vmul.f32 %v2979_v28, %v449_v31 }
  0xc6   : > { %v467_v36 = vadd.f32 %v2980_v33, %v458_v34 }
  0xc8   : > { %v468_v37 = vpack.c.bf16 %v467_v36, %v466_v35 }
  0xca   : > { %3096 = vmatmul.mubr.msk.bf16.vlgmr.msra.gmra.mrb[0].mxu0 %vm418_vm0, %v468_v37 }
  0xcb   : > { %3101 = vmatprep.mubr.msk.bf16.mxu0 %vm3423_vm1, %v3422_v9 }
 0x19d   : > { %v3584_v38 = vpop.f32.mrb[0].mxu0 }
 0x19e   : > { %537 = vrot.lane.b32.xlu1 %v3584_v38, %s3424_s20  ;;  %531 = vrot.lane.b32.xlu0 %v3584_v38, %s3425_s26  ;;  %v3097_v39 = vpop.f32.mrb[1].mxu0 }
 0x19f   : > { %v3588_v40 = vpop.f32.mrb[2].mxu0 }
 0x1a0   : > { %v3098_v41 = vpop.f32.mrb[3].mxu0 }
 0x1a2   : > { %543 = vrot.lane.b32.xlu1 %v3584_v38, %s3426_s28  ;;  %539 = vrot.lane.b32.xlu0 %v3588_v40, %s3424_s20  ;;  %s2976_s20 = sshll.u32 %s405_s18, 4 }
 0x1a6   : > { %829 = vrot.lane.b32.xlu0 %v3584_v38, %s3427_s29  ;;  %533 = vrot.lane.b32.xlu1 %v3588_v40, %s3425_s26  ;;  %s3431_s26 = smov 16  }
 0x1aa   : > { %545 = vrot.lane.b32.xlu1 %v3588_v40, %s3426_s28  ;;  %s4110_s28 = smov 8  }
 0x210   : > { %v3595_v42 = vpop.permute.xlu1 %537  ;;  %v3597_v43 = vpop.permute.xlu0 %531 }
 0x211   : > { %837 = vrot.lane.b32.xlu0 %v3595_v42, %s3427_s29  ;;  %833 = vrot.lane.b32.xlu1 %v3597_v43, %s3427_s29  ;;  %v549_v58 = vcombine.low %v3584_v38, %v3595_v42  ;;  %v550_v59 = vcombine.high %v3584_v38, %v3595_v42 }
 0x213   : > { %v557_v63 = vrot.slane %v549_v58, %v3618_v57  ;;  %v564_v0 = vrot.slane %v550_v59, %v3618_v57 }
 0x214   : > { %v3601_v44 = vpop.permute.xlu1 %543  ;;  %v3605_v45 = vpop.permute.xlu0 %539 }
 0x215   : > { %831 = vrot.lane.b32.xlu0 %v3588_v40, %s3427_s29  ;;  %841 = vrot.lane.b32.xlu1 %v3601_v44, %s3427_s29  ;;  %v565_v55 = vcombine.low %v3597_v43, %v3601_v44  ;;  %v566_v56 = vcombine.high %v3597_v43, %v3601_v44  ;;  %v617_v17 = vcombine.low %v3588_v40, %v3605_v45 }
 0x216   : > { %v618_v20 = vcombine.high %v3588_v40, %v3605_v45 }
 0x217   : > { %v573_v61 = vrot.slane %v565_v55, %v3618_v57  ;;  %v580_v62 = vrot.slane %v566_v56, %v3618_v57  ;;  %v625_v27 = vrot.slane %v617_v17, %v3618_v57 }
 0x218   : > { %v3607_v46 = vpop.permute.xlu1 %533  ;;  %v830_v12 = vpop.permute.xlu0 %829  ;;  %v632_v29 = vrot.slane %v618_v20, %v3618_v57 }
 0x219   : > { %839 = vrot.lane.b32.xlu0 %v3605_v45, %s3427_s29  ;;  %835 = vrot.lane.b32.xlu1 %v3607_v46, %s3427_s29  ;;  %v581_v2 = vcombine.low %v557_v63, %v573_v61  ;;  %v582_v3 = vcombine.high %v557_v63, %v573_v61  ;;  %v597_v4 = vcombine.low %v564_v0, %v580_v62 }
 0x21a   : > { %v598_v5 = vcombine.high %v564_v0, %v580_v62 }
 0x21b   : > { %v589_v6 = vrot.slane %v581_v2, %v3628_v1  ;;  %v596_v7 = vrot.slane %v582_v3, %v3628_v1  ;;  %v605_v8 = vrot.slane %v597_v4, %v3628_v1 }
 0x21c   : > { %v3611_v47 = vpop.permute.xlu1 %545  ;;  %v612_v10 = vrot.slane %v598_v5, %v3628_v1 }
 0x21d   : > { %843 = vrot.lane.b32.xlu1 %v3611_v47, %s3427_s29  ;;  %v685_v11 = vcombine.low %v589_v6, %v596_v7  ;;  %v2984_v13 = vcombine.high %v589_v6, %v596_v7  ;;  %v633_v16 = vcombine.low %v3607_v46, %v3611_v47  ;;  %v634_v18 = vcombine.high %v3607_v46, %v3611_v47  ;;  %s3433_s29 = smov 24  }
 0x21e   : > { %v701_v14 = vcombine.low %v605_v8, %v612_v10  ;;  %v2985_v15 = vcombine.high %v605_v8, %v612_v10 }
 0x21f   : > { %v692_v19 = vrot.slane %v685_v11, %v3618_v57  ;;  %v700_v23 = vrot.slane %v2984_v13, %v3618_v57  ;;  %v641_v26 = vrot.slane %v633_v16, %v3618_v57  ;;  %v648_v28 = vrot.slane %v634_v18, %v3618_v57 }
 0x220   : > { %v708_v24 = vrot.slane %v701_v14, %v3618_v57  ;;  %v716_v25 = vrot.slane %v2985_v15, %v3618_v57 }
 0x221   : > { %v649_v33 = vcombine.low %v625_v27, %v641_v26  ;;  %v650_v34 = vcombine.high %v625_v27, %v641_v26  ;;  %v717_v36 = vcombine.low %v692_v19, %v700_v23  ;;  %v665_v48 = vcombine.low %v632_v29, %v648_v28 }
 0x222   : > { %v733_v37 = vcombine.low %v708_v24, %v716_v25  ;;  %v666_v49 = vcombine.high %v632_v29, %v648_v28  ;;  %v718_v50 = vcombine.high %v692_v19, %v700_v23  ;;  %v734_v51 = vcombine.high %v708_v24, %v716_v25 }
 0x223   : > { %v657_v56 = vrot.slane %v649_v33, %v3628_v1  ;;  %v664_v58 = vrot.slane %v650_v34, %v3628_v1  ;;  %v3657_v60 = vrot.slane %v717_v36, %v3628_v1  ;;  %v673_v4 = vrot.slane %v665_v48, %v3628_v1 }
 0x224   : > { %v3660_v61 = vrot.slane %v733_v37, %v3628_v1  ;;  %v680_v5 = vrot.slane %v666_v49, %v3628_v1  ;;  %v3665_v6 = vrot.slane %v718_v50, %v3628_v1  ;;  %v3668_v7 = vrot.slane %v734_v51, %v3628_v1 }
 0x225   : > { %v753_v13 = vcombine.low %v657_v56, %v664_v58  ;;  %v2986_v14 = vcombine.high %v657_v56, %v664_v58 }
 0x226   : > { %v2987_v23 = vcombine.high %v673_v4, %v680_v5 }
 0x283   : > { %v838_v21 = vpop.permute.xlu0 %837  ;;  %v834_v22 = vpop.permute.xlu1 %833 }
 0x284   : > { %v853_v30 = vcombine.low %v830_v12, %v838_v21  ;;  %v854_v31 = vcombine.high %v830_v12, %v838_v21 }
 0x286   : > { %v861_v52 = vrot.slane %v853_v30, %v3618_v57  ;;  %v868_v53 = vrot.slane %v854_v31, %v3618_v57 }
 0x287   : > { %v832_v32 = vpop.permute.xlu0 %831  ;;  %v842_v35 = vpop.permute.xlu1 %841 }
 0x288   : > { %v869_v39 = vcombine.low %v834_v22, %v842_v35  ;;  %v870_v41 = vcombine.high %v834_v22, %v842_v35  ;;  %v769_v22 = vcombine.low %v673_v4, %v680_v5 }
 0x28a   : > { %v877_v54 = vrot.slane %v869_v39, %v3618_v57  ;;  %v884_v55 = vrot.slane %v870_v41, %v3618_v57 }
 0x28b   : > { %v836_v59 = vpop.permute.xlu1 %835  ;;  %v840_v3 = vpop.permute.xlu0 %839 }
 0x28c   : > { %v885_v62 = vcombine.low %v861_v52, %v877_v54  ;;  %v886_v63 = vcombine.high %v861_v52, %v877_v54  ;;  %v901_v0 = vcombine.low %v868_v53, %v884_v55  ;;  %v902_v2 = vcombine.high %v868_v53, %v884_v55 }
 0x28d   : > { %v921_v15 = vcombine.low %v832_v32, %v840_v3  ;;  %v922_v16 = vcombine.high %v832_v32, %v840_v3 }
 0x28e   : > { %v893_v8 = vrot.slane %v885_v62, %v3628_v1  ;;  %v900_v10 = vrot.slane %v886_v63, %v3628_v1  ;;  %v909_v11 = vrot.slane %v901_v0, %v3628_v1  ;;  %v916_v12 = vrot.slane %v902_v2, %v3628_v1 }
 0x28f   : > { %v844_v17 = vpop.permute.xlu1 %843  ;;  %v929_v30 = vrot.slane %v921_v15, %v3618_v57  ;;  %v936_v31 = vrot.slane %v922_v16, %v3618_v57  ;;  %v768_v62 = vrot.slane %v2986_v14, %v3618_v57 }
 0x290   : > { %v989_v18 = vcombine.low %v893_v8, %v900_v10  ;;  %v2988_v19 = vcombine.high %v893_v8, %v900_v10  ;;  %v1005_v20 = vcombine.low %v909_v11, %v916_v12  ;;  %v2989_v21 = vcombine.high %v909_v11, %v916_v12 }
 0x291   : > { %v937_v24 = vcombine.low %v836_v59, %v844_v17  ;;  %v938_v25 = vcombine.high %v836_v59, %v844_v17  ;;  %v3691_v59 = vrot.slane %v753_v13, %v3618_v57  ;;  %v776_v8 = vrot.slane %v769_v22, %v3618_v57 }
 0x292   : > { %v996_v26 = vrot.slane %v989_v18, %v3618_v57  ;;  %v1004_v27 = vrot.slane %v2988_v19, %v3618_v57  ;;  %v1012_v28 = vrot.slane %v1005_v20, %v3618_v57  ;;  %v1020_v29 = vrot.slane %v2989_v21, %v3618_v57 }
 0x293   : > { %v945_v32 = vrot.slane %v937_v24, %v3618_v57  ;;  %v952_v33 = vrot.slane %v938_v25, %v3618_v57  ;;  %v784_v10 = vrot.slane %v2987_v23, %v3618_v57  ;;  %v749_v23 = vcombine.low %v3657_v60, %v3660_v61 }
 0x294   : > { %v1021_v34 = vcombine.low %v996_v26, %v1004_v27  ;;  %v1037_v35 = vcombine.low %v1012_v28, %v1020_v29  ;;  %v1022_v36 = vcombine.high %v996_v26, %v1004_v27  ;;  %v1038_v37 = vcombine.high %v1012_v28, %v1020_v29 }
 0x295   : > { %v953_v39 = vcombine.low %v929_v30, %v945_v32  ;;  %v954_v41 = vcombine.high %v929_v30, %v945_v32  ;;  %v969_v48 = vcombine.low %v936_v31, %v952_v33  ;;  %v970_v49 = vcombine.high %v936_v31, %v952_v33 }
 0x296   : > { %v1029_v50 = vrot.slane %v1021_v34, %v3628_v1  ;;  %v1045_v51 = vrot.slane %v1037_v35, %v3628_v1  ;;  %v1036_v52 = vrot.slane %v1022_v36, %v3628_v1  ;;  %v1052_v53 = vrot.slane %v1038_v37, %v3628_v1 }
 0x297   : > { %v961_v54 = vrot.slane %v953_v39, %v3628_v1  ;;  %v968_v55 = vrot.slane %v954_v41, %v3628_v1  ;;  %v977_v56 = vrot.slane %v969_v48, %v3628_v1  ;;  %v984_v58 = vrot.slane %v970_v49, %v3628_v1 }
 0x298   : > { %v1053_v63 = vcombine.low %v1029_v50, %v1045_v51  ;;  %v1055_v0 = vcombine.low %v1036_v52, %v1052_v53  ;;  %v1054_v19 = vcombine.high %v1029_v50, %v1045_v51  ;;  %v751_v24 = vcombine.low %v3665_v6, %v3668_v7 }
 0x299   : > { %v1057_v2 = vcombine.low %v961_v54, %v968_v55  ;;  %v2990_v3 = vcombine.high %v961_v54, %v968_v55  ;;  %v1073_v4 = vcombine.low %v977_v56, %v984_v58  ;;  %v2991_v5 = vcombine.high %v977_v56, %v984_v58 }
 0x29a   : > { %v1125_v11 = vpack.c.bf16 %v1053_v63, %v1053_v63  ;;  %v1127_v12 = vpack.c.bf16 %v1055_v0, %v1055_v0  ;;  %v785_v28 = vcombine.low %v3691_v59, %v768_v62  ;;  %v801_v29 = vcombine.low %v776_v8, %v784_v10 }
 0x29b   : > { %v1064_v15 = vrot.slane %v1057_v2, %v3618_v57  ;;  %v1072_v16 = vrot.slane %v2990_v3, %v3618_v57  ;;  %v1080_v13 = vrot.slane %v1073_v4, %v3618_v57  ;;  %v1088_v14 = vrot.slane %v2991_v5, %v3618_v57 }
 0x29c   : > { %v1442_v17 = vsel %vm1437_vm2, %v1125_v11, 0  ;;  %v1534_v18 = vsel %vm1437_vm2, %v1127_v12, 0  ;;  %v1126_v30 = vpack.c.bf16 %v1054_v19, %v1054_v19  ;;  %v821_v34 = vpack.c.bf16 %v749_v23, %v749_v23 }
 0x29d   : > { %3100 = vmatpush3.bf16.xpose.msra.mxu0 %v1442_v17  ;;  %3112 = vmatpush3.bf16.xpose.msra.mxu1 %v1534_v18  ;;  %v1089_v20 = vcombine.low %v1064_v15, %v1072_v16  ;;  %v1105_v21 = vcombine.low %v1080_v13, %v1088_v14  ;;  %v1090_v22 = vcombine.high %v1064_v15, %v1072_v16 }
 0x29e   : > { %3105 = vmatprep.subr.bf16.mxu0 %v3422_v9  ;;  %3123 = vmatprep.subr.bf16.mxu1 %v3422_v9  ;;  %v1106_v25 = vcombine.high %v1080_v13, %v1088_v14  ;;  %v823_v35 = vpack.c.bf16 %v751_v24, %v751_v24  ;;  %v793_v37 = vrot.slane %v785_v28, %v3628_v1  ;;  %v1488_v41 = vsel %vm1437_vm2, %v1126_v30, 0 }
 0x29f   : > { %v1097_v26 = vrot.slane %v1089_v20, %v3628_v1  ;;  %v1113_v27 = vrot.slane %v1105_v21, %v3628_v1  ;;  %v1104_v32 = vrot.slane %v1090_v22, %v3628_v1  ;;  %v809_v39 = vrot.slane %v801_v29, %v3628_v1 }
 0x2a0   : > { %v1120_v33 = vrot.slane %v1106_v25, %v3628_v1  ;;  %v1056_v48 = vcombine.high %v1036_v52, %v1052_v53  ;;  %v750_v51 = vcombine.high %v3657_v60, %v3660_v61  ;;  %v786_v52 = vcombine.high %v3691_v59, %v768_v62 }
 0x2a1   : > { %v1121_v31 = vcombine.low %v1097_v26, %v1113_v27  ;;  %v817_v54 = vcombine.low %v793_v37, %v809_v39  ;;  %v802_v53 = vcombine.high %v776_v8, %v784_v10  ;;  %v1122_v61 = vcombine.high %v1097_v26, %v1113_v27 }
 0x2a2   : > { %v1123_v50 = vcombine.low %v1104_v32, %v1120_v33  ;;  %v1128_v55 = vpack.c.bf16 %v1056_v48, %v1056_v48  ;;  %v822_v58 = vpack.c.bf16 %v750_v51, %v750_v51  ;;  %v800_v0 = vrot.slane %v786_v52, %v3628_v1 }
 0x2a3   : > { %v1129_v36 = vpack.c.bf16 %v1121_v31, %v1121_v31  ;;  %v825_v63 = vpack.c.bf16 %v817_v54, %v817_v54  ;;  %v816_v2 = vrot.slane %v802_v53, %v3628_v1  ;;  %v752_v59 = vcombine.high %v3665_v6, %v3668_v7 }
 0x2a4   : > { %3102 = vmatmul.mubr.msk.bf16.vlgmr.msra.gmra.mrb[4].mxu0 %vm1437_vm2, %v821_v34  ;;  %3114 = vmatmul.mubr.msk.bf16.vlgmr.msra.gmra.mrb[0].mxu1 %vm1437_vm2, %v823_v35  ;;  %v1131_v56 = vpack.c.bf16 %v1123_v50, %v1123_v50  ;;  %v1580_v60 = vsel %vm1437_vm2, %v1128_v55, 0  ;;  %v1130_v4 = vpack.c.bf16 %v1122_v61, %v1122_v61  ;;  %v1124_v6 = vcombine.high %v1104_v32, %v1120_v33 }
 0x2a5   : > { %3106 = vmatpush3.bf16.xpose.msra.mxu0 %v1488_v41  ;;  %v1626_v49 = vsel %vm1437_vm2, %v1129_v36, 0  ;;  %3107 = vmatprep.mubr.msk.bf16.mxu0 %vm3423_vm1, %v3422_v9  ;;  %v819_v62 = vcombine.low %v800_v0, %v816_v2  ;;  %v824_v5 = vpack.c.bf16 %v752_v59, %v752_v59  ;;  %v818_v7 = vcombine.high %v793_v37, %v809_v39 }
 0x2a6   : > { %3124 = vmatpush3.bf16.xpose.msra.mxu1 %v1626_v49  ;;  %3125 = vmatprep.mubr.msk.bf16.mxu1 %vm3423_vm1, %v3422_v9  ;;  %v1718_v3 = vsel %vm1437_vm2, %v1131_v56, 0  ;;  %v1672_v10 = vsel %vm1437_vm2, %v1130_v4, 0  ;;  %v1132_v11 = vpack.c.bf16 %v1124_v6, %v1124_v6  ;;  %v820_v16 = vcombine.high %v800_v0, %v816_v2 }
 0x2a7   : > { %3117 = vmatprep.subr.bf16.mxu0 %v3422_v9  ;;  %3135 = vmatprep.subr.bf16.mxu1 %v3422_v9  ;;  %v827_v8 = vpack.c.bf16 %v819_v62, %v819_v62  ;;  %v826_v12 = vpack.c.bf16 %v818_v7, %v818_v7 }
 0x2a8   : > { %v1764_v15 = vsel %vm1437_vm2, %v1132_v11, 0  ;;  %v828_v13 = vpack.c.bf16 %v820_v16, %v820_v16 }
 0x2ac   : > { %3108 = vmatmul.mubr.msk.bf16.vlgmr.msra.gmra.mrb[8].mxu0 %vm1437_vm2, %v822_v58 }
 0x2ad   : > { %3126 = vmatmul.mubr.msk.bf16.vlgmr.msra.gmra.mrb[4].mxu1 %vm1437_vm2, %v825_v63  ;;  %3118 = vmatpush3.bf16.xpose.msra.mxu0 %v1580_v60 }
 0x2ae   : > { %3136 = vmatpush3.bf16.xpose.msra.mxu1 %v1718_v3  ;;  %3119 = vmatprep.mubr.msk.bf16.mxu0 %vm3423_vm1, %v3422_v9 }
 0x2af   : > { %3137 = vmatprep.mubr.msk.bf16.mxu1 %vm3423_vm1, %v3422_v9  ;;  %3129 = vmatprep.subr.bf16.mxu0 %v3422_v9 }
 0x2b0   : > { %3147 = vmatprep.subr.bf16.mxu1 %v3422_v9 }
 0x2b4   : > { %3120 = vmatmul.mubr.msk.bf16.vlgmr.msra.gmra.mrb[12].mxu0 %vm1437_vm2, %v824_v5 }
 0x2b5   : > { %3138 = vmatmul.mubr.msk.bf16.vlgmr.msra.gmra.mrb[8].mxu1 %vm1437_vm2, %v827_v8  ;;  %3130 = vmatpush3.bf16.xpose.msra.mxu0 %v1672_v10 }
 0x2b6   : > { %3131 = vmatprep.mubr.msk.bf16.mxu0 %vm3423_vm1, %v3422_v9  ;;  %3141 = vmatprep.subr.bf16.mxu0 %v3422_v9 }
 0x2b7   : > { %3149 = vmatprep.mubr.msk.bf16.mxu1 %vm3423_vm1, %v3422_v9 }
 0x2bc   : > { %3132 = vmatmul.mubr.msk.bf16.vlgmr.msra.gmra.mrb[16].mxu0 %vm1437_vm2, %v826_v12 }
 0x2bd   : > { %3142 = vmatpush3.bf16.xpose.msra.mxu0 %v1764_v15  ;;  %3143 = vmatprep.mubr.msk.bf16.mxu0 %vm3423_vm1, %v3422_v9 }
 0x2be   : > { %3153 = vmatprep.subr.bf16.mxu0 %v3422_v9 }
 0x2c4   : > { %3144 = vmatmul.mubr.msk.bf16.vlgmr.msra.gmra.mrb[20].mxu0 %vm1437_vm2, %v828_v13 }
 0x2c5   : > { %3155 = vmatprep.mubr.msk.bf16.mxu0 %vm3423_vm1, %v3422_v9 }
 0x377   : > { %v1478_v14 = vpop.f32.mrb[4].mxu0  ;;  %v1570_v17 = vpop.f32.mrb[0].mxu1 }
 0x378   : > { %v3103_v18 = vpop.f32.mrb[5].mxu0  ;;  %v3115_v19 = vpop.f32.mrb[1].mxu1  ;;  %v1806_v20 = vsel %vm1437_vm2, %v1478_v14, -inf  ;;  %v1812_v25 = vsel %vm1437_vm2, %v1570_v17, -inf }
 0x379   : > { %v1573_v21 = vpop.f32.mrb[2].mxu1  ;;  %1807 = vmax.xlane.f32.xlu0 %v1806_v20  ;;  %v1481_v22 = vpop.f32.mrb[6].mxu0 }
 0x37a   : > { %v3104_v23 = vpop.f32.mrb[7].mxu0  ;;  %v3116_v24 = vpop.f32.mrb[3].mxu1 }
 0x37d   : > { %1813 = vmax.xlane.f32.xlu0 %v1812_v25 }
 0x37f   : > { %v1524_v26 = vpop.f32.mrb[8].mxu0 }
 0x380   : > { %v1662_v27 = vpop.f32.mrb[4].mxu1  ;;  %v3109_v28 = vpop.f32.mrb[9].mxu0  ;;  %v1809_v29 = vsel %vm1437_vm2, %v1524_v26, -inf }
 0x381   : > { %v3127_v30 = vpop.f32.mrb[5].mxu1  ;;  %v1818_v31 = vsel %vm1437_vm2, %v1662_v27, -inf  ;;  %1810 = vmax.xlane.f32.xlu1 %v1809_v29  ;;  %v1527_v32 = vpop.f32.mrb[10].mxu0 }
 0x382   : > { %v1665_v33 = vpop.f32.mrb[6].mxu1  ;;  %1819 = vmax.xlane.f32.xlu0 %v1818_v31  ;;  %v3110_v34 = vpop.f32.mrb[11].mxu0 }
 0x383   : > { %v3128_v35 = vpop.f32.mrb[7].mxu1 }
 0x387   : > { %v1616_v36 = vpop.f32.mrb[12].mxu0 }
 0x388   : > { %v3762_v37 = vpop.f32.mrb[8].mxu1  ;;  %v3121_v39 = vpop.f32.mrb[13].mxu0  ;;  %v1815_v41 = vsel %vm1437_vm2, %v1616_v36, -inf }
 0x389   : > { %v3139_v48 = vpop.f32.mrb[9].mxu1  ;;  %1816 = vmax.xlane.f32.xlu0 %v1815_v41  ;;  %v1619_v49 = vpop.f32.mrb[14].mxu0  ;;  %v1824_v52 = vsel %vm1437_vm2, %v3762_v37, -inf }
 0x38a   : > { %v1757_v50 = vpop.f32.mrb[10].mxu1  ;;  %v3122_v51 = vpop.f32.mrb[15].mxu0 }
 0x38b   : > { %v3140_v54 = vpop.f32.mrb[11].mxu1 }
 0x38d   : > { %1825 = vmax.xlane.f32.xlu0 %v1824_v52 }
 0x38f   : > { %v1708_v53 = vpop.f32.mrb[16].mxu0 }
 0x390   : > { %v3133_v55 = vpop.f32.mrb[17].mxu0  ;;  %v1821_v61 = vsel %vm1437_vm2, %v1708_v53, -inf }
 0x391   : > { %v1711_v56 = vpop.f32.mrb[18].mxu0 }
 0x392   : > { %1137 = vrot.lane.b32.xlu1 %v3597_v43, %s3430_s15  ;;  %v3134_v58 = vpop.f32.mrb[19].mxu0 }
 0x396   : > { %1141 = vrot.lane.b32.xlu1 %v3595_v42, %s3430_s15 }
 0x397   : > { %v3771_v63 = vpop.f32.mrb[20].mxu0 }
 0x398   : > { %v3145_v0 = vpop.f32.mrb[21].mxu0  ;;  %v1827_v3 = vsel %vm1437_vm2, %v3771_v63, -inf }
 0x399   : > { %v1803_v2 = vpop.f32.mrb[22].mxu0 }
 0x39a   : > { %v3146_v60 = vpop.f32.mrb[23].mxu0 }
 0x3a3   : > { %1133 = vrot.lane.b32.xlu0 %v3584_v38, %s3430_s15 }
 0x3ba   : > { %1822 = vmax.xlane.f32.xlu1 %v1821_v61 }
 0x3be   : > { %1828 = vmax.xlane.f32.xlu1 %v1827_v3 }
 0x3cf   : > { %1145 = vrot.lane.b32.xlu1 %v3601_v44, %s3430_s15 }
 0x406   : > { %v1808_v43 = vpop.xlane.xlu0 %1807 }
 0x407   : > { %v1830_v42 = vsub.f32 %v1478_v14, %v1808_v43 }
 0x409   : > { %v1838_v59 = vmul.f32 1.442695, %v1830_v42 }
 0x40a   : > { %v1814_v62 = vpop.xlane.xlu0 %1813 }
 0x40b   : > { %3316 = vpow2.f32 %v1838_v59  ;;  %v1832_v4 = vsub.f32 %v1570_v17, %v1814_v62 }
 0x40d   : > { %v1842_v5 = vmul.f32 1.442695, %v1832_v4 }
 0x40e   : > { %v1811_v8 = vpop.xlane.xlu1 %1810 }
 0x40f   : > { %3318 = vpow2.f32 %v1842_v5  ;;  %v1820_v38 = vpop.xlane.xlu0 %1819  ;;  %v1831_v10 = vsub.f32 %v1524_v26, %v1811_v8 }
 0x410   : > { %v1834_v6 = vsub.f32 %v1662_v27, %v1820_v38 }
 0x411   : > { %v1840_v7 = vmul.f32 1.442695, %v1831_v10 }
 0x412   : > { %v1846_v11 = vmul.f32 1.442695, %v1834_v6  ;;  %v1138_v24 = vpop.permute.xlu1 %1137 }
 0x413   : > { %3320 = vpow2.f32 %v1840_v7 }
 0x414   : > { %3322 = vpow2.f32 %v1846_v11 }
 0x415   : > { %v3780_v12 = vpop.eup %3316 }
 0x416   : > { %v1817_v15 = vpop.xlane.xlu0 %1816  ;;  %v1854_v44 = vsel %vm1437_vm2, %v3780_v12, 0.0  ;;  %v1142_v25 = vpop.permute.xlu1 %1141 }
 0x417   : > { %v1833_v16 = vsub.f32 %v1616_v36, %v1817_v15  ;;  %1855 = vadd.xlane.f32.xlu0 %v1854_v44 }
 0x419   : > { %v3784_v13 = vpop.eup %3318  ;;  %v1844_v14 = vmul.f32 1.442695, %v1833_v16 }
 0x41a   : > { %v1860_v17 = vsel %vm1437_vm2, %v3784_v13, 0.0  ;;  %v3806_v26 = vpop.xlane.xlu0 %1825 }
 0x41b   : > { %3324 = vpow2.f32 %v1844_v14  ;;  %1861 = vadd.xlane.f32.xlu0 %v1860_v17 }
 0x41d   : > { %v3788_v18 = vpop.eup %3320 }
 0x41e   : > { %v3790_v19 = vpop.eup %3322  ;;  %v1857_v20 = vsel %vm1437_vm2, %v3788_v18, 0.0  ;;  %v1134_v30 = vpop.permute.xlu0 %1133 }
 0x41f   : > { %v1866_v21 = vsel %vm1437_vm2, %v3790_v19, 0.0  ;;  %1858 = vadd.xlane.f32.xlu1 %v1857_v20  ;;  %v1157_v33 = vcombine.low %v1134_v30, %v1142_v25 }
 0x420   : > { %1867 = vadd.xlane.f32.xlu0 %v1866_v21 }
 0x421   : > { %v1165_v39 = vrot.slane %v1157_v33, %v3618_v57 }
 0x425   : > { %v3796_v22 = vpop.eup %3324 }
 0x426   : > { %v1863_v23 = vsel %vm1437_vm2, %v3796_v22, 0.0 }
 0x427   : > { %1864 = vadd.xlane.f32.xlu1 %v1863_v23 }
 0x438   : > { %1139 = vrot.lane.b32.xlu1 %v3607_v46, %s3430_s15  ;;  %v1158_v46 = vcombine.high %v1134_v30, %v1142_v25  ;;  %v1836_v25 = vsub.f32 %v3762_v37, %v3806_v26 }
 0x43c   : > { %1143 = vrot.lane.b32.xlu1 %v3605_v45, %s3430_s15 }
 0x440   : > { %1147 = vrot.lane.b32.xlu1 %v3611_v47, %s3430_s15  ;;  %v1172_v47 = vrot.slane %v1158_v46, %v3618_v57 }
 0x447   : > { %v1823_v27 = vpop.xlane.xlu1 %1822 }
 0x448   : > { %v1835_v28 = vsub.f32 %v1708_v53, %v1823_v27  ;;  %v1850_v27 = vmul.f32 1.442695, %v1836_v25 }
 0x44a   : > { %v1848_v29 = vmul.f32 1.442695, %v1835_v28 }
 0x44b   : > { %v1829_v31 = vpop.xlane.xlu1 %1828 }
 0x44c   : > { %3326 = vpow2.f32 %v1848_v29  ;;  %v1837_v32 = vsub.f32 %v3771_v63, %v1829_v31 }
 0x44e   : > { %v1852_v36 = vmul.f32 1.442695, %v1837_v32 }
 0x44f   : > { %v1146_v34 = vpop.permute.xlu1 %1145 }
 0x450   : > { %v1173_v35 = vcombine.low %v1138_v24, %v1146_v34  ;;  %v1174_v45 = vcombine.high %v1138_v24, %v1146_v34  ;;  %3328 = vpow2.f32 %v1852_v36 }
 0x451   : > { %3330 = vpow2.f32 %v1850_v27 }
 0x452   : > { %v1181_v41 = vrot.slane %v1173_v35, %v3618_v57  ;;  %v1188_v48 = vrot.slane %v1174_v45, %v3618_v57 }
 0x454   : > { %v1189_v49 = vcombine.low %v1165_v39, %v1181_v41  ;;  %v1190_v50 = vcombine.high %v1165_v39, %v1181_v41  ;;  %v1205_v51 = vcombine.low %v1172_v47, %v1188_v48  ;;  %v1206_v54 = vcombine.high %v1172_v47, %v1188_v48 }
 0x456   : > { %v3813_v52 = vpop.eup %3326  ;;  %v1197_v53 = vrot.slane %v1189_v49, %v3628_v1  ;;  %v1204_v55 = vrot.slane %v1190_v50, %v3628_v1  ;;  %v1213_v56 = vrot.slane %v1205_v51, %v3628_v1  ;;  %v1220_v58 = vrot.slane %v1206_v54, %v3628_v1 }
 0x457   : > { %v1869_v63 = vsel %vm1437_vm2, %v3813_v52, 0.0 }
 0x458   : > { %v1293_v0 = vcombine.low %v1197_v53, %v1204_v55  ;;  %v2992_v2 = vcombine.high %v1197_v53, %v1204_v55  ;;  %v1309_v60 = vcombine.low %v1213_v56, %v1220_v58  ;;  %v2993_v61 = vcombine.high %v1213_v56, %v1220_v58  ;;  %1870 = vadd.xlane.f32.xlu0 %v1869_v63 }
 0x45a   : > { %v1300_v3 = vrot.slane %v1293_v0, %v3618_v57  ;;  %v1308_v43 = vrot.slane %v2992_v2, %v3618_v57  ;;  %v1316_v42 = vrot.slane %v1309_v60, %v3618_v57  ;;  %v1324_v59 = vrot.slane %v2993_v61, %v3618_v57  ;;  %v3829_v11 = vpop.eup %3328 }
 0x45b   : > { %v1875_v21 = vsel %vm1437_vm2, %v3829_v11, 0.0  ;;  %v3841_v28 = vpop.eup %3330 }
 0x45c   : > { %v1325_v62 = vcombine.low %v1300_v3, %v1308_v43  ;;  %v1341_v4 = vcombine.low %v1316_v42, %v1324_v59  ;;  %v1326_v5 = vcombine.high %v1300_v3, %v1308_v43  ;;  %v1342_v8 = vcombine.high %v1316_v42, %v1324_v59 }
 0x45d   : > { %v1872_v29 = vsel %vm1437_vm2, %v3841_v28, 0.0 }
 0x45e   : > { %v1333_v38 = vrot.slane %v1325_v62, %v3628_v1  ;;  %v1349_v10 = vrot.slane %v1341_v4, %v3628_v1  ;;  %v1340_v6 = vrot.slane %v1326_v5, %v3628_v1  ;;  %v1356_v7 = vrot.slane %v1342_v8, %v3628_v1 }
 0x460   : > { %v1357_v15 = vcombine.low %v1333_v38, %v1349_v10  ;;  %v1358_v44 = vcombine.high %v1333_v38, %v1349_v10  ;;  %v1359_v16 = vcombine.low %v1340_v6, %v1356_v7  ;;  %v1360_v14 = vcombine.high %v1340_v6, %v1356_v7 }
 0x462   : > { %v1429_v17 = vpack.c.bf16 %v1357_v15, %v1357_v15  ;;  %v1430_v20 = vpack.c.bf16 %v1358_v44, %v1358_v44  ;;  %v1431_v46 = vpack.c.bf16 %v1359_v16, %v1359_v16  ;;  %v1432_v39 = vpack.c.bf16 %v1360_v14, %v1360_v14 }
 0x464   : > { %1876 = vadd.xlane.f32.xlu1 %v1875_v21  ;;  %v1907_v23 = vsel %vm1905_vm3, %v1429_v17, 0  ;;  %v1953_v24 = vsel %vm1905_vm3, %v1430_v20, 0  ;;  %v1999_v26 = vsel %vm1905_vm3, %v1431_v46, 0  ;;  %v2045_v48 = vsel %vm1905_vm3, %v1432_v39, 0 }
 0x465   : > { %3148 = vmatpush3.bf16.msra.mxu1 %v1907_v23  ;;  %3154 = vmatpush3.bf16.msra.mxu0 %v1953_v24 }
 0x466   : > { %3159 = vmatprep.subr.bf16.mxu1 %v3422_v9  ;;  %3165 = vmatprep.subr.bf16.mxu0 %v3422_v9 }
 0x46e   : > { %1135 = vrot.lane.b32.xlu0 %v3588_v40, %s3430_s15  ;;  %s407_s15 = scalar_lea.vmem [#allocation2], %s2976_s20 }
 0x46f   : > { %s2910_s16 = sshll.u32 %s407_s15, 4  ;;  %s4045_s16 = int_to_ptr.vmem [resolvable:$true] %s2910_s16 }
 0x48d   : > { %1873 = vadd.xlane.f32.xlu0 %v1872_v29 }
 0x4a4   : > { %v1856_v30 = vpop.xlane.xlu0 %1855 }
 0x4a5   : > { %3332 = vrcp.f32 %v1856_v30 }
 0x4a8   : > { %v1862_v31 = vpop.xlane.xlu0 %1861 }
 0x4a9   : > { %3334 = vrcp.f32 %v1862_v31 }
 0x4ac   : > { %v1859_v32 = vpop.xlane.xlu1 %1858 }
 0x4ad   : > { %3336 = vrcp.f32 %v1859_v32  ;;  %v1868_v54 = vpop.xlane.xlu0 %1867 }
 0x4af   : > { %v3333_v33 = vpop.eup %3332 }
 0x4b0   : > { %v1886_v40 = vmul.f32 %v3333_v33, %v3780_v12 }
 0x4b2   : > { %v1894_v34 = vpack.c.bf16 %v1886_v40, %v1886_v40 }
 0x4b3   : > { %v3335_v37 = vpop.eup %3334 }
 0x4b4   : > { %3150 = vmatmul.mubr.msk.bf16.vlgmr.msra.gmra.mrb[12].mxu1 %vm1437_vm2, %v1894_v34  ;;  %v1865_v35 = vpop.xlane.xlu1 %1864  ;;  %v1888_v45 = vmul.f32 %v3335_v37, %v3784_v13 }
 0x4b5   : > { %3160 = vmatpush3.bf16.msra.mxu1 %v1999_v26  ;;  %3338 = vrcp.f32 %v1865_v35  ;;  %3161 = vmatprep.mubr.msk.bf16.mxu1 %vm3423_vm1, %v3422_v9 }
 0x4b6   : > { %3171 = vmatprep.subr.bf16.mxu1 %v3422_v9  ;;  %v1896_v41 = vpack.c.bf16 %v1888_v45, %v1888_v45  ;;  %3340 = vrcp.f32 %v1868_v54 }
 0x4b7   : > { %v3337_v36 = vpop.eup %3336 }
 0x4b8   : > { %v1887_v12 = vmul.f32 %v3337_v36, %v3788_v18  ;;  %v1140_v50 = vpop.permute.xlu1 %1139 }
 0x4ba   : > { %v1895_v47 = vpack.c.bf16 %v1887_v12, %v1887_v12 }
 0x4bc   : > { %3156 = vmatmul.mubr.msk.bf16.vlgmr.msra.gmra.mrb[24].mxu0 %vm1437_vm2, %v1895_v47  ;;  %3162 = vmatmul.mubr.msk.bf16.vlgmr.msra.gmra.mrb[16].mxu1 %vm1437_vm2, %v1896_v41  ;;  %v1144_v51 = vpop.permute.xlu1 %1143 }
 0x4bd   : > { %3166 = vmatpush3.bf16.msra.mxu0 %v2045_v48  ;;  %3167 = vmatprep.mubr.msk.bf16.mxu0 %vm3423_vm1, %v3422_v9 }
 0x4be   : > { %3177 = vmatprep.subr.bf16.mxu0 %v3422_v9  ;;  %3173 = vmatprep.mubr.msk.bf16.mxu1 %vm3423_vm1, %v3422_v9 }
 0x4bf   : > { %v3339_v13 = vpop.eup %3338 }
 0x4c0   : > { %v1889_v18 = vmul.f32 %v3339_v13, %v3796_v22  ;;  %v1148_v53 = vpop.permute.xlu1 %1147  ;;  %v3341_v27 = vpop.eup %3340 }
 0x4c1   : > { %v1241_v56 = vcombine.low %v1140_v50, %v1148_v53  ;;  %v1242_v58 = vcombine.high %v1140_v50, %v1148_v53  ;;  %v1890_v26 = vmul.f32 %v3341_v27, %v3790_v19 }
 0x4c2   : > { %v1897_v49 = vpack.c.bf16 %v1889_v18, %v1889_v18 }
 0x4c3   : > { %v1249_v60 = vrot.slane %v1241_v56, %v3618_v57  ;;  %v1256_v22 = vrot.slane %v1242_v58, %v3618_v57  ;;  %v1898_v48 = vpack.c.bf16 %v1890_v26, %v1890_v26 }
 0x4c4   : > { %3168 = vmatmul.mubr.msk.bf16.vlgmr.msra.gmra.mrb[28].mxu0 %vm1437_vm2, %v1897_v49 }
 0x4c5   : > { %3179 = vmatprep.mubr.msk.bf16.mxu0 %vm3423_vm1, %v3422_v9 }
 0x4e5   : > { %v1871_v55 = vpop.xlane.xlu0 %1870 }
 0x4e6   : > { %3342 = vrcp.f32 %v1871_v55 }
 0x4e9   : > { %v1136_v63 = vpop.permute.xlu0 %1135 }
 0x4ea   : > { %v1225_v0 = vcombine.low %v1136_v63, %v1144_v51  ;;  %v1226_v2 = vcombine.high %v1136_v63, %v1144_v51 }
 0x4ec   : > { %v1233_v61 = vrot.slane %v1225_v0, %v3618_v57  ;;  %v1240_v3 = vrot.slane %v1226_v2, %v3618_v57 }
 0x4ee   : > { %v1257_v43 = vcombine.low %v1233_v61, %v1249_v60  ;;  %v1258_v42 = vcombine.high %v1233_v61, %v1249_v60  ;;  %v1273_v59 = vcombine.low %v1240_v3, %v1256_v22  ;;  %v1274_v62 = vcombine.high %v1240_v3, %v1256_v22 }
 0x4f0   : > { %v1265_v4 = vrot.slane %v1257_v43, %v3628_v1  ;;  %v1272_v5 = vrot.slane %v1258_v42, %v3628_v1  ;;  %v1281_v8 = vrot.slane %v1273_v59, %v3628_v1  ;;  %v1288_v38 = vrot.slane %v1274_v62, %v3628_v1  ;;  %v3343_v33 = vpop.eup %3342 }
 0x4f1   : > { %v1877_v20 = vpop.xlane.xlu1 %1876  ;;  %v1891_v35 = vmul.f32 %v3343_v33, %v3813_v52 }
 0x4f2   : > { %v1361_v10 = vcombine.low %v1265_v4, %v1272_v5  ;;  %v2994_v6 = vcombine.high %v1265_v4, %v1272_v5  ;;  %v1377_v7 = vcombine.low %v1281_v8, %v1288_v38  ;;  %v2995_v15 = vcombine.high %v1281_v8, %v1288_v38 }
 0x4f3   : > { %3344 = vrcp.f32 %v1877_v20  ;;  %v1899_v13 = vpack.c.bf16 %v1891_v35, %v1891_v35 }
 0x4f4   : > { %v1368_v44 = vrot.slane %v1361_v10, %v3618_v57  ;;  %v1376_v16 = vrot.slane %v2994_v6, %v3618_v57  ;;  %v1384_v14 = vrot.slane %v1377_v7, %v3618_v57  ;;  %v1392_v17 = vrot.slane %v2995_v15, %v3618_v57 }
 0x4f6   : > { %v1393_v21 = vcombine.low %v1368_v44, %v1376_v16  ;;  %v1409_v23 = vcombine.low %v1384_v14, %v1392_v17  ;;  %v1394_v24 = vcombine.high %v1368_v44, %v1376_v16  ;;  %v1410_v25 = vcombine.high %v1384_v14, %v1392_v17 }
 0x4f8   : > { %v1401_v29 = vrot.slane %v1393_v21, %v3628_v1  ;;  %v1417_v30 = vrot.slane %v1409_v23, %v3628_v1  ;;  %v1408_v31 = vrot.slane %v1394_v24, %v3628_v1  ;;  %v1424_v32 = vrot.slane %v1410_v25, %v3628_v1 }
 0x4fa   : > { %v1425_v40 = vcombine.low %v1401_v29, %v1417_v30  ;;  %v1426_v46 = vcombine.high %v1401_v29, %v1417_v30  ;;  %v1427_v34 = vcombine.low %v1408_v31, %v1424_v32  ;;  %v1428_v37 = vcombine.high %v1408_v31, %v1424_v32 }
 0x4fc   : > { %v1433_v45 = vpack.c.bf16 %v1425_v40, %v1425_v40  ;;  %v1434_v36 = vpack.c.bf16 %v1426_v46, %v1426_v46  ;;  %v1435_v47 = vpack.c.bf16 %v1427_v34, %v1427_v34  ;;  %v1436_v41 = vpack.c.bf16 %v1428_v37, %v1428_v37 }
 0x4fd   : > { %v3345_v18 = vpop.eup %3344 }
 0x4fe   : > { %v2091_v12 = vsel %vm1905_vm3, %v1433_v45, 0  ;;  %v2137_v39 = vsel %vm1905_vm3, %v1434_v36, 0  ;;  %v2183_v19 = vsel %vm1905_vm3, %v1435_v47, 0  ;;  %v2229_v52 = vsel %vm1905_vm3, %v1436_v41, 0 }
 0x4ff   : > { %3172 = vmatpush3.bf16.msra.mxu1 %v2091_v12  ;;  %3178 = vmatpush3.bf16.msra.mxu0 %v2137_v39  ;;  %v1893_v49 = vmul.f32 %v3345_v18, %v3829_v11 }
 0x500   : > { %3183 = vmatprep.subr.bf16.mxu1 %v3422_v9  ;;  %3189 = vmatprep.subr.bf16.mxu0 %v3422_v9 }
 0x501   : > { %v1901_v50 = vpack.c.bf16 %v1893_v49, %v1893_v49 }
 0x502   : > { %3174 = vmatmul.mubr.msk.bf16.vlgmr.msra.gmra.mrb[20].mxu1 %vm1437_vm2, %v1898_v48  ;;  %3180 = vmatmul.mubr.msk.bf16.vlgmr.msra.gmra.mrb[32].mxu0 %vm1437_vm2, %v1899_v13 }
 0x503   : > { %3184 = vmatpush3.bf16.msra.mxu1 %v2183_v19  ;;  %3190 = vmatpush3.bf16.msra.mxu0 %v2229_v52 }
 0x504   : > { %3191 = vmatprep.mubr.msk.bf16.mxu0 %vm3423_vm1, %v3422_v9  ;;  %3185 = vmatprep.mubr.msk.bf16.mxu1 %vm3423_vm1, %v3422_v9 }
 0x505   : > { %3195 = vmatprep.subr.bf16.mxu1 %v3422_v9  ;;  %3203 = vmatprep.subr.bf16.mxu0 %v3422_v9 }
 0x50a   : > { %3192 = vmatmul.mubr.msk.bf16.vlgmr.msra.gmra.mrb[36].mxu0 %vm1437_vm2, %v1901_v50 }
 0x50b   : > { %3207 = vmatprep.mubr.msk.bf16.mxu0 %vm3423_vm1, %v3422_v9 }
 0x51a   : > { %v1874_v51 = vpop.xlane.xlu0 %1873 }
 0x51b   : > { %3346 = vrcp.f32 %v1874_v51 }
 0x525   : > { %v3347_v54 = vpop.eup %3346 }
 0x526   : > { %v1892_v11 = vmul.f32 %v3347_v54, %v3841_v28 }
 0x528   : > { %v1900_v53 = vpack.c.bf16 %v1892_v11, %v1892_v11 }
 0x52a   : > { %3186 = vmatmul.mubr.msk.bf16.vlgmr.msra.gmra.mrb[24].mxu1 %vm1437_vm2, %v1900_v53 }
 0x52b   : > { %3199 = vmatprep.mubr.msk.bf16.mxu1 %vm3423_vm1, %v3422_v9 }
 0x587   : > { %v1943_v55 = vpop.f32.mrb[12].mxu1 }
 0x588   : > { %v3151_v56 = vpop.f32.mrb[13].mxu1 }
 0x589   : > { %v1946_v58 = vpop.f32.mrb[14].mxu1 }
 0x58a   : > { %v3152_v63 = vpop.f32.mrb[15].mxu1 }
 0x58f   : > { %v1989_v0 = vpop.f32.mrb[24].mxu0  ;;  %v2035_v2 = vpop.f32.mrb[16].mxu1 }
 0x590   : > { %v2271_v60 = vcombine.low %v1943_v55, %v2035_v2  ;;  %v2272_v22 = vcombine.high %v1943_v55, %v2035_v2  ;;  %v3157_v61 = vpop.f32.mrb[25].mxu0  ;;  %v3163_v3 = vpop.f32.mrb[17].mxu1 }
 0x591   : > { %v1992_v43 = vpop.f32.mrb[26].mxu0  ;;  %v2038_v42 = vpop.f32.mrb[18].mxu1 }
 0x592   : > { %v3158_v59 = vpop.f32.mrb[27].mxu0  ;;  %v3164_v28 = vpop.f32.mrb[19].mxu1  ;;  %v2279_v10 = vrot.slane %v2271_v60, %v3618_v57  ;;  %v2286_v6 = vrot.slane %v2272_v22, %v3618_v57 }
 0x597   : > { %v2081_v62 = vpop.f32.mrb[28].mxu0 }
 0x598   : > { %v2287_v4 = vcombine.low %v1989_v0, %v2081_v62  ;;  %v2288_v5 = vcombine.high %v1989_v0, %v2081_v62  ;;  %v3169_v8 = vpop.f32.mrb[29].mxu0 }
 0x599   : > { %v2084_v38 = vpop.f32.mrb[30].mxu0 }
 0x59a   : > { %v2295_v7 = vrot.slane %v2287_v4, %v3618_v57  ;;  %v2302_v15 = vrot.slane %v2288_v5, %v3618_v57  ;;  %v3170_v44 = vpop.f32.mrb[31].mxu0 }
 0x59c   : > { %v2303_v16 = vcombine.low %v2279_v10, %v2295_v7  ;;  %v2304_v14 = vcombine.high %v2279_v10, %v2295_v7  ;;  %v2319_v17 = vcombine.low %v2286_v6, %v2302_v15  ;;  %v2320_v20 = vcombine.high %v2286_v6, %v2302_v15 }
 0x59e   : > { %v2311_v21 = vrot.slane %v2303_v16, %v3628_v1  ;;  %v2318_v23 = vrot.slane %v2304_v14, %v3628_v1  ;;  %v2327_v24 = vrot.slane %v2319_v17, %v3628_v1  ;;  %v2334_v25 = vrot.slane %v2320_v20, %v3628_v1  ;;  %v3300_v20 = vld [vmem:[%s4101_s4] sm:$0xff]  }
 0x59f   : > { %3196 = vmatpush3.bf16.msra.mxu1 %v3300_v20 }
 0x5a0   : > { %v2407_v27 = vcombine.low %v2311_v21, %v2318_v23  ;;  %v3012_v29 = vcombine.high %v2311_v21, %v2318_v23  ;;  %v2423_v30 = vcombine.low %v2327_v24, %v2334_v25  ;;  %v3013_v31 = vcombine.high %v2327_v24, %v2334_v25  ;;  %3197 = vmatprep.subr.bf16.mxu1 %v3422_v9 }
 0x5a2   : > { %v2414_v32 = vrot.slane %v2407_v27, %v3618_v57  ;;  %v2422_v33 = vrot.slane %v3012_v29, %v3618_v57  ;;  %v2430_v40 = vrot.slane %v2423_v30, %v3618_v57  ;;  %v2438_v46 = vrot.slane %v3013_v31, %v3618_v57 }
 0x5a4   : > { %v2440_v34 = vcombine.high %v2414_v32, %v2422_v33  ;;  %v2456_v37 = vcombine.high %v2430_v40, %v2438_v46  ;;  %v2439_v26 = vcombine.low %v2414_v32, %v2422_v33  ;;  %v2455_v35 = vcombine.low %v2430_v40, %v2438_v46  ;;  %v3301_v32 = vld [vmem:[%s4101_s4 + $0x8] sm:$0xff]  }
 0x5a5   : > { %3198 = vmatpush3.bf16.msra.mxu1 %v3301_v32 }
 0x5a6   : > { %v3918_v45 = vrot.slane %v2440_v34, %v3628_v1  ;;  %v3921_v36 = vrot.slane %v2456_v37, %v3628_v1  ;;  %v3924_v12 = vrot.slane %v2439_v26, %v3628_v1  ;;  %v3927_v39 = vrot.slane %v2455_v35, %v3628_v1  ;;  %3211 = vmatprep.subr.bf16.mxu1 %v3422_v9 }
 0x5a8   : > { %v2473_v47 = vcombine.low %v3918_v45, %v3921_v36  ;;  %v2471_v41 = vcombine.low %v3924_v12, %v3927_v39  ;;  %v2472_v48 = vcombine.high %v3924_v12, %v3927_v39  ;;  %v2474_v13 = vcombine.high %v3918_v45, %v3921_v36  ;;  %v3016_v12 = vld [vmem:[%s4102_s5] ss:$0 sm:$0xff] }
 0x5d5   : > { %v2127_v18 = vpop.f32.mrb[20].mxu1  ;;  %v2173_v19 = vpop.f32.mrb[32].mxu0 }
 0x5d6   : > { %v3175_v52 = vpop.f32.mrb[21].mxu1  ;;  %v3181_v49 = vpop.f32.mrb[33].mxu0 }
 0x5d7   : > { %v2130_v50 = vpop.f32.mrb[22].mxu1  ;;  %v2176_v51 = vpop.f32.mrb[34].mxu0 }
 0x5d8   : > { %v3176_v54 = vpop.f32.mrb[23].mxu1  ;;  %v3182_v11 = vpop.f32.mrb[35].mxu0 }
 0x5dd   : > { %v2265_v53 = vpop.f32.mrb[36].mxu0 }
 0x5de   : > { %v2355_v55 = vcombine.low %v2173_v19, %v2265_v53  ;;  %v2356_v56 = vcombine.high %v2173_v19, %v2265_v53  ;;  %v3193_v58 = vpop.f32.mrb[37].mxu0 }
 0x5df   : > { %v2268_v63 = vpop.f32.mrb[38].mxu0 }
 0x5e0   : > { %v3194_v0 = vpop.f32.mrb[39].mxu0  ;;  %v2363_v43 = vrot.slane %v2355_v55, %v3618_v57  ;;  %v2370_v42 = vrot.slane %v2356_v56, %v3618_v57 }
 0x5fd   : > { %v2219_v2 = vpop.f32.mrb[24].mxu1 }
 0x5fe   : > { %v2339_v60 = vcombine.low %v2127_v18, %v2219_v2  ;;  %v2340_v22 = vcombine.high %v2127_v18, %v2219_v2  ;;  %v3187_v61 = vpop.f32.mrb[25].mxu1 }
 0x5ff   : > { %v2222_v3 = vpop.f32.mrb[26].mxu1 }
 0x600   : > { %v2347_v59 = vrot.slane %v2339_v60, %v3618_v57  ;;  %v2354_v28 = vrot.slane %v2340_v22, %v3618_v57  ;;  %v3188_v62 = vpop.f32.mrb[27].mxu1  ;;  %v3356_v60 = vld [vmem:[%s3553_s19] sm:$0xff] }
 0x602   : > { %v2371_v4 = vcombine.low %v2347_v59, %v2363_v43  ;;  %v2372_v5 = vcombine.high %v2347_v59, %v2363_v43  ;;  %v2387_v8 = vcombine.low %v2354_v28, %v2370_v42  ;;  %v2388_v38 = vcombine.high %v2354_v28, %v2370_v42  ;;  %v3357_v43 = vld [vmem:[%s3553_s19 + $0x8] sm:$0xff]  ;;  %s3040_s19 = sshll.u32 %s3522_s25, 8  ;;  %s4055_s25 = scalar_lea.sflag [#allocation3], %s405_s18 }
 0x604   : > { %v2379_v10 = vrot.slane %v2371_v4, %v3628_v1  ;;  %v2386_v6 = vrot.slane %v2372_v5, %v3628_v1  ;;  %v2395_v7 = vrot.slane %v2387_v8, %v3628_v1  ;;  %v2402_v15 = vrot.slane %v2388_v38, %v3628_v1  ;;  %v3302_v38 = vld [vmem:[%s4105_s8] sm:$0xff]  }
 0x605   : > { %3204 = vmatpush3.bf16.msra.mxu0 %v3302_v38 }
 0x606   : > { %v2475_v44 = vcombine.low %v2379_v10, %v2386_v6  ;;  %v3014_v16 = vcombine.high %v2379_v10, %v2386_v6  ;;  %v2491_v14 = vcombine.low %v2395_v7, %v2402_v15  ;;  %v3015_v17 = vcombine.high %v2395_v7, %v2402_v15  ;;  %v3303_v10 = vld [vmem:[%s4105_s8 + $0x8] sm:$0xff]   ;;  %3205 = vmatprep.subr.bf16.mxu0 %v3422_v9 }
 0x608   : > { %v2482_v21 = vrot.slane %v2475_v44, %v3618_v57  ;;  %v2490_v23 = vrot.slane %v3014_v16, %v3618_v57  ;;  %v2498_v24 = vrot.slane %v2491_v14, %v3618_v57  ;;  %v2506_v25 = vrot.slane %v3015_v17, %v3618_v57 }
 0x609   : > { %3206 = vmatpush3.bf16.msra.mxu0 %v3303_v10  ;;  %v3026_v10 = vld [vmem:[%s4108_s11] ss:$0 sm:$0xff] }
 0x60a   : > { %v2508_v27 = vcombine.high %v2482_v21, %v2490_v23  ;;  %v2524_v29 = vcombine.high %v2498_v24, %v2506_v25  ;;  %v2507_v30 = vcombine.low %v2482_v21, %v2490_v23  ;;  %v2523_v31 = vcombine.low %v2498_v24, %v2506_v25 }
 0x60c   : > { %v2522_v33 = vrot.slane %v2508_v27, %v3628_v1  ;;  %v2538_v40 = vrot.slane %v2524_v29, %v3628_v1  ;;  %v2515_v46 = vrot.slane %v2507_v30, %v3628_v1  ;;  %v2531_v34 = vrot.slane %v2523_v31, %v3628_v1 }
 0x60e   : > { %v2541_v57 = vcombine.low %v2522_v33, %v2538_v40  ;;  %v2540_v37 = vcombine.high %v2515_v46, %v2531_v34  ;;  %v2539_v26 = vcombine.low %v2515_v46, %v2531_v34  ;;  %v2542_v35 = vcombine.high %v2522_v33, %v2538_v40  ;;  %v3020_v33 = vld [vmem:[%s4103_s6] ss:$0 sm:$0xff] }
 0x610   : > { %v3288_v45 = vpack.i.bf16 %v2541_v57, %v2473_v47  ;;  %v3283_v36 = vpack.i.bf16 %v2540_v37, %v2472_v48  ;;  %v3293_v18 = vpack.i.bf16 %v2542_v35, %v2474_v13  ;;  %v3021_v37 = vld [vmem:[%s4104_s7] ss:$0 sm:$0xff] }
 0x612   : > { %3289 = vrot.lane.b32.xlu1 %v3288_v45, %s3431_s26  ;;  %3284 = vrot.lane.b32.xlu0 %v3283_v36, %s4110_s28  ;;  %s4052_s26 = scalar_lea.hbm %s4109_s12, %s3040_s19  ;;  %s3434_s28 = smov [#allocation2]  }
 0x613   : > { %s3362_s0 = sshll.u32 %s3434_s28, 4  ;;  %s3363_s0 = int_to_ptr.vmem [resolvable:$false] %s3362_s0 }
 0x614   : > { %s3364_s1 = scalar_lea.vmem %s3363_s0, 512  ;;  %p3365_p0 = scmp.lt.s32.totalorder %s4045_s16, %s3363_s0 }
 0x616   : > { %3294 = vrot.lane.b32.xlu0 %v3293_v18, %s3433_s29  ;;  %v3304_v18 = vld [vmem:[%s4107_s10] sm:$0xff]   ;;  %s3358_s29 = scalar_lea.vmem %s4045_s16, 256 }
 0x617   : > { %p3359_p11 = scmp.ne.s32.totalorder %s4045_s16, %s3358_s29  ;;  %p3366_p1 = scmp.lt.s32.totalorder %s3364_s1, %s3358_s29 }
 0x619   : > { %p3360_p12 = pnand %p3359_p11, %p3539_p5  ;;  %p3367_p2 = por %p3366_p1, %p3365_p0 }
 0x61b   : > { %p3361_p13 = pneg %p3360_p12 }
 0x61d   : > { %p3368_p3 = pnand %p3367_p2, %p3361_p13 }
 0x684   : > { %v3290_v19 = vpop.permute.xlu1 %3289  ;;  %v3285_v52 = vpop.permute.xlu0 %3284 }
 0x685   : > { %v3287_v1 = vunpack.i.h.bf16 %v3285_v52  ;;  %v3286_v49 = vunpack.i.l.bf16 %v3285_v52  ;;  %v3292_v50 = vunpack.i.h.bf16 %v3290_v19  ;;  %v3291_v51 = vunpack.i.l.bf16 %v3290_v19  ;;  %v3305_v19 = vld [vmem:[%s4107_s10 + $0x8] sm:$0xff]   ;;  %v3306_v52 = vld [vmem:[%s4107_s10 + $0x10] sm:$0xff]  }
 0x687   : > { %v2567_v47 = vsel %vm1437_vm2, %v2471_v41, %v3286_v49  ;;  %v2568_v48 = vsel %vm1437_vm2, %v2539_v26, %v3287_v1  ;;  %v3307_v1 = vld [vmem:[%s4107_s10 + $0x18] sm:$0xff]   ;;  %v3308_v49 = vld [vmem:[%s4107_s10 + $0x20] sm:$0xff]  }
 0x688   : > { %v3295_v13 = vpop.permute.xlu0 %3294  ;;  %v2570_v53 = vsel %vm2569_vm4, %v2567_v47, %v3291_v51  ;;  %v2571_v55 = vsel %vm2569_vm4, %v2568_v48, %v3292_v50  ;;  %v3309_v50 = vld [vmem:[%s4107_s10 + $0x28] sm:$0xff]   ;;  %v3310_v51 = vld [vmem:[%s4107_s10 + $0x30] sm:$0xff]   ;;  %v3311_v47 = vld [vmem:[%s4107_s10 + $0x38] sm:$0xff]  }
 0x689   : > { %v3297_v54 = vunpack.i.h.bf16 %v3295_v13  ;;  %v3296_v11 = vunpack.i.l.bf16 %v3295_v13  ;;  %v3022_v48 = vld [vmem:[%s4106_s9] ss:$0 sm:$0xff] }
 0x68b   : > { %v2573_v56 = vsel %vm2572_vm5, %v2570_v53, %v3296_v11  ;;  %v2574_v58 = vsel %vm2572_vm5, %v2571_v55, %v3297_v54 }
 0x68c   : > { %v2575_v63 = vpack.c.bf16 %v2574_v58, %v2573_v56 }
 0x68e   : > { %3200 = vmatmul.mubr.msk.bf16.vlgmr.msra.gmra.mrb[28].mxu1 %vm418_vm0, %v2575_v63 }
 0x68f   : > { %3227 = vmatprep.mubr.msk.bf16.mxu1 %vm3423_vm1, %v3422_v9  ;;  %3212 = vmatpush3.bf16.msra.mxu1 %v3304_v18 }
 0x690   : > { %3213 = vmatprep.subr.bf16.mxu1 %v3422_v9 }
 0x693   : > { %3214 = vmatpush3.bf16.msra.mxu1 %v3305_v19 }
 0x694   : > { %3215 = vmatprep.subr.bf16.mxu1 %v3422_v9 }
 0x697   : > { %3216 = vmatpush3.bf16.msra.mxu1 %v3306_v52 }
 0x698   : > { %3217 = vmatprep.subr.bf16.mxu1 %v3422_v9 }
 0x69b   : > { %3218 = vmatpush3.bf16.msra.mxu1 %v3307_v1 }
 0x69c   : > { %3219 = vmatprep.subr.bf16.mxu1 %v3422_v9 }
 0x69f   : > { %3220 = vmatpush3.bf16.msra.mxu1 %v3308_v49 }
 0x6a0   : > { %3221 = vmatprep.subr.bf16.mxu1 %v3422_v9 }
 0x6a3   : > { %3222 = vmatpush3.bf16.msra.mxu1 %v3309_v50 }
 0x6a4   : > { %3223 = vmatprep.subr.bf16.mxu1 %v3422_v9 }
 0x6a7   : > { %3224 = vmatpush3.bf16.msra.mxu1 %v3310_v51 }
 0x6a8   : > { %3225 = vmatprep.subr.bf16.mxu1 %v3422_v9 }
 0x6ab   : > { %3226 = vmatpush3.bf16.msra.mxu1 %v3311_v47 }
 0x761   : > { %v2636_v39 = vpop.f32.mrb[28].mxu1 }
 0x762   : > { %v2637_v41 = vadd.f32 %v3016_v12, %v2636_v39  ;;  %v3201_v0 = vpop.f32.mrb[29].mxu1 }
 0x763   : > { %v2639_v2 = vpop.f32.mrb[30].mxu1 }
 0x764   : > { %v3974_v22 = vadd.f32 %v3356_v60, %v2637_v41  ;;  %v2640_v61 = vadd.f32 %v3016_v12, %v2639_v2  ;;  %v3202_v3 = vpop.f32.mrb[31].mxu1 }
 0x766   : > { %v3977_v42 = vadd.f32 %v3357_v43, %v2640_v61  ;;  %v2645_v59 = vsel %vm418_vm0, %v3974_v22, 0.0  ;;  %v2653_v62 = vmul.f32 %v3974_v22, %v3974_v22 }
 0x767   : > { %2646 = vadd.xlane.f32.xlu1 %v2645_v59 }
 0x768   : > { %v2648_v28 = vsel %vm418_vm0, %v3977_v42, 0.0  ;;  %v2655_v4 = vsel %vm418_vm0, %v2653_v62, 0.0  ;;  %v2654_v5 = vmul.f32 %v3977_v42, %v3977_v42 }
 0x769   : > { %2649 = vadd.xlane.f32.xlu0 %v2648_v28 }
 0x76a   : > { %v2658_v8 = vsel %vm418_vm0, %v2654_v5, 0.0 }
 0x76d   : > { %2656 = vadd.xlane.f32.xlu0 %v2655_v4 }
 0x771   : > { %2659 = vadd.xlane.f32.xlu0 %v2658_v8 }
 0x7f4   : > { %v2647_v6 = vpop.xlane.xlu1 %2646 }
 0x7f5   : > { %v2651_v15 = vmul.f32 0.03125, %v2647_v6 }
 0x7f6   : > { %v2650_v7 = vpop.xlane.xlu0 %2649 }
 0x7f7   : > { %v2663_v16 = vmul.f32 %v2651_v15, %v2651_v15  ;;  %v2652_v14 = vmul.f32 0.03125, %v2650_v7  ;;  %v2667_v30 = vsub.f32 %v3974_v22, %v2651_v15 }
 0x7f9   : > { %v2664_v23 = vmul.f32 %v2652_v14, %v2652_v14  ;;  %v2668_v40 = vsub.f32 %v3977_v42, %v2652_v14 }
 0x7fa   : > { %v2657_v44 = vpop.xlane.xlu0 %2656 }
 0x7fb   : > { %v2661_v17 = vmul.f32 0.03125, %v2657_v44 }
 0x7fd   : > { %v2665_v20 = vsub.f32 %v2661_v17, %v2663_v16 }
 0x7fe   : > { %v2660_v21 = vpop.xlane.xlu0 %2659 }
 0x7ff   : > { %v2669_v24 = vadd.f32 1e-05, %v2665_v20  ;;  %v2662_v25 = vmul.f32 0.03125, %v2660_v21 }
 0x801   : > { %3348 = vrsqrt.f32 %v2669_v24  ;;  %v2666_v27 = vsub.f32 %v2662_v25, %v2664_v23 }
 0x803   : > { %v2670_v29 = vadd.f32 1e-05, %v2666_v27 }
 0x805   : > { %3350 = vrsqrt.f32 %v2670_v29 }
 0x80b   : > { %v3349_v31 = vpop.eup %3348 }
 0x80c   : > { %v2673_v32 = vmul.f32 %v3349_v31, %v2667_v30 }
 0x80e   : > { %v2682_v57 = vmul.f32 %v3020_v33, %v2673_v32 }
 0x80f   : > { %v3351_v46 = vpop.eup %3350 }
 0x810   : > { %v2674_v34 = vmul.f32 %v3351_v46, %v2668_v40  ;;  %v2691_v35 = vadd.f32 %v3021_v37, %v2682_v57 }
 0x812   : > { %v2683_v26 = vmul.f32 %v3020_v33, %v2674_v34 }
 0x814   : > { %v2692_v45 = vadd.f32 %v3021_v37, %v2683_v26 }
 0x816   : > { %v2693_v36 = vpack.c.bf16 %v2692_v45, %v2691_v35 }
 0x818   : > { %3208 = vmatmul.mubr.msk.bf16.vlgmr.msra.gmra.mrb[40].mxu0 %vm418_vm0, %v2693_v36 }
 0x8eb   : > { %v2754_v13 = vpop.f32.mrb[40].mxu0 }
 0x8ec   : > { %v2755_v54 = vadd.f32 %v3022_v48, %v2754_v13  ;;  %v3209_v11 = vpop.f32.mrb[41].mxu0 }
 0x8ed   : > { %v2757_v53 = vpop.f32.mrb[42].mxu0 }
 0x8ee   : > { %v2761_v55 = vmul.f32 %v2755_v54, %v2755_v54  ;;  %v2758_v56 = vadd.f32 %v3022_v48, %v2757_v53  ;;  %v3210_v58 = vpop.f32.mrb[43].mxu0 }
 0x8f0   : > { %v2763_v63 = vmul.f32 %v2761_v55, %v2755_v54  ;;  %v2762_v12 = vmul.f32 %v2758_v56, %v2758_v56 }
 0x8f2   : > { %v2765_v39 = vmul.f32 0.044715, %v2763_v63  ;;  %v2764_v9 = vmul.f32 %v2762_v12, %v2758_v56 }
 0x8f4   : > { %v2767_v41 = vadd.f32 %v2765_v39, %v2755_v54  ;;  %v2766_v0 = vmul.f32 0.044715, %v2764_v9 }
 0x8f6   : > { %v2769_v2 = vmul.f32 0.7978846, %v2767_v41  ;;  %v2768_v60 = vadd.f32 %v2766_v0, %v2758_v56 }
 0x8f8   : > { %3352 = vtanh.f32 %v2769_v2  ;;  %v2770_v61 = vmul.f32 0.7978846, %v2768_v60 }
 0x8fa   : > { %3354 = vtanh.f32 %v2770_v61 }
 0x902   : > { %v3353_v3 = vpop.eup %3352 }
 0x903   : > { %v2773_v43 = vadd.f32 1.0, %v3353_v3 }
 0x904   : > { %v3355_v59 = vpop.eup %3354 }
 0x905   : > { %v2775_v28 = vmul.f32 0.5, %v2773_v43  ;;  %v2774_v62 = vadd.f32 1.0, %v3355_v59 }
 0x907   : > { %v2776_v4 = vmul.f32 0.5, %v2774_v62  ;;  %v2777_v5 = vmul.f32 %v2775_v28, %v2755_v54 }
 0x909   : > { %v2778_v8 = vmul.f32 %v2776_v4, %v2758_v56 }
 0x90b   : > { %v2779_v38 = vpack.c.bf16 %v2778_v8, %v2777_v5 }
 0x90d   : > { %3228 = vmatmul.mubr.bf16.vlgmr.msra.gmra.mrb[32].mxu1 %v2779_v38 }
 0x9e0   : > { %v2885_v6 = vpop.f32.mrb[32].mxu1 }
 0x9e1   : > { %v2886_v7 = vadd.f32 %v3026_v10, %v2885_v6  ;;  %v3229_v15 = vpop.f32.mrb[33].mxu1 }
 0x9e2   : > { %v2888_v44 = vpop.f32.mrb[34].mxu1 }
 0x9e3   : > { %v2892_v16 = vadd.f32 %v2886_v7, %v3974_v22  ;;  %v2889_v14 = vadd.f32 %v3026_v10, %v2888_v44  ;;  %v3230_v17 = vpop.f32.mrb[35].mxu1 }
 0x9e5   : > { %2894 = vst.msk [vmem:[%s407_s15] sm:$0xff] %vm418_vm0, %v2892_v16  ;;  %v2893_v20 = vadd.f32 %v2889_v14, %v3977_v42 }
 0x9e7   : > { %2895 = vst.msk [vmem:[%s407_s15 + $0x8] sm:$0xff] %vm418_vm0, %v2893_v20 }
 0x9e8   : > { %3371 = shalt.err (!%p3368_p3)
}
 0x9e9   : > { %s3372_s18 = scalar_lea.hbm %s4052_s26, 256  ;;  %s3376_s28 = scalar_lea.hbm %s4109_s12, 512 }
 0x9ea   : > { %p3373_p4 = scmp.ne.s32.totalorder %s4052_s26, %s3372_s18  ;;  %p3377_p9 = scmp.lt.u32.totalorder %s4052_s26, %s4109_s12 }
 0x9eb   : > { %p3378_p10 = scmp.lt.u32.totalorder %s3376_s28, %s3372_s18  ;;  %p3380_p12 = scmp.lt.u32.totalorder %s3372_s18, %s4052_s26 }
 0x9ec   : > { %p3374_p7 = pnand %p3373_p4, %p3539_p5 }
 0x9ed   : > { %p3379_p11 = por %p3378_p10, %p3377_p9 }
 0x9ee   : > { %p3375_p8 = pneg %p3374_p7 }
 0x9ef   : > { %p3381_p13 = por %p3380_p12, %p3379_p11 }
 0x9f1   : > { %p3382_p0 = pnand %p3381_p13, %p3375_p8 }
 0x9f3   : > { %3385 = shalt.err (!%p3382_p0)
}
 0x9f4   : > { %s3435_s1 = smov 128   ;;  %s4117_s20 = smov 8  }
 0x9f5   : > { %3231 = dma.vmem_to_hbm [thread:$0]  (%p3539_p5), %s4045_s16, 256, %s4052_s26, %s4055_s25, %s3435_s1, %s3435_s1, %s4117_s20  }
 0x9f6 PF: > { %p3237_p1 = scmp.ge.s32.totalorder %s3420_s24, 2  ;;  %s2925_s29 = sand.u32 1, %s3408_s21  }
 0x9f7   : > { %s2926_s18 = scalar_lea.sflag [#allocation3], %s2925_s29 }
 0x9f8   : > { %p3234_p2 = pnand %p3237_p1, %p3543_p6 }
 0x9fa   : > { %3403 = dma.done.wait (!%p3234_p2), %s2926_s18, 256  }
 0x9fb   : > { %3405 = vsyncadd (!%p3234_p2), %s2926_s18, 4294967040  ;;  %p22_p3 = scmp.ge.s32.totalorder %s3526_s27, 4   ;;  %s4118_s21 = smov %s3412_s22 }
 0x9fc   : > { %s4119_s22 = smov %s3416_s23  ;;  %s4120_s23 = smov %s3537_s30 }
 0x9fd   : > { %s4121_s24 = smov %s3526_s27  ;;  %24 = sbr.rel (!%p22_p3) target bundleno = 6 (0x6), region = 103 }
 0xa04   :  { %2931 = vsyncpa [#allocation3], 1 }
 0xa05   :  { %2933 = vsyncpa [#allocation3 + $0x1], 1 }

</bundles_post_ra>
